<compile_context>
chip_gen: v7x
topology: tpu7x:2x2x1
jax: 0.10.0
libtpu: 0.0.40
codegen_flags: <defaults>
</compile_context>

<pallas_src>
import functools
import jax
import jax.numpy as jnp
from jax.experimental import pallas as pl
from jax.experimental.pallas import tpu as pltpu

# ------------------------------------------------------------------ constants / limits
TM, TN, TK = 512, 512, 1024          # GEMM tiles (bigger tiles amortize pipeline overhead)
ATT_TQ, ATT_TK = 256, 256            # flash-attention q / kv tiles
LN_EPS = 1e-5
MASK_VALUE = -1e30                   # finite, bf16-representable mask value
GELU_TANH_APPROX = False             # flip to True on v5e if GEGLU epilogue is VALU-bound


def _vmem_limit_bytes():
    # ~5/8 of physical VMEM: 40 MiB on v7x (64 MiB), 80 MiB on v5e/v6e (128 MiB).
    try:
        cap = int(getattr(pltpu.get_tpu_info(), "vmem_capacity_bytes", 64 * 1024 * 1024))
    except Exception:                # pragma: no cover - conservative fallback
        cap = 64 * 1024 * 1024
    return min(cap * 5 // 8, 96 * 1024 * 1024)


VMEM_LIMIT = _vmem_limit_bytes()


# ----------------------------------------------------------------------------- helpers

def _round_up(x, m):
    return (x + m - 1) // m * m


def _pad2(a, rows, cols):
    r, c = a.shape
    if r == rows and c == cols:
        return a
    return jnp.pad(a, ((0, rows - r), (0, cols - c)))


def _layernorm_f32(x, g, b):
    mean = jnp.mean(x, axis=-1, keepdims=True)
    var = jnp.mean(jnp.square(x - mean), axis=-1, keepdims=True)
    return (x - mean) * jax.lax.rsqrt(var + LN_EPS) * g + b


def _gelu(x):
    if GELU_TANH_APPROX:
        # tanh approximation -> EUP slot (useful if the VPU saturates on v5e)
        return 0.5 * x * (1.0 + jnp.tanh(0.7978845608028654 * (x + 0.044715 * x * x * x)))
    # exact (erf) GELU matching F.gelu default; erf via Abramowitz-Stegun 7.1.26
    # polynomial (|err| < 1.5e-7) so only exp / mul / add / where are needed.
    z = x * 0.7071067811865476
    a = jnp.abs(z)
    t = 1.0 / (1.0 + 0.3275911 * a)
    poly = t * (0.254829592 + t * (-0.284496736 + t * (1.421413741 +
               t * (-1.453152027 + t * 1.061405429))))
    erf_abs = 1.0 - poly * jnp.exp(-a * a)
    erf = jnp.where(z < 0, -erf_abs, erf_abs)
    return 0.5 * x * (1.0 + erf)


# ----------------------------------------------------------------------- tiled matmul

def _matmul_kernel(x_ref, w_ref, o_ref, acc_ref):
    @pl.when(pl.program_id(2) == 0)
    def _():
        acc_ref[...] = jnp.zeros_like(acc_ref)
    acc_ref[...] += jnp.dot(x_ref[...], w_ref[...], preferred_element_type=jnp.float32)

    @pl.when(pl.program_id(2) == pl.num_programs(2) - 1)
    def _():
        o_ref[...] = acc_ref[...].astype(o_ref.dtype)


def _matmul_res_kernel(x_ref, w_ref, r_ref, o_ref, acc_ref):
    @pl.when(pl.program_id(2) == 0)
    def _():
        acc_ref[...] = jnp.zeros_like(acc_ref)
    acc_ref[...] += jnp.dot(x_ref[...], w_ref[...], preferred_element_type=jnp.float32)

    @pl.when(pl.program_id(2) == pl.num_programs(2) - 1)
    def _():
        o_ref[...] = (acc_ref[...] + r_ref[...].astype(jnp.float32)).astype(o_ref.dtype)


def _matmul_bias_kernel(x_ref, w_ref, b_ref, o_ref, acc_ref):
    @pl.when(pl.program_id(2) == 0)
    def _():
        acc_ref[...] = jnp.zeros_like(acc_ref)
    acc_ref[...] += jnp.dot(x_ref[...], w_ref[...], preferred_element_type=jnp.float32)

    @pl.when(pl.program_id(2) == pl.num_programs(2) - 1)
    def _():
        o_ref[...] = (acc_ref[...] + b_ref[...]).astype(o_ref.dtype)


def pallas_matmul(x, w, *, residual=None, bias=None, out_dtype=jnp.bfloat16,
                  tm=TM, tn=TN, tk=TK):
    """x:(M,K) @ w:(K,N) [+ residual:(M,N) | + bias:(N,)].  bf16 MXU / f32 accum,
    K-accumulated software pipeline."""
    M, K = x.shape
    K2, N = w.shape
    assert K == K2
    tm = min(tm, _round_up(M, 8))
    tn = min(tn, _round_up(N, 128))
    tk = min(tk, _round_up(K, 128))
    Mp, Np, Kp = _round_up(M, tm), _round_up(N, tn), _round_up(K, tk)

    xp = _pad2(x.astype(jnp.bfloat16), Mp, Kp)
    wp = _pad2(w.astype(jnp.bfloat16), Kp, Np)          # no-op for pre-padded bf16 weights
    args = [xp, wp]
    in_specs = [pl.BlockSpec((tm, tk), lambda i, j, k: (i, k)),
                pl.BlockSpec((tk, tn), lambda i, j, k: (k, j))]
    if residual is not None:
        args.append(_pad2(residual.astype(jnp.bfloat16), Mp, Np))
        in_specs.append(pl.BlockSpec((tm, tn), lambda i, j, k: (i, j)))
        kernel = _matmul_res_kernel
    elif bias is not None:
        args.append(_pad2(bias.reshape(1, -1).astype(jnp.float32), 1, Np))
        in_specs.append(pl.BlockSpec((1, tn), lambda i, j, k: (0, j)))
        kernel = _matmul_bias_kernel
    else:
        kernel = _matmul_kernel

    out = pl.pallas_call(
        kernel,
        out_shape=jax.ShapeDtypeStruct((Mp, Np), out_dtype),
        grid=(Mp // tm, Np // tn, Kp // tk),
        in_specs=in_specs,
        out_specs=pl.BlockSpec((tm, tn), lambda i, j, k: (i, j)),
        scratch_shapes=[pltpu.VMEM((tm, tn), jnp.float32)],
        compiler_params=pltpu.CompilerParams(
            dimension_semantics=("parallel", "parallel", "arbitrary"),
            vmem_limit_bytes=VMEM_LIMIT),
    )(*args)
    return out[:M, :N]


# ------------------------------------------------------------------------ LayerNorm

def _layernorm_kernel(x_ref, g_ref, b_ref, o_ref):
    o_ref[...] = _layernorm_f32(x_ref[...].astype(jnp.float32),
                                g_ref[...], b_ref[...]).astype(o_ref.dtype)


def pallas_layernorm(x2, gamma, beta, *, tm=512):
    M, D = x2.shape
    tm = min(tm, _round_up(M, 8))
    Mp = _round_up(M, tm)
    xp = _pad2(x2.astype(jnp.bfloat16), Mp, D)
    g = gamma.reshape(1, D).astype(jnp.float32)
    b = beta.reshape(1, D).astype(jnp.float32)
    out = pl.pallas_call(
        _layernorm_kernel,
        out_shape=jax.ShapeDtypeStruct((Mp, D), jnp.bfloat16),
        grid=(Mp // tm,),
        in_specs=[pl.BlockSpec((tm, D), lambda i: (i, 0)),
                  pl.BlockSpec((1, D), lambda i: (0, 0)),
                  pl.BlockSpec((1, D), lambda i: (0, 0))],
        out_specs=pl.BlockSpec((tm, D), lambda i: (i, 0)),
        compiler_params=pltpu.CompilerParams(
            dimension_semantics=("parallel",), vmem_limit_bytes=VMEM_LIMIT),
    )(xp, g, b)
    return out[:M]


# ------------------------------------------------------------- fused LN + q/kv projection

def _ln_qkv_kernel(x_ref, g_ref, b_ref, wq_ref, wkv_ref, q_ref, kv_ref):
    x = x_ref[...]                                            # (tm, D) bf16
    xn = _layernorm_f32(x.astype(jnp.float32), g_ref[...], b_ref[...])
    # q: post-norm input; softmax scale already folded into wq at init.
    q_ref[...] = jnp.dot(xn.astype(jnp.bfloat16), wq_ref[...],
                         preferred_element_type=jnp.float32).astype(q_ref.dtype)
    # kv: PRE-norm input (kv_input is captured before x = self.norm(x) in the reference).
    kv_ref[...] = jnp.dot(x, wkv_ref[...],
                          preferred_element_type=jnp.float32).astype(kv_ref.dtype)


def pallas_ln_qkv(x2, gamma, beta, wq, wkv, *, tm=TM):
    """Fused LayerNorm + q / kv projections.  wkv is lane-padded at init so the kv
    store is >=128 lanes wide (unmasked vst).  Grid only over rows -> LN computed once."""
    M, D = x2.shape
    HD, KVp = wq.shape[1], wkv.shape[1]
    tm = min(tm, _round_up(M, 8))
    Mp = _round_up(M, tm)
    xp = _pad2(x2.astype(jnp.bfloat16), Mp, D)
    g = gamma.reshape(1, D).astype(jnp.float32)
    b = beta.reshape(1, D).astype(jnp.float32)
    q, kv = pl.pallas_call(
        _ln_qkv_kernel,
        out_shape=(jax.ShapeDtypeStruct((Mp, HD), jnp.bfloat16),
                   jax.ShapeDtypeStruct((Mp, KVp), jnp.bfloat16)),
        grid=(Mp // tm,),
        in_specs=[pl.BlockSpec((tm, D), lambda i: (i, 0)),
                  pl.BlockSpec((1, D), lambda i: (0, 0)),
                  pl.BlockSpec((1, D), lambda i: (0, 0)),
                  pl.BlockSpec((D, HD), lambda i: (0, 0)),
                  pl.BlockSpec((D, KVp), lambda i: (0, 0))],
        out_specs=(pl.BlockSpec((tm, HD), lambda i: (i, 0)),
                   pl.BlockSpec((tm, KVp), lambda i: (i, 0))),
        compiler_params=pltpu.CompilerParams(
            dimension_semantics=("parallel",), vmem_limit_bytes=VMEM_LIMIT),
    )(xp, g, b, wq, wkv)
    return q[:M], kv[:M]


# -------------------------------------------------------------------------- GEGLU matmul

def _geglu_matmul_kernel(x_ref, wx_ref, wg_ref, o_ref):
    x = x_ref[...]                                            # pre-normalized bf16
    h = jnp.dot(x, wx_ref[...], preferred_element_type=jnp.float32)
    gate = jnp.dot(x, wg_ref[...], preferred_element_type=jnp.float32)
    o_ref[...] = (_gelu(gate) * h).astype(o_ref.dtype)


def pallas_geglu(xn2, w1x, w1g, *, tm=TM, tn=TN):
    """First FF matmul + GEGLU on a pre-normalized input (LN hoisted out so the
    mean/var/rsqrt are not recomputed for every output tile)."""
    M, D = xn2.shape
    N = w1x.shape[1]
    tm = min(tm, _round_up(M, 8))
    tn = min(tn, _round_up(N, 128))
    Mp, Np = _round_up(M, tm), _round_up(N, tn)
    xp = _pad2(xn2.astype(jnp.bfloat16), Mp, D)
    wxp = _pad2(w1x, D, Np)
    wgp = _pad2(w1g, D, Np)
    out = pl.pallas_call(
        _geglu_matmul_kernel,
        out_shape=jax.ShapeDtypeStruct((Mp, Np), jnp.bfloat16),
        grid=(Mp // tm, Np // tn),
        in_specs=[pl.BlockSpec((tm, D), lambda i, j: (i, 0)),
                  pl.BlockSpec((D, tn), lambda i, j: (0, j)),
                  pl.BlockSpec((D, tn), lambda i, j: (0, j))],
        out_specs=pl.BlockSpec((tm, tn), lambda i, j: (i, j)),
        compiler_params=pltpu.CompilerParams(
            dimension_semantics=("parallel", "parallel"), vmem_limit_bytes=VMEM_LIMIT),
    )(xp, wxp, wgp)
    return out[:M, :N]


# ---------------------------------------------------------------- flash-style attention

def _flash_attn_kernel(q_ref, kt_ref, v_ref, bias_ref, o_ref,
                       m_sc, l_sc, acc_sc, *, heads, dim_head):
    ki = pl.program_id(2)

    @pl.when(ki == 0)
    def _():
        m_sc[...] = jnp.full_like(m_sc, MASK_VALUE)
        l_sc[...] = jnp.zeros_like(l_sc)
        acc_sc[...] = jnp.zeros_like(acc_sc)

    q = q_ref[0]            # (tq, H*Dh) bf16, softmax scale folded into wq
    kt = kt_ref[0]          # (Dh, tkv)  bf16, K pre-transposed -> plain MXU matmul
    v = v_ref[0]            # (tkv, Dh)  bf16 (single/multi-query kv head)

    for h in range(heads):                                    # static unroll over heads
        qh = q[:, h * dim_head:(h + 1) * dim_head]
        s = jnp.dot(qh, kt, preferred_element_type=jnp.float32)
        s = s + bias_ref[h].astype(jnp.float32)               # causal + cross bias (bf16 in HBM)
        m_prev = m_sc[h]
        m_new = jnp.maximum(m_prev, jnp.max(s, axis=-1, keepdims=True))
        alpha = jnp.exp(m_prev - m_new)
        p = jnp.exp(s - m_new)
        l_sc[h] = alpha * l_sc[h] + jnp.sum(p, axis=-1, keepdims=True)
        acc_sc[h] = alpha * acc_sc[h] + jnp.dot(p.astype(jnp.bfloat16), v,
                                                preferred_element_type=jnp.float32)
        m_sc[h] = m_new

    @pl.when(ki == pl.num_programs(2) - 1)
    def _():
        # direct per-head slice stores (no concatenate, no extra VMEM copy)
        for h in range(heads):
            inv = pl.reciprocal(jnp.maximum(l_sc[h], 1e-30), approx=True)
            o_ref[0, :, h * dim_head:(h + 1) * dim_head] = (acc_sc[h] * inv).astype(o_ref.dtype)


def pallas_attention(q, k, v, bias):
    """q:(B,N,H*Dh) (scale pre-folded), k/v:(B,N,Dh), bias:(H,N,N) bf16 with causal +
    cross-segment terms folded in.  Flash-style tiling: grid=(B, Nq/tq, Nk/tkv), online
    softmax, only an (H, tq, tkv) bias slice resident per step."""
    B, N, HD = q.shape
    Dh = k.shape[-1]
    H = HD // Dh
    tq = min(ATT_TQ, _round_up(N, 8))
    tkv = min(ATT_TK, _round_up(N, 128))
    Nq, Nk = _round_up(N, tq), _round_up(N, tkv)

    qp = jnp.pad(q.astype(jnp.bfloat16), ((0, 0), (0, Nq - N), (0, 0)))
    ktp = jnp.pad(jnp.swapaxes(k.astype(jnp.bfloat16), -1, -2),     # (B, Dh, N)
                  ((0, 0), (0, 0), (0, Nk - N)))
    vp = jnp.pad(v.astype(jnp.bfloat16), ((0, 0), (0, Nk - N), (0, 0)))
    biasp = jnp.pad(bias.astype(jnp.bfloat16), ((0, 0), (0, Nq - N), (0, Nk - N)),
                    constant_values=MASK_VALUE)                      # masks padded kv columns

    kernel = functools.partial(_flash_attn_kernel, heads=H, dim_head=Dh)
    out = pl.pallas_call(
        kernel,
        out_shape=jax.ShapeDtypeStruct((B, Nq, HD), jnp.bfloat16),
        grid=(B, Nq // tq, Nk // tkv),
        in_specs=[pl.BlockSpec((1, tq, HD), lambda b, qi, ki: (b, qi, 0)),
                  pl.BlockSpec((1, Dh, tkv), lambda b, qi, ki: (b, 0, ki)),
                  pl.BlockSpec((1, tkv, Dh), lambda b, qi, ki: (b, ki, 0)),
                  pl.BlockSpec((H, tq, tkv), lambda b, qi, ki: (0, qi, ki))],
        out_specs=pl.BlockSpec((1, tq, HD), lambda b, qi, ki: (b, qi, 0)),
        scratch_shapes=[pltpu.VMEM((H, tq, 1), jnp.float32),
                        pltpu.VMEM((H, tq, 1), jnp.float32),
                        pltpu.VMEM((H, tq, Dh), jnp.float32)],
        compiler_params=pltpu.CompilerParams(
            dimension_semantics=("parallel", "parallel", "arbitrary"),
            vmem_limit_bytes=VMEM_LIMIT),
    )(qp, ktp, vp, biasp)
    return out[:, :N]


# ------------------------------------------------------------------- per-quantizer logits

def _group_logits_kernel(x_ref, w_ref, o_ref):
    o_ref[0] = jnp.dot(x_ref[0], w_ref[0],
                       preferred_element_type=jnp.float32).astype(o_ref.dtype)


def pallas_group_logits(x, w, *, tm=256):
    """x:(NQ, M, D), w:(NQ, D, Cpad) -> (NQ, M, Cpad); tiled over quantizers AND rows."""
    NQ, M, D = x.shape
    Cp = w.shape[-1]
    tm = min(tm, _round_up(M, 8))
    Mp = _round_up(M, tm)
    xp = jnp.pad(x.astype(jnp.bfloat16), ((0, 0), (0, Mp - M), (0, 0)))
    out = pl.pallas_call(
        _group_logits_kernel,
        out_shape=jax.ShapeDtypeStruct((NQ, Mp, Cp), jnp.float32),
        grid=(NQ, Mp // tm),
        in_specs=[pl.BlockSpec((1, tm, D), lambda qi, mi: (qi, mi, 0)),
                  pl.BlockSpec((1, D, Cp), lambda qi, mi: (qi, 0, 0))],
        out_specs=pl.BlockSpec((1, tm, Cp), lambda qi, mi: (qi, mi, 0)),
        compiler_params=pltpu.CompilerParams(
            dimension_semantics=("parallel", "parallel"),
            vmem_limit_bytes=VMEM_LIMIT),
    )(xp, w)
    return out[:, :M]


# ----------------------------------------------------------------------------- model glue

def rel_pos_bias_fn(rp_params, seq_len):
    """RelativePositionBias(dim=dim//2, heads, layers=3) at (i=j=seq_len). Tiny MLP, plain JAX."""
    j = seq_len
    h = jnp.arange(-j + 1, j, dtype=jnp.float32)[:, None]
    n_lin = len(rp_params)
    for idx, (w, b) in enumerate(rp_params):
        h = h @ w + b
        if idx < n_lin - 1:
            h = jax.nn.silu(h)
    i_pos = jnp.arange(j)
    rel = i_pos[:, None] - i_pos[None, :] + (j - 1)
    bias = h[rel]                                       # (i, j, heads)
    return jnp.transpose(bias, (2, 0, 1))               # (heads, i, j)


def attention_block(x, p, attn_bias, value_residual, heads, dim_head):
    b, n, d = x.shape
    x2 = x.reshape(b * n, d)
    q2, kv2 = pallas_ln_qkv(x2, p['ln_g'], p['ln_b'], p['wq'], p['wkv'])
    q = q2.reshape(b, n, heads * dim_head)
    kv = kv2[:, :2 * dim_head].reshape(b, n, 2 * dim_head)
    k, v = kv[..., :dim_head], kv[..., dim_head:]
    orig_v = v
    if value_residual is not None:
        v = (0.5 * (v.astype(jnp.float32) + value_residual.astype(jnp.float32))
             ).astype(jnp.bfloat16)
    attn_out = pallas_attention(q, k, v, attn_bias)
    out2 = pallas_matmul(attn_out.reshape(b * n, heads * dim_head), p['wo'],
                         residual=x2, out_dtype=jnp.bfloat16)        # residual add fused
    return out2.reshape(b, n, d), orig_v


def ff_block(x, p):
    b, n, d = x.shape
    x2 = x.reshape(b * n, d)
    xn = pallas_layernorm(x2, p['ln1_g'], p['ln1_b'])                # LN hoisted (once per row)
    h = pallas_geglu(xn, p['w1x'], p['w1g'])
    hn = pallas_layernorm(h, p['ln2_g'], p['ln2_b'])
    out2 = pallas_matmul(hn, p['w2'], residual=x2, out_dtype=jnp.bfloat16)  # K-tiled + residual
    return out2.reshape(b, n, d)


def transformer_forward(x, params, attn_bias, heads, dim_head):
    # grad_shrink(t) = t*alpha + detach(t)*(1-alpha) is the identity in the forward value.
    x = x.astype(jnp.bfloat16)
    value_res = None
    for lp in params['layers']:
        x, values = attention_block(x, lp['attn'], attn_bias, value_res, heads, dim_head)
        if value_res is None:                                        # add_value_residual=True
            value_res = values
        x = ff_block(x, lp['ff'])
    b, n, d = x.shape
    out2 = pallas_layernorm(x.reshape(b * n, d), params['final_ln_g'], params['final_ln_b'])
    return out2.reshape(b, n, d)


def coarse_transformer_forward(params, semantic_token_ids, coarse_token_ids, cfg):
    b = semantic_token_ids.shape[0]
    dim = cfg['dim']
    NQ = cfg['num_coarse_quantizers']
    CB = cfg['codebook_size']
    heads, dim_head = cfg['heads'], cfg['dim_head']

    n_coarse = coarse_token_ids.shape[-1]
    n_rep = -(-n_coarse // NQ)                                       # ceil_div

    offsets = CB * jnp.arange(NQ, dtype=coarse_token_ids.dtype)
    offsets = jnp.tile(offsets, n_rep)[:n_coarse][None, :]
    coarse_ids = coarse_token_ids + offsets

    semantic_tokens = params['sem_emb'][semantic_token_ids]          # (b, ns, d)
    coarse_tokens = params['coarse_emb'][coarse_ids]                 # (b, nc, d)
    quant_tokens = jnp.tile(params['quant_emb'], (n_rep, 1))[:n_coarse]
    coarse_tokens = coarse_tokens + quant_tokens[None]

    ns = semantic_tokens.shape[1]
    sem_start = jnp.broadcast_to(params['sem_start'], (b, 1, dim))
    coarse_start = jnp.broadcast_to(params['coarse_start'], (b, 1, dim))
    tokens = jnp.concatenate([sem_start, semantic_tokens, coarse_start, coarse_tokens], axis=1)
    seq = tokens.shape[1]

    # relative position bias + cross-segment override + causal mask, folded ONCE on host
    # and shipped to the tiled attention kernel as bf16.
    bias = rel_pos_bias_fn(params['relpos'], seq)                    # (heads, seq, seq) f32
    is_semantic = jnp.arange(seq) < ns + 1
    is_cross = is_semantic[:, None] ^ is_semantic[None, :]
    bias = jnp.where(is_cross[None, :, :], params['cross_attn_bias'], bias)
    causal = jnp.triu(jnp.ones((seq, seq), dtype=bool), k=1)
    bias = jnp.where(causal[None, :, :], MASK_VALUE, bias).astype(jnp.bfloat16)

    tokens = transformer_forward(tokens, params, bias, heads, dim_head)

    pred_sem = tokens[:, :ns]                                        # (b, ns, d)
    pred_coarse = tokens[:, ns + 1:]                                 # (b, nc + 1, d)

    sem_logits = pallas_matmul(pred_sem.reshape(b * ns, dim), params['sem_logits_w'],
                               bias=params['sem_logits_b'],
                               out_dtype=jnp.float32).reshape(b, ns, -1)

    # coarse logits: one lane-dense per-quantizer GEMM (tiled over quantizers & rows).
    n = pred_coarse.shape[1]
    C = CB + 1
    n_pad = _round_up(n, NQ)
    ng = n_pad // NQ
    pc = jnp.pad(pred_coarse, ((0, 0), (0, n_pad - n), (0, 0)))
    pc = pc.reshape(b, ng, NQ, dim).transpose(2, 0, 1, 3).reshape(NQ, b * ng, dim)
    logits = pallas_group_logits(pc, params['coarse_logit_w'])       # (NQ, b*ng, Cpad)
    logits = logits.reshape(NQ, b, ng, -1).transpose(1, 2, 0, 3).reshape(b, n_pad, -1)
    coarse_logits = logits[:, :n, :C]

    return sem_logits, coarse_logits


# ----------------------------------------------------------------------------- params

def init_params(key, cfg):
    dim = cfg['dim']
    heads, dim_head = cfg['heads'], cfg['dim_head']
    NQ, CB = cfg['num_coarse_quantizers'], cfg['codebook_size']
    ns_tok = cfg['num_semantic_tokens']
    depth = cfg['depth']
    inner_ff = int(dim * 2 * 4 / 3)                                  # FeedForward mult=4
    rp_dim = dim // 2
    C = CB + 1
    Cp = _round_up(C, 128)
    kv_dim = 2 * dim_head
    kvp = _round_up(kv_dim, 128)
    att_scale = dim_head ** -0.5

    keys = iter(jax.random.split(key, 1024))

    def nrm_f32(shape, scale=0.02):
        return scale * jax.random.normal(next(keys), shape, dtype=jnp.float32)

    def nrm(shape, scale=0.02):
        return nrm_f32(shape, scale).astype(jnp.bfloat16)

    params = {
        'sem_start': nrm((dim,), 1.0),
        'coarse_start': nrm((dim,), 1.0),
        'sem_emb': nrm((ns_tok + 1, dim)),
        'coarse_emb': nrm((NQ * C, dim)),
        'quant_emb': nrm((NQ, dim)),
        'cross_attn_bias': jnp.zeros((heads, 1, 1), jnp.float32),
        'relpos': [(nrm_f32((1, rp_dim)), nrm_f32((rp_dim,))),
                   (nrm_f32((rp_dim, rp_dim)), nrm_f32((rp_dim,))),
                   (nrm_f32((rp_dim, rp_dim)), nrm_f32((rp_dim,))),
                   (nrm_f32((rp_dim, heads)), nrm_f32((heads,)))],
        'final_ln_g': jnp.ones((dim,), jnp.float32),
        'final_ln_b': jnp.zeros((dim,), jnp.float32),
        'sem_logits_w': nrm((dim, ns_tok + 1)),
        'sem_logits_b': nrm_f32((ns_tok + 1,)),
        # pre-transposed (q, d, c), lane-padded to Cp for lane-dense logit stores
        'coarse_logit_w': jnp.pad(nrm((NQ, dim, C), 1.0), ((0, 0), (0, 0), (0, Cp - C))),
        'layers': [],
    }
    for _ in range(depth):
        layer = {
            'attn': {
                'ln_g': jnp.ones((dim,), jnp.float32),
                'ln_b': jnp.zeros((dim,), jnp.float32),
                # softmax scale folded into wq at init (scale real checkpoints the same way)
                'wq': (nrm_f32((dim, heads * dim_head)) * att_scale).astype(jnp.bfloat16),
                # kv projection lane-padded with zero columns to >=128 output lanes
                'wkv': jnp.pad(nrm((dim, kv_dim)), ((0, 0), (0, kvp - kv_dim))),
                'wo': nrm((heads * dim_head, dim)),
            },
            'ff': {
                'ln1_g': jnp.ones((dim,), jnp.float32),
                'ln1_b': jnp.zeros((dim,), jnp.float32),
                'w1x': nrm((dim, inner_ff)),     # GEGLU value half of w1 (pre-split at init)
                'w1g': nrm((dim, inner_ff)),     # GEGLU gate half of w1
                'ln2_g': jnp.ones((inner_ff,), jnp.float32),
                'ln2_b': jnp.zeros((inner_ff,), jnp.float32),
                'w2': nrm((inner_ff, dim)),
            },
        }
        params['layers'].append(layer)
    return params


# ----------------------------------------------------------------------------- main

if __name__ == "__main__":
    cfg = dict(
        dim=48, depth=2, heads=4, dim_head=16,
        num_semantic_tokens=10, codebook_size=16, num_coarse_quantizers=3,
        grad_shrink_alpha=0.1,
    )

    root = jax.random.PRNGKey(0)
    k_params, k_sem, k_coarse = jax.random.split(root, 3)
    params = init_params(k_params, cfg)

    b, n_sem, n_coarse = 2, 5, 6
    semantic_token_ids = jax.random.randint(k_sem, (b, n_sem), 0, cfg['num_semantic_tokens'])
    coarse_token_ids = jax.random.randint(k_coarse, (b, n_coarse), 0, cfg['codebook_size'])

    fwd = jax.jit(lambda p, s, c: coarse_transformer_forward(p, s, c, cfg))
    sem_logits, coarse_logits = fwd(params, semantic_token_ids, coarse_token_ids)

    jax.block_until_ready((sem_logits, coarse_logits))
    assert sem_logits.shape == (b, n_sem, cfg['num_semantic_tokens'] + 1)
    assert coarse_logits.shape == (b, n_coarse + 1, cfg['codebook_size'] + 1)
    assert bool(jnp.all(jnp.isfinite(sem_logits)))
    assert bool(jnp.all(jnp.isfinite(coarse_logits)))
    print("KERNEL_OK")
</pallas_src>

<mosaic_0001>
module attributes {stable_mosaic.version = 11 : i64} {
  func.func @_ln_qkv_kernel(%arg0: i32, %arg1: memref<32x48xbf16, #tpu.memory_space<vmem>>, %arg2: memref<1x48xf32, #tpu.memory_space<vmem>>, %arg3: memref<1x48xf32, #tpu.memory_space<vmem>>, %arg4: memref<48x64xbf16, #tpu.memory_space<vmem>>, %arg5: memref<48x128xbf16, #tpu.memory_space<vmem>>, %arg6: memref<32x64xbf16, #tpu.memory_space<vmem>>, %arg7: memref<32x128xbf16, #tpu.memory_space<vmem>>) attributes {dimension_semantics = [#tpu.dimension_semantics<parallel>], iteration_bounds = array<i64: 1>, scalar_prefetch = 0 : i64, scratch_operands = 0 : i64, tpu.core_type = #tpu.core_type<tc>, window_params = [{transform_indices = @transform_0, window_bounds = array<i64: 32, 48>}, {pipeline_mode = #tpu.pipeline_mode<synchronous>, transform_indices = @transform_1, window_bounds = array<i64: 1, 48>}, {pipeline_mode = #tpu.pipeline_mode<synchronous>, transform_indices = @transform_2, window_bounds = array<i64: 1, 48>}, {pipeline_mode = #tpu.pipeline_mode<synchronous>, transform_indices = @transform_3, window_bounds = array<i64: 48, 64>}, {pipeline_mode = #tpu.pipeline_mode<synchronous>, transform_indices = @transform_4, window_bounds = array<i64: 48, 128>}, {transform_indices = @transform_5, window_bounds = array<i64: 32, 64>}, {transform_indices = @transform_6, window_bounds = array<i64: 32, 128>}]} {
    %c0 = arith.constant 0 : index
    %c0_0 = arith.constant 0 : index
    %0 = vector.load %arg1[%c0, %c0_0] : memref<32x48xbf16, #tpu.memory_space<vmem>>, vector<32x48xbf16>
    %1 = arith.extf %0 : vector<32x48xbf16> to vector<32x48xf32>
    %c0_1 = arith.constant 0 : index
    %c0_2 = arith.constant 0 : index
    %2 = vector.load %arg2[%c0_1, %c0_2] : memref<1x48xf32, #tpu.memory_space<vmem>>, vector<1x48xf32>
    %c0_3 = arith.constant 0 : index
    %c0_4 = arith.constant 0 : index
    %3 = vector.load %arg3[%c0_3, %c0_4] : memref<1x48xf32, #tpu.memory_space<vmem>>, vector<1x48xf32>
    %cst = arith.constant dense<0.000000e+00> : vector<32xf32>
    %4 = vector.multi_reduction <add>, %1, %cst [1] : vector<32x48xf32> to vector<32xf32>
    %5 = vector.shape_cast %4 : vector<32xf32> to vector<32x1xf32>
    %cst_5 = arith.constant 4.800000e+01 : f32
    %6 = vector.broadcast %cst_5 : f32 to vector<32x1xf32>
    %7 = arith.divf %5, %6 : vector<32x1xf32>
    %8 = vector.broadcast %7 : vector<32x1xf32> to vector<32x48xf32>
    %9 = arith.subf %1, %8 : vector<32x48xf32>
    %10 = arith.mulf %9, %9 : vector<32x48xf32>
    %cst_6 = arith.constant dense<0.000000e+00> : vector<32xf32>
    %11 = vector.multi_reduction <add>, %10, %cst_6 [1] : vector<32x48xf32> to vector<32xf32>
    %12 = vector.shape_cast %11 : vector<32xf32> to vector<32x1xf32>
    %cst_7 = arith.constant 4.800000e+01 : f32
    %13 = vector.broadcast %cst_7 : f32 to vector<32x1xf32>
    %14 = arith.divf %12, %13 : vector<32x1xf32>
    %15 = vector.broadcast %7 : vector<32x1xf32> to vector<32x48xf32>
    %16 = arith.subf %1, %15 : vector<32x48xf32>
    %cst_8 = arith.constant 9.99999974E-6 : f32
    %17 = vector.broadcast %cst_8 : f32 to vector<32x1xf32>
    %18 = arith.addf %14, %17 : vector<32x1xf32>
    %19 = math.rsqrt %18 : vector<32x1xf32>
    %20 = vector.broadcast %19 : vector<32x1xf32> to vector<32x48xf32>
    %21 = arith.mulf %16, %20 : vector<32x48xf32>
    %22 = vector.broadcast %2 : vector<1x48xf32> to vector<32x48xf32>
    %23 = arith.mulf %21, %22 : vector<32x48xf32>
    %24 = vector.broadcast %3 : vector<1x48xf32> to vector<32x48xf32>
    %25 = arith.addf %23, %24 : vector<32x48xf32>
    %26 = arith.truncf %25 : vector<32x48xf32> to vector<32x48xbf16>
    %c0_9 = arith.constant 0 : index
    %c0_10 = arith.constant 0 : index
    %27 = vector.load %arg4[%c0_9, %c0_10] : memref<48x64xbf16, #tpu.memory_space<vmem>>, vector<48x64xbf16>
    %cst_11 = arith.constant dense<0.000000e+00> : vector<32x64xf32>
    %28 = tpu.matmul %26, %27, %cst_11 {dimension_numbers = #tpu.dot_dimension_numbers<[1], [0], [0], [1], [0, 0, 1, 1], [], []>} : vector<32x48xbf16>, vector<48x64xbf16>, vector<32x64xf32> -> vector<32x64xf32>
    %29 = arith.truncf %28 : vector<32x64xf32> to vector<32x64xbf16>
    %c0_12 = arith.constant 0 : index
    %c0_13 = arith.constant 0 : index
    %30 = vector.load %arg6[%c0_12, %c0_13] : memref<32x64xbf16, #tpu.memory_space<vmem>>, vector<32x64xbf16>
    tpu.vector_store %arg6[%c0_12, %c0_13], %29 {strides = array<i32>} : memref<32x64xbf16, #tpu.memory_space<vmem>>, vector<32x64xbf16>,
    %c0_14 = arith.constant 0 : index
    %c0_15 = arith.constant 0 : index
    %31 = vector.load %arg5[%c0_14, %c0_15] : memref<48x128xbf16, #tpu.memory_space<vmem>>, vector<48x128xbf16>
    %cst_16 = arith.constant dense<0.000000e+00> : vector<32x128xf32>
    %32 = tpu.matmul %0, %31, %cst_16 {dimension_numbers = #tpu.dot_dimension_numbers<[1], [0], [0], [1], [0, 0, 1, 1], [], []>} : vector<32x48xbf16>, vector<48x128xbf16>, vector<32x128xf32> -> vector<32x128xf32>
    %33 = arith.truncf %32 : vector<32x128xf32> to vector<32x128xbf16>
    %c0_17 = arith.constant 0 : index
    %c0_18 = arith.constant 0 : index
    %34 = vector.load %arg7[%c0_17, %c0_18] : memref<32x128xbf16, #tpu.memory_space<vmem>>, vector<32x128xbf16>
    tpu.vector_store %arg7[%c0_17, %c0_18], %33 {strides = array<i32>} : memref<32x128xbf16, #tpu.memory_space<vmem>>, vector<32x128xbf16>,
    return
  }
  func.func @transform_0(%arg0: i32) -> (i32, i32) {
    %c0_i32 = arith.constant 0 : i32
    %c0_i32_0 = arith.constant 0 : i32
    return %arg0, %c0_i32 : i32, i32
  }
  func.func @transform_1(%arg0: i32) -> (i32, i32) {
    %c0_i32 = arith.constant 0 : i32
    %c0_i32_0 = arith.constant 0 : i32
    %c0_i32_1 = arith.constant 0 : i32
    return %c0_i32, %c0_i32_0 : i32, i32
  }
  func.func @transform_2(%arg0: i32) -> (i32, i32) {
    %c0_i32 = arith.constant 0 : i32
    %c0_i32_0 = arith.constant 0 : i32
    %c0_i32_1 = arith.constant 0 : i32
    return %c0_i32, %c0_i32_0 : i32, i32
  }
  func.func @transform_3(%arg0: i32) -> (i32, i32) {
    %c0_i32 = arith.constant 0 : i32
    %c0_i32_0 = arith.constant 0 : i32
    %c0_i32_1 = arith.constant 0 : i32
    return %c0_i32, %c0_i32_0 : i32, i32
  }
  func.func @transform_4(%arg0: i32) -> (i32, i32) {
    %c0_i32 = arith.constant 0 : i32
    %c0_i32_0 = arith.constant 0 : i32
    %c0_i32_1 = arith.constant 0 : i32
    return %c0_i32, %c0_i32_0 : i32, i32
  }
  func.func @transform_5(%arg0: i32) -> (i32, i32) {
    %c0_i32 = arith.constant 0 : i32
    %c0_i32_0 = arith.constant 0 : i32
    return %arg0, %c0_i32 : i32, i32
  }
  func.func @transform_6(%arg0: i32) -> (i32, i32) {
    %c0_i32 = arith.constant 0 : i32
    %c0_i32_0 = arith.constant 0 : i32
    return %arg0, %c0_i32 : i32, i32
  }
}

module attributes {stable_mosaic.version = 11 : i64} {
  func.func @_flash_attn_kernel(%arg0: i32, %arg1: i32, %arg2: i32, %arg3: memref<1x16x64xbf16, #tpu.memory_space<vmem>>, %arg4: memref<1x16x128xbf16, #tpu.memory_space<vmem>>, %arg5: memref<1x128x16xbf16, #tpu.memory_space<vmem>>, %arg6: memref<4x16x128xbf16, #tpu.memory_space<vmem>>, %arg7: memref<1x16x64xbf16, #tpu.memory_space<vmem>>, %arg8: memref<4x16x1xf32, #tpu.memory_space<vmem>>, %arg9: memref<4x16x1xf32, #tpu.memory_space<vmem>>, %arg10: memref<4x16x16xf32, #tpu.memory_space<vmem>>) attributes {dimension_semantics = [#tpu.dimension_semantics<parallel>, #tpu.dimension_semantics<parallel>, #tpu.dimension_semantics<arbitrary>], iteration_bounds = array<i64: 2, 1, 1>, scalar_prefetch = 0 : i64, scratch_operands = 3 : i64, tpu.core_type = #tpu.core_type<tc>, window_params = [{transform_indices = @transform_0, window_bounds = array<i64: 1, 16, 64>}, {transform_indices = @transform_1, window_bounds = array<i64: 1, 16, 128>}, {transform_indices = @transform_2, window_bounds = array<i64: 1, 128, 16>}, {transform_indices = @transform_3, window_bounds = array<i64: 4, 16, 128>}, {transform_indices = @transform_4, window_bounds = array<i64: 1, 16, 64>}]} {
    %c0_i32 = arith.constant 0 : i32
    %0 = arith.cmpi eq, %arg2, %c0_i32 : i32
    %1 = arith.extui %0 : i1 to i32
    %c0_i32_0 = arith.constant 0 : i32
    %2 = arith.cmpi ne, %1, %c0_i32_0 : i32
    scf.if %2 {
      %cst_107 = arith.constant -1.000000e+30 : f32
      %164 = vector.broadcast %cst_107 : f32 to vector<4x16x1xf32>
      %c0_108 = arith.constant 0 : index
      %c0_109 = arith.constant 0 : index
      %c0_110 = arith.constant 0 : index
      %165 = vector.load %arg8[%c0_108, %c0_109, %c0_110] : memref<4x16x1xf32, #tpu.memory_space<vmem>>, vector<4x16x1xf32>
      tpu.vector_store %arg8[%c0_108, %c0_109, %c0_110], %164 {strides = array<i32>} : memref<4x16x1xf32, #tpu.memory_space<vmem>>, vector<4x16x1xf32>,
      %cst_111 = arith.constant 0.000000e+00 : f32
      %166 = vector.broadcast %cst_111 : f32 to vector<4x16x1xf32>
      %c0_112 = arith.constant 0 : index
      %c0_113 = arith.constant 0 : index
      %c0_114 = arith.constant 0 : index
      %167 = vector.load %arg9[%c0_112, %c0_113, %c0_114] : memref<4x16x1xf32, #tpu.memory_space<vmem>>, vector<4x16x1xf32>
      tpu.vector_store %arg9[%c0_112, %c0_113, %c0_114], %166 {strides = array<i32>} : memref<4x16x1xf32, #tpu.memory_space<vmem>>, vector<4x16x1xf32>,
      %cst_115 = arith.constant 0.000000e+00 : f32
      %168 = vector.broadcast %cst_115 : f32 to vector<4x16x16xf32>
      %c0_116 = arith.constant 0 : index
      %c0_117 = arith.constant 0 : index
      %c0_118 = arith.constant 0 : index
      %169 = vector.load %arg10[%c0_116, %c0_117, %c0_118] : memref<4x16x16xf32, #tpu.memory_space<vmem>>, vector<4x16x16xf32>
      tpu.vector_store %arg10[%c0_116, %c0_117, %c0_118], %168 {strides = array<i32>} : memref<4x16x16xf32, #tpu.memory_space<vmem>>, vector<4x16x16xf32>,
    } else {
    }
    %c0 = arith.constant 0 : index
    %c0_1 = arith.constant 0 : index
    %c0_2 = arith.constant 0 : index
    %3 = vector.load %arg3[%c0, %c0_1, %c0_2] : memref<1x16x64xbf16, #tpu.memory_space<vmem>>, vector<1x16x64xbf16>
    %4 = vector.shape_cast %3 : vector<1x16x64xbf16> to vector<16x64xbf16>
    %c0_3 = arith.constant 0 : index
    %c0_4 = arith.constant 0 : index
    %c0_5 = arith.constant 0 : index
    %5 = vector.load %arg4[%c0_3, %c0_4, %c0_5] : memref<1x16x128xbf16, #tpu.memory_space<vmem>>, vector<1x16x128xbf16>
    %6 = vector.shape_cast %5 : vector<1x16x128xbf16> to vector<16x128xbf16>
    %c0_6 = arith.constant 0 : index
    %c0_7 = arith.constant 0 : index
    %c0_8 = arith.constant 0 : index
    %7 = vector.load %arg5[%c0_6, %c0_7, %c0_8] : memref<1x128x16xbf16, #tpu.memory_space<vmem>>, vector<1x128x16xbf16>
    %8 = vector.shape_cast %7 : vector<1x128x16xbf16> to vector<128x16xbf16>
    %9 = vector.extract_strided_slice %4 {offsets = [0, 0], sizes = [16, 16], strides = [1, 1]} : vector<16x64xbf16> to vector<16x16xbf16>
    %cst = arith.constant dense<0.000000e+00> : vector<16x128xf32>
    %10 = tpu.matmul %9, %6, %cst {dimension_numbers = #tpu.dot_dimension_numbers<[1], [0], [0], [1], [0, 0, 1, 1], [], []>} : vector<16x16xbf16>, vector<16x128xbf16>, vector<16x128xf32> -> vector<16x128xf32>
    %c0_9 = arith.constant 0 : index
    %c0_10 = arith.constant 0 : index
    %c0_11 = arith.constant 0 : index
    %11 = vector.load %arg6[%c0_9, %c0_10, %c0_11] : memref<4x16x128xbf16, #tpu.memory_space<vmem>>, vector<1x16x128xbf16>
    %12 = vector.shape_cast %11 : vector<1x16x128xbf16> to vector<16x128xbf16>
    %13 = arith.extf %12 : vector<16x128xbf16> to vector<16x128xf32>
    %14 = arith.addf %10, %13 : vector<16x128xf32>
    %c0_12 = arith.constant 0 : index
    %c0_13 = arith.constant 0 : index
    %c0_14 = arith.constant 0 : index
    %15 = vector.load %arg8[%c0_12, %c0_13, %c0_14] : memref<4x16x1xf32, #tpu.memory_space<vmem>>, vector<1x16x1xf32>
    %16 = vector.shape_cast %15 : vector<1x16x1xf32> to vector<16x1xf32>
    %cst_15 = arith.constant dense<0xFF800000> : vector<16xf32>
    %17 = vector.multi_reduction <maximumf>, %14, %cst_15 [1] : vector<16x128xf32> to vector<16xf32>
    %18 = vector.shape_cast %17 : vector<16xf32> to vector<16x1xf32>
    %19 = arith.maximumf %16, %18 : vector<16x1xf32>
    %20 = arith.subf %16, %19 : vector<16x1xf32>
    %21 = math.exp %20 : vector<16x1xf32>
    %22 = vector.broadcast %19 : vector<16x1xf32> to vector<16x128xf32>
    %23 = arith.subf %14, %22 : vector<16x128xf32>
    %24 = math.exp %23 : vector<16x128xf32>
    %c0_16 = arith.constant 0 : index
    %c0_17 = arith.constant 0 : index
    %c0_18 = arith.constant 0 : index
    %25 = vector.load %arg9[%c0_16, %c0_17, %c0_18] : memref<4x16x1xf32, #tpu.memory_space<vmem>>, vector<1x16x1xf32>
    %26 = vector.shape_cast %25 : vector<1x16x1xf32> to vector<16x1xf32>
    %27 = arith.mulf %21, %26 : vector<16x1xf32>
    %cst_19 = arith.constant dense<0.000000e+00> : vector<16xf32>
    %28 = vector.multi_reduction <add>, %24, %cst_19 [1] : vector<16x128xf32> to vector<16xf32>
    %29 = vector.shape_cast %28 : vector<16xf32> to vector<16x1xf32>
    %30 = arith.addf %27, %29 : vector<16x1xf32>
    %c0_20 = arith.constant 0 : index
    %c0_21 = arith.constant 0 : index
    %c0_22 = arith.constant 0 : index
    %31 = vector.load %arg9[%c0_20, %c0_21, %c0_22] : memref<4x16x1xf32, #tpu.memory_space<vmem>>, vector<1x16x1xf32>
    %32 = vector.shape_cast %31 : vector<1x16x1xf32> to vector<16x1xf32>
    %33 = vector.shape_cast %30 : vector<16x1xf32> to vector<1x16x1xf32>
    tpu.vector_store %arg9[%c0_20, %c0_21, %c0_22], %33 {strides = array<i32>} : memref<4x16x1xf32, #tpu.memory_space<vmem>>, vector<1x16x1xf32>,
    %c0_23 = arith.constant 0 : index
    %c0_24 = arith.constant 0 : index
    %c0_25 = arith.constant 0 : index
    %34 = vector.load %arg10[%c0_23, %c0_24, %c0_25] : memref<4x16x16xf32, #tpu.memory_space<vmem>>, vector<1x16x16xf32>
    %35 = vector.shape_cast %34 : vector<1x16x16xf32> to vector<16x16xf32>
    %36 = vector.broadcast %21 : vector<16x1xf32> to vector<16x16xf32>
    %37 = arith.mulf %36, %35 : vector<16x16xf32>
    %38 = arith.truncf %24 : vector<16x128xf32> to vector<16x128xbf16>
    %cst_26 = arith.constant dense<0.000000e+00> : vector<16x16xf32>
    %39 = tpu.matmul %38, %8, %cst_26 {dimension_numbers = #tpu.dot_dimension_numbers<[1], [0], [0], [1], [0, 0, 1, 1], [], []>} : vector<16x128xbf16>, vector<128x16xbf16>, vector<16x16xf32> -> vector<16x16xf32>
    %40 = arith.addf %37, %39 : vector<16x16xf32>
    %c0_27 = arith.constant 0 : index
    %c0_28 = arith.constant 0 : index
    %c0_29 = arith.constant 0 : index
    %41 = vector.load %arg10[%c0_27, %c0_28, %c0_29] : memref<4x16x16xf32, #tpu.memory_space<vmem>>, vector<1x16x16xf32>
    %42 = vector.shape_cast %41 : vector<1x16x16xf32> to vector<16x16xf32>
    %43 = vector.shape_cast %40 : vector<16x16xf32> to vector<1x16x16xf32>
    tpu.vector_store %arg10[%c0_27, %c0_28, %c0_29], %43 {strides = array<i32>} : memref<4x16x16xf32, #tpu.memory_space<vmem>>, vector<1x16x16xf32>,
    %c0_30 = arith.constant 0 : index
    %c0_31 = arith.constant 0 : index
    %c0_32 = arith.constant 0 : index
    %44 = vector.load %arg8[%c0_30, %c0_31, %c0_32] : memref<4x16x1xf32, #tpu.memory_space<vmem>>, vector<1x16x1xf32>
    %45 = vector.shape_cast %44 : vector<1x16x1xf32> to vector<16x1xf32>
    %46 = vector.shape_cast %19 : vector<16x1xf32> to vector<1x16x1xf32>
    tpu.vector_store %arg8[%c0_30, %c0_31, %c0_32], %46 {strides = array<i32>} : memref<4x16x1xf32, #tpu.memory_space<vmem>>, vector<1x16x1xf32>,
    %47 = vector.extract_strided_slice %4 {offsets = [0, 16], sizes = [16, 16], strides = [1, 1]} : vector<16x64xbf16> to vector<16x16xbf16>
    %cst_33 = arith.constant dense<0.000000e+00> : vector<16x128xf32>
    %48 = tpu.matmul %47, %6, %cst_33 {dimension_numbers = #tpu.dot_dimension_numbers<[1], [0], [0], [1], [0, 0, 1, 1], [], []>} : vector<16x16xbf16>, vector<16x128xbf16>, vector<16x128xf32> -> vector<16x128xf32>
    %c1 = arith.constant 1 : index
    %c0_34 = arith.constant 0 : index
    %c0_35 = arith.constant 0 : index
    %49 = vector.load %arg6[%c1, %c0_34, %c0_35] : memref<4x16x128xbf16, #tpu.memory_space<vmem>>, vector<1x16x128xbf16>
    %50 = vector.shape_cast %49 : vector<1x16x128xbf16> to vector<16x128xbf16>
    %51 = arith.extf %50 : vector<16x128xbf16> to vector<16x128xf32>
    %52 = arith.addf %48, %51 : vector<16x128xf32>
    %c1_36 = arith.constant 1 : index
    %c0_37 = arith.constant 0 : index
    %c0_38 = arith.constant 0 : index
    %53 = vector.load %arg8[%c1_36, %c0_37, %c0_38] : memref<4x16x1xf32, #tpu.memory_space<vmem>>, vector<1x16x1xf32>
    %54 = vector.shape_cast %53 : vector<1x16x1xf32> to vector<16x1xf32>
    %cst_39 = arith.constant dense<0xFF800000> : vector<16xf32>
    %55 = vector.multi_reduction <maximumf>, %52, %cst_39 [1] : vector<16x128xf32> to vector<16xf32>
    %56 = vector.shape_cast %55 : vector<16xf32> to vector<16x1xf32>
    %57 = arith.maximumf %54, %56 : vector<16x1xf32>
    %58 = arith.subf %54, %57 : vector<16x1xf32>
    %59 = math.exp %58 : vector<16x1xf32>
    %60 = vector.broadcast %57 : vector<16x1xf32> to vector<16x128xf32>
    %61 = arith.subf %52, %60 : vector<16x128xf32>
    %62 = math.exp %61 : vector<16x128xf32>
    %c1_40 = arith.constant 1 : index
    %c0_41 = arith.constant 0 : index
    %c0_42 = arith.constant 0 : index
    %63 = vector.load %arg9[%c1_40, %c0_41, %c0_42] : memref<4x16x1xf32, #tpu.memory_space<vmem>>, vector<1x16x1xf32>
    %64 = vector.shape_cast %63 : vector<1x16x1xf32> to vector<16x1xf32>
    %65 = arith.mulf %59, %64 : vector<16x1xf32>
    %cst_43 = arith.constant dense<0.000000e+00> : vector<16xf32>
    %66 = vector.multi_reduction <add>, %62, %cst_43 [1] : vector<16x128xf32> to vector<16xf32>
    %67 = vector.shape_cast %66 : vector<16xf32> to vector<16x1xf32>
    %68 = arith.addf %65, %67 : vector<16x1xf32>
    %c1_44 = arith.constant 1 : index
    %c0_45 = arith.constant 0 : index
    %c0_46 = arith.constant 0 : index
    %69 = vector.load %arg9[%c1_44, %c0_45, %c0_46] : memref<4x16x1xf32, #tpu.memory_space<vmem>>, vector<1x16x1xf32>
    %70 = vector.shape_cast %69 : vector<1x16x1xf32> to vector<16x1xf32>
    %71 = vector.shape_cast %68 : vector<16x1xf32> to vector<1x16x1xf32>
    tpu.vector_store %arg9[%c1_44, %c0_45, %c0_46], %71 {strides = array<i32>} : memref<4x16x1xf32, #tpu.memory_space<vmem>>, vector<1x16x1xf32>,
    %c1_47 = arith.constant 1 : index
    %c0_48 = arith.constant 0 : index
    %c0_49 = arith.constant 0 : index
    %72 = vector.load %arg10[%c1_47, %c0_48, %c0_49] : memref<4x16x16xf32, #tpu.memory_space<vmem>>, vector<1x16x16xf32>
    %73 = vector.shape_cast %72 : vector<1x16x16xf32> to vector<16x16xf32>
    %74 = vector.broadcast %59 : vector<16x1xf32> to vector<16x16xf32>
    %75 = arith.mulf %74, %73 : vector<16x16xf32>
    %76 = arith.truncf %62 : vector<16x128xf32> to vector<16x128xbf16>
    %cst_50 = arith.constant dense<0.000000e+00> : vector<16x16xf32>
    %77 = tpu.matmul %76, %8, %cst_50 {dimension_numbers = #tpu.dot_dimension_numbers<[1], [0], [0], [1], [0, 0, 1, 1], [], []>} : vector<16x128xbf16>, vector<128x16xbf16>, vector<16x16xf32> -> vector<16x16xf32>
    %78 = arith.addf %75, %77 : vector<16x16xf32>
    %c1_51 = arith.constant 1 : index
    %c0_52 = arith.constant 0 : index
    %c0_53 = arith.constant 0 : index
    %79 = vector.load %arg10[%c1_51, %c0_52, %c0_53] : memref<4x16x16xf32, #tpu.memory_space<vmem>>, vector<1x16x16xf32>
    %80 = vector.shape_cast %79 : vector<1x16x16xf32> to vector<16x16xf32>
    %81 = vector.shape_cast %78 : vector<16x16xf32> to vector<1x16x16xf32>
    tpu.vector_store %arg10[%c1_51, %c0_52, %c0_53], %81 {strides = array<i32>} : memref<4x16x16xf32, #tpu.memory_space<vmem>>, vector<1x16x16xf32>,
    %c1_54 = arith.constant 1 : index
    %c0_55 = arith.constant 0 : index
    %c0_56 = arith.constant 0 : index
    %82 = vector.load %arg8[%c1_54, %c0_55, %c0_56] : memref<4x16x1xf32, #tpu.memory_space<vmem>>, vector<1x16x1xf32>
    %83 = vector.shape_cast %82 : vector<1x16x1xf32> to vector<16x1xf32>
    %84 = vector.shape_cast %57 : vector<16x1xf32> to vector<1x16x1xf32>
    tpu.vector_store %arg8[%c1_54, %c0_55, %c0_56], %84 {strides = array<i32>} : memref<4x16x1xf32, #tpu.memory_space<vmem>>, vector<1x16x1xf32>,
    %85 = vector.extract_strided_slice %4 {offsets = [0, 32], sizes = [16, 16], strides = [1, 1]} : vector<16x64xbf16> to vector<16x16xbf16>
    %cst_57 = arith.constant dense<0.000000e+00> : vector<16x128xf32>
    %86 = tpu.matmul %85, %6, %cst_57 {dimension_numbers = #tpu.dot_dimension_numbers<[1], [0], [0], [1], [0, 0, 1, 1], [], []>} : vector<16x16xbf16>, vector<16x128xbf16>, vector<16x128xf32> -> vector<16x128xf32>
    %c2 = arith.constant 2 : index
    %c0_58 = arith.constant 0 : index
    %c0_59 = arith.constant 0 : index
    %87 = vector.load %arg6[%c2, %c0_58, %c0_59] : memref<4x16x128xbf16, #tpu.memory_space<vmem>>, vector<1x16x128xbf16>
    %88 = vector.shape_cast %87 : vector<1x16x128xbf16> to vector<16x128xbf16>
    %89 = arith.extf %88 : vector<16x128xbf16> to vector<16x128xf32>
    %90 = arith.addf %86, %89 : vector<16x128xf32>
    %c2_60 = arith.constant 2 : index
    %c0_61 = arith.constant 0 : index
    %c0_62 = arith.constant 0 : index
    %91 = vector.load %arg8[%c2_60, %c0_61, %c0_62] : memref<4x16x1xf32, #tpu.memory_space<vmem>>, vector<1x16x1xf32>
    %92 = vector.shape_cast %91 : vector<1x16x1xf32> to vector<16x1xf32>
    %cst_63 = arith.constant dense<0xFF800000> : vector<16xf32>
    %93 = vector.multi_reduction <maximumf>, %90, %cst_63 [1] : vector<16x128xf32> to vector<16xf32>
    %94 = vector.shape_cast %93 : vector<16xf32> to vector<16x1xf32>
    %95 = arith.maximumf %92, %94 : vector<16x1xf32>
    %96 = arith.subf %92, %95 : vector<16x1xf32>
    %97 = math.exp %96 : vector<16x1xf32>
    %98 = vector.broadcast %95 : vector<16x1xf32> to vector<16x128xf32>
    %99 = arith.subf %90, %98 : vector<16x128xf32>
    %100 = math.exp %99 : vector<16x128xf32>
    %c2_64 = arith.constant 2 : index
    %c0_65 = arith.constant 0 : index
    %c0_66 = arith.constant 0 : index
    %101 = vector.load %arg9[%c2_64, %c0_65, %c0_66] : memref<4x16x1xf32, #tpu.memory_space<vmem>>, vector<1x16x1xf32>
    %102 = vector.shape_cast %101 : vector<1x16x1xf32> to vector<16x1xf32>
    %103 = arith.mulf %97, %102 : vector<16x1xf32>
    %cst_67 = arith.constant dense<0.000000e+00> : vector<16xf32>
    %104 = vector.multi_reduction <add>, %100, %cst_67 [1] : vector<16x128xf32> to vector<16xf32>
    %105 = vector.shape_cast %104 : vector<16xf32> to vector<16x1xf32>
    %106 = arith.addf %103, %105 : vector<16x1xf32>
    %c2_68 = arith.constant 2 : index
    %c0_69 = arith.constant 0 : index
    %c0_70 = arith.constant 0 : index
    %107 = vector.load %arg9[%c2_68, %c0_69, %c0_70] : memref<4x16x1xf32, #tpu.memory_space<vmem>>, vector<1x16x1xf32>
    %108 = vector.shape_cast %107 : vector<1x16x1xf32> to vector<16x1xf32>
    %109 = vector.shape_cast %106 : vector<16x1xf32> to vector<1x16x1xf32>
    tpu.vector_store %arg9[%c2_68, %c0_69, %c0_70], %109 {strides = array<i32>} : memref<4x16x1xf32, #tpu.memory_space<vmem>>, vector<1x16x1xf32>,
    %c2_71 = arith.constant 2 : index
    %c0_72 = arith.constant 0 : index
    %c0_73 = arith.constant 0 : index
    %110 = vector.load %arg10[%c2_71, %c0_72, %c0_73] : memref<4x16x16xf32, #tpu.memory_space<vmem>>, vector<1x16x16xf32>
    %111 = vector.shape_cast %110 : vector<1x16x16xf32> to vector<16x16xf32>
    %112 = vector.broadcast %97 : vector<16x1xf32> to vector<16x16xf32>
    %113 = arith.mulf %112, %111 : vector<16x16xf32>
    %114 = arith.truncf %100 : vector<16x128xf32> to vector<16x128xbf16>
    %cst_74 = arith.constant dense<0.000000e+00> : vector<16x16xf32>
    %115 = tpu.matmul %114, %8, %cst_74 {dimension_numbers = #tpu.dot_dimension_numbers<[1], [0], [0], [1], [0, 0, 1, 1], [], []>} : vector<16x128xbf16>, vector<128x16xbf16>, vector<16x16xf32> -> vector<16x16xf32>
    %116 = arith.addf %113, %115 : vector<16x16xf32>
    %c2_75 = arith.constant 2 : index
    %c0_76 = arith.constant 0 : index
    %c0_77 = arith.constant 0 : index
    %117 = vector.load %arg10[%c2_75, %c0_76, %c0_77] : memref<4x16x16xf32, #tpu.memory_space<vmem>>, vector<1x16x16xf32>
    %118 = vector.shape_cast %117 : vector<1x16x16xf32> to vector<16x16xf32>
    %119 = vector.shape_cast %116 : vector<16x16xf32> to vector<1x16x16xf32>
    tpu.vector_store %arg10[%c2_75, %c0_76, %c0_77], %119 {strides = array<i32>} : memref<4x16x16xf32, #tpu.memory_space<vmem>>, vector<1x16x16xf32>,
    %c2_78 = arith.constant 2 : index
    %c0_79 = arith.constant 0 : index
    %c0_80 = arith.constant 0 : index
    %120 = vector.load %arg8[%c2_78, %c0_79, %c0_80] : memref<4x16x1xf32, #tpu.memory_space<vmem>>, vector<1x16x1xf32>
    %121 = vector.shape_cast %120 : vector<1x16x1xf32> to vector<16x1xf32>
    %122 = vector.shape_cast %95 : vector<16x1xf32> to vector<1x16x1xf32>
    tpu.vector_store %arg8[%c2_78, %c0_79, %c0_80], %122 {strides = array<i32>} : memref<4x16x1xf32, #tpu.memory_space<vmem>>, vector<1x16x1xf32>,
    %123 = vector.extract_strided_slice %4 {offsets = [0, 48], sizes = [16, 16], strides = [1, 1]} : vector<16x64xbf16> to vector<16x16xbf16>
    %cst_81 = arith.constant dense<0.000000e+00> : vector<16x128xf32>
    %124 = tpu.matmul %123, %6, %cst_81 {dimension_numbers = #tpu.dot_dimension_numbers<[1], [0], [0], [1], [0, 0, 1, 1], [], []>} : vector<16x16xbf16>, vector<16x128xbf16>, vector<16x128xf32> -> vector<16x128xf32>
    %c3 = arith.constant 3 : index
    %c0_82 = arith.constant 0 : index
    %c0_83 = arith.constant 0 : index
    %125 = vector.load %arg6[%c3, %c0_82, %c0_83] : memref<4x16x128xbf16, #tpu.memory_space<vmem>>, vector<1x16x128xbf16>
    %126 = vector.shape_cast %125 : vector<1x16x128xbf16> to vector<16x128xbf16>
    %127 = arith.extf %126 : vector<16x128xbf16> to vector<16x128xf32>
    %128 = arith.addf %124, %127 : vector<16x128xf32>
    %c3_84 = arith.constant 3 : index
    %c0_85 = arith.constant 0 : index
    %c0_86 = arith.constant 0 : index
    %129 = vector.load %arg8[%c3_84, %c0_85, %c0_86] : memref<4x16x1xf32, #tpu.memory_space<vmem>>, vector<1x16x1xf32>
    %130 = vector.shape_cast %129 : vector<1x16x1xf32> to vector<16x1xf32>
    %cst_87 = arith.constant dense<0xFF800000> : vector<16xf32>
    %131 = vector.multi_reduction <maximumf>, %128, %cst_87 [1] : vector<16x128xf32> to vector<16xf32>
    %132 = vector.shape_cast %131 : vector<16xf32> to vector<16x1xf32>
    %133 = arith.maximumf %130, %132 : vector<16x1xf32>
    %134 = arith.subf %130, %133 : vector<16x1xf32>
    %135 = math.exp %134 : vector<16x1xf32>
    %136 = vector.broadcast %133 : vector<16x1xf32> to vector<16x128xf32>
    %137 = arith.subf %128, %136 : vector<16x128xf32>
    %138 = math.exp %137 : vector<16x128xf32>
    %c3_88 = arith.constant 3 : index
    %c0_89 = arith.constant 0 : index
    %c0_90 = arith.constant 0 : index
    %139 = vector.load %arg9[%c3_88, %c0_89, %c0_90] : memref<4x16x1xf32, #tpu.memory_space<vmem>>, vector<1x16x1xf32>
    %140 = vector.shape_cast %139 : vector<1x16x1xf32> to vector<16x1xf32>
    %141 = arith.mulf %135, %140 : vector<16x1xf32>
    %cst_91 = arith.constant dense<0.000000e+00> : vector<16xf32>
    %142 = vector.multi_reduction <add>, %138, %cst_91 [1] : vector<16x128xf32> to vector<16xf32>
    %143 = vector.shape_cast %142 : vector<16xf32> to vector<16x1xf32>
    %144 = arith.addf %141, %143 : vector<16x1xf32>
    %c3_92 = arith.constant 3 : index
    %c0_93 = arith.constant 0 : index
    %c0_94 = arith.constant 0 : index
    %145 = vector.load %arg9[%c3_92, %c0_93, %c0_94] : memref<4x16x1xf32, #tpu.memory_space<vmem>>, vector<1x16x1xf32>
    %146 = vector.shape_cast %145 : vector<1x16x1xf32> to vector<16x1xf32>
    %147 = vector.shape_cast %144 : vector<16x1xf32> to vector<1x16x1xf32>
    tpu.vector_store %arg9[%c3_92, %c0_93, %c0_94], %147 {strides = array<i32>} : memref<4x16x1xf32, #tpu.memory_space<vmem>>, vector<1x16x1xf32>,
    %c3_95 = arith.constant 3 : index
    %c0_96 = arith.constant 0 : index
    %c0_97 = arith.constant 0 : index
    %148 = vector.load %arg10[%c3_95, %c0_96, %c0_97] : memref<4x16x16xf32, #tpu.memory_space<vmem>>, vector<1x16x16xf32>
    %149 = vector.shape_cast %148 : vector<1x16x16xf32> to vector<16x16xf32>
    %150 = vector.broadcast %135 : vector<16x1xf32> to vector<16x16xf32>
    %151 = arith.mulf %150, %149 : vector<16x16xf32>
    %152 = arith.truncf %138 : vector<16x128xf32> to vector<16x128xbf16>
    %cst_98 = arith.constant dense<0.000000e+00> : vector<16x16xf32>
    %153 = tpu.matmul %152, %8, %cst_98 {dimension_numbers = #tpu.dot_dimension_numbers<[1], [0], [0], [1], [0, 0, 1, 1], [], []>} : vector<16x128xbf16>, vector<128x16xbf16>, vector<16x16xf32> -> vector<16x16xf32>
    %154 = arith.addf %151, %153 : vector<16x16xf32>
    %c3_99 = arith.constant 3 : index
    %c0_100 = arith.constant 0 : index
    %c0_101 = arith.constant 0 : index
    %155 = vector.load %arg10[%c3_99, %c0_100, %c0_101] : memref<4x16x16xf32, #tpu.memory_space<vmem>>, vector<1x16x16xf32>
    %156 = vector.shape_cast %155 : vector<1x16x16xf32> to vector<16x16xf32>
    %157 = vector.shape_cast %154 : vector<16x16xf32> to vector<1x16x16xf32>
    tpu.vector_store %arg10[%c3_99, %c0_100, %c0_101], %157 {strides = array<i32>} : memref<4x16x16xf32, #tpu.memory_space<vmem>>, vector<1x16x16xf32>,
    %c3_102 = arith.constant 3 : index
    %c0_103 = arith.constant 0 : index
    %c0_104 = arith.constant 0 : index
    %158 = vector.load %arg8[%c3_102, %c0_103, %c0_104] : memref<4x16x1xf32, #tpu.memory_space<vmem>>, vector<1x16x1xf32>
    %159 = vector.shape_cast %158 : vector<1x16x1xf32> to vector<16x1xf32>
    %160 = vector.shape_cast %133 : vector<16x1xf32> to vector<1x16x1xf32>
    tpu.vector_store %arg8[%c3_102, %c0_103, %c0_104], %160 {strides = array<i32>} : memref<4x16x1xf32, #tpu.memory_space<vmem>>, vector<1x16x1xf32>,
    %c0_i32_105 = arith.constant 0 : i32
    %161 = arith.cmpi eq, %arg2, %c0_i32_105 : i32
    %162 = arith.extui %161 : i1 to i32
    %c0_i32_106 = arith.constant 0 : i32
    %163 = arith.cmpi ne, %162, %c0_i32_106 : i32
    scf.if %163 {
      %c0_107 = arith.constant 0 : index
      %c0_108 = arith.constant 0 : index
      %c0_109 = arith.constant 0 : index
      %164 = vector.load %arg9[%c0_107, %c0_108, %c0_109] : memref<4x16x1xf32, #tpu.memory_space<vmem>>, vector<1x16x1xf32>
      %165 = vector.shape_cast %164 : vector<1x16x1xf32> to vector<16x1xf32>
      %cst_110 = arith.constant 1.000000e-30 : f32
      %166 = vector.broadcast %cst_110 : f32 to vector<16x1xf32>
      %167 = arith.maximumf %165, %166 : vector<16x1xf32>
      %168 = tpu.reciprocal %167 {approx = true} : vector<16x1xf32> -> vector<16x1xf32>
      %c0_111 = arith.constant 0 : index
      %c0_112 = arith.constant 0 : index
      %c0_113 = arith.constant 0 : index
      %169 = vector.load %arg10[%c0_111, %c0_112, %c0_113] : memref<4x16x16xf32, #tpu.memory_space<vmem>>, vector<1x16x16xf32>
      %170 = vector.shape_cast %169 : vector<1x16x16xf32> to vector<16x16xf32>
      %171 = vector.broadcast %168 : vector<16x1xf32> to vector<16x16xf32>
      %172 = arith.mulf %170, %171 : vector<16x16xf32>
      %173 = arith.truncf %172 : vector<16x16xf32> to vector<16x16xbf16>
      %c0_114 = arith.constant 0 : index
      %c0_115 = arith.constant 0 : index
      %c0_116 = arith.constant 0 : index
      %174 = vector.load %arg7[%c0_114, %c0_115, %c0_116] : memref<1x16x64xbf16, #tpu.memory_space<vmem>>, vector<1x16x16xbf16>
      %175 = vector.shape_cast %174 : vector<1x16x16xbf16> to vector<16x16xbf16>
      %176 = vector.shape_cast %173 : vector<16x16xbf16> to vector<1x16x16xbf16>
      tpu.vector_store %arg7[%c0_114, %c0_115, %c0_116], %176 {strides = array<i32>} : memref<1x16x64xbf16, #tpu.memory_space<vmem>>, vector<1x16x16xbf16>,
      %c1_117 = arith.constant 1 : index
      %c0_118 = arith.constant 0 : index
      %c0_119 = arith.constant 0 : index
      %177 = vector.load %arg9[%c1_117, %c0_118, %c0_119] : memref<4x16x1xf32, #tpu.memory_space<vmem>>, vector<1x16x1xf32>
      %178 = vector.shape_cast %177 : vector<1x16x1xf32> to vector<16x1xf32>
      %cst_120 = arith.constant 1.000000e-30 : f32
      %179 = vector.broadcast %cst_120 : f32 to vector<16x1xf32>
      %180 = arith.maximumf %178, %179 : vector<16x1xf32>
      %181 = tpu.reciprocal %180 {approx = true} : vector<16x1xf32> -> vector<16x1xf32>
      %c1_121 = arith.constant 1 : index
      %c0_122 = arith.constant 0 : index
      %c0_123 = arith.constant 0 : index
      %182 = vector.load %arg10[%c1_121, %c0_122, %c0_123] : memref<4x16x16xf32, #tpu.memory_space<vmem>>, vector<1x16x16xf32>
      %183 = vector.shape_cast %182 : vector<1x16x16xf32> to vector<16x16xf32>
      %184 = vector.broadcast %181 : vector<16x1xf32> to vector<16x16xf32>
      %185 = arith.mulf %183, %184 : vector<16x16xf32>
      %186 = arith.truncf %185 : vector<16x16xf32> to vector<16x16xbf16>
      %c0_124 = arith.constant 0 : index
      %c0_125 = arith.constant 0 : index
      %c16 = arith.constant 16 : index
      %187 = vector.load %arg7[%c0_124, %c0_125, %c16] : memref<1x16x64xbf16, #tpu.memory_space<vmem>>, vector<1x16x16xbf16>
      %188 = vector.shape_cast %187 : vector<1x16x16xbf16> to vector<16x16xbf16>
      %189 = vector.shape_cast %186 : vector<16x16xbf16> to vector<1x16x16xbf16>
      tpu.vector_store %arg7[%c0_124, %c0_125, %c16], %189 {strides = array<i32>} : memref<1x16x64xbf16, #tpu.memory_space<vmem>>, vector<1x16x16xbf16>,
      %c2_126 = arith.constant 2 : index
      %c0_127 = arith.constant 0 : index
      %c0_128 = arith.constant 0 : index
      %190 = vector.load %arg9[%c2_126, %c0_127, %c0_128] : memref<4x16x1xf32, #tpu.memory_space<vmem>>, vector<1x16x1xf32>
      %191 = vector.shape_cast %190 : vector<1x16x1xf32> to vector<16x1xf32>
      %cst_129 = arith.constant 1.000000e-30 : f32
      %192 = vector.broadcast %cst_129 : f32 to vector<16x1xf32>
      %193 = arith.maximumf %191, %192 : vector<16x1xf32>
      %194 = tpu.reciprocal %193 {approx = true} : vector<16x1xf32> -> vector<16x1xf32>
      %c2_130 = arith.constant 2 : index
      %c0_131 = arith.constant 0 : index
      %c0_132 = arith.constant 0 : index
      %195 = vector.load %arg10[%c2_130, %c0_131, %c0_132] : memref<4x16x16xf32, #tpu.memory_space<vmem>>, vector<1x16x16xf32>
      %196 = vector.shape_cast %195 : vector<1x16x16xf32> to vector<16x16xf32>
      %197 = vector.broadcast %194 : vector<16x1xf32> to vector<16x16xf32>
      %198 = arith.mulf %196, %197 : vector<16x16xf32>
      %199 = arith.truncf %198 : vector<16x16xf32> to vector<16x16xbf16>
      %c0_133 = arith.constant 0 : index
      %c0_134 = arith.constant 0 : index
      %c32 = arith.constant 32 : index
      %200 = vector.load %arg7[%c0_133, %c0_134, %c32] : memref<1x16x64xbf16, #tpu.memory_space<vmem>>, vector<1x16x16xbf16>
      %201 = vector.shape_cast %200 : vector<1x16x16xbf16> to vector<16x16xbf16>
      %202 = vector.shape_cast %199 : vector<16x16xbf16> to vector<1x16x16xbf16>
      tpu.vector_store %arg7[%c0_133, %c0_134, %c32], %202 {strides = array<i32>} : memref<1x16x64xbf16, #tpu.memory_space<vmem>>, vector<1x16x16xbf16>,
      %c3_135 = arith.constant 3 : index
      %c0_136 = arith.constant 0 : index
      %c0_137 = arith.constant 0 : index
      %203 = vector.load %arg9[%c3_135, %c0_136, %c0_137] : memref<4x16x1xf32, #tpu.memory_space<vmem>>, vector<1x16x1xf32>
      %204 = vector.shape_cast %203 : vector<1x16x1xf32> to vector<16x1xf32>
      %cst_138 = arith.constant 1.000000e-30 : f32
      %205 = vector.broadcast %cst_138 : f32 to vector<16x1xf32>
      %206 = arith.maximumf %204, %205 : vector<16x1xf32>
      %207 = tpu.reciprocal %206 {approx = true} : vector<16x1xf32> -> vector<16x1xf32>
      %c3_139 = arith.constant 3 : index
      %c0_140 = arith.constant 0 : index
      %c0_141 = arith.constant 0 : index
      %208 = vector.load %arg10[%c3_139, %c0_140, %c0_141] : memref<4x16x16xf32, #tpu.memory_space<vmem>>, vector<1x16x16xf32>
      %209 = vector.shape_cast %208 : vector<1x16x16xf32> to vector<16x16xf32>
      %210 = vector.broadcast %207 : vector<16x1xf32> to vector<16x16xf32>
      %211 = arith.mulf %209, %210 : vector<16x16xf32>
      %212 = arith.truncf %211 : vector<16x16xf32> to vector<16x16xbf16>
      %c0_142 = arith.constant 0 : index
      %c0_143 = arith.constant 0 : index
      %c48 = arith.constant 48 : index
      %213 = vector.load %arg7[%c0_142, %c0_143, %c48] : memref<1x16x64xbf16, #tpu.memory_space<vmem>>, vector<1x16x16xbf16>
      %214 = vector.shape_cast %213 : vector<1x16x16xbf16> to vector<16x16xbf16>
      %215 = vector.shape_cast %212 : vector<16x16xbf16> to vector<1x16x16xbf16>
      tpu.vector_store %arg7[%c0_142, %c0_143, %c48], %215 {strides = array<i32>} : memref<1x16x64xbf16, #tpu.memory_space<vmem>>, vector<1x16x16xbf16>,
    } else {
    }
    return
  }
  func.func @transform_0(%arg0: i32, %arg1: i32, %arg2: i32) -> (i32, i32, i32) {
    %c0_i32 = arith.constant 0 : i32
    %c0_i32_0 = arith.constant 0 : i32
    return %arg0, %arg1, %c0_i32 : i32, i32, i32
  }
  func.func @transform_1(%arg0: i32, %arg1: i32, %arg2: i32) -> (i32, i32, i32) {
    %c0_i32 = arith.constant 0 : i32
    %c0_i32_0 = arith.constant 0 : i32
    return %arg0, %c0_i32, %arg2 : i32, i32, i32
  }
  func.func @transform_2(%arg0: i32, %arg1: i32, %arg2: i32) -> (i32, i32, i32) {
    %c0_i32 = arith.constant 0 : i32
    %c0_i32_0 = arith.constant 0 : i32
    return %arg0, %arg2, %c0_i32 : i32, i32, i32
  }
  func.func @transform_3(%arg0: i32, %arg1: i32, %arg2: i32) -> (i32, i32, i32) {
    %c0_i32 = arith.constant 0 : i32
    %c0_i32_0 = arith.constant 0 : i32
    return %c0_i32, %arg1, %arg2 : i32, i32, i32
  }
  func.func @transform_4(%arg0: i32, %arg1: i32, %arg2: i32) -> (i32, i32, i32) {
    %c0_i32 = arith.constant 0 : i32
    %c0_i32_0 = arith.constant 0 : i32
    return %arg0, %arg1, %c0_i32 : i32, i32, i32
  }
}

module attributes {stable_mosaic.version = 11 : i64} {
  func.func @_layernorm_kernel(%arg0: i32, %arg1: memref<32x48xbf16, #tpu.memory_space<vmem>>, %arg2: memref<1x48xf32, #tpu.memory_space<vmem>>, %arg3: memref<1x48xf32, #tpu.memory_space<vmem>>, %arg4: memref<32x48xbf16, #tpu.memory_space<vmem>>) attributes {dimension_semantics = [#tpu.dimension_semantics<parallel>], iteration_bounds = array<i64: 1>, scalar_prefetch = 0 : i64, scratch_operands = 0 : i64, tpu.core_type = #tpu.core_type<tc>, window_params = [{transform_indices = @transform_0, window_bounds = array<i64: 32, 48>}, {pipeline_mode = #tpu.pipeline_mode<synchronous>, transform_indices = @transform_1, window_bounds = array<i64: 1, 48>}, {pipeline_mode = #tpu.pipeline_mode<synchronous>, transform_indices = @transform_2, window_bounds = array<i64: 1, 48>}, {transform_indices = @transform_3, window_bounds = array<i64: 32, 48>}]} {
    %c0 = arith.constant 0 : index
    %c0_0 = arith.constant 0 : index
    %0 = vector.load %arg1[%c0, %c0_0] : memref<32x48xbf16, #tpu.memory_space<vmem>>, vector<32x48xbf16>
    %1 = arith.extf %0 : vector<32x48xbf16> to vector<32x48xf32>
    %c0_1 = arith.constant 0 : index
    %c0_2 = arith.constant 0 : index
    %2 = vector.load %arg2[%c0_1, %c0_2] : memref<1x48xf32, #tpu.memory_space<vmem>>, vector<1x48xf32>
    %c0_3 = arith.constant 0 : index
    %c0_4 = arith.constant 0 : index
    %3 = vector.load %arg3[%c0_3, %c0_4] : memref<1x48xf32, #tpu.memory_space<vmem>>, vector<1x48xf32>
    %cst = arith.constant dense<0.000000e+00> : vector<32xf32>
    %4 = vector.multi_reduction <add>, %1, %cst [1] : vector<32x48xf32> to vector<32xf32>
    %5 = vector.shape_cast %4 : vector<32xf32> to vector<32x1xf32>
    %cst_5 = arith.constant 4.800000e+01 : f32
    %6 = vector.broadcast %cst_5 : f32 to vector<32x1xf32>
    %7 = arith.divf %5, %6 : vector<32x1xf32>
    %8 = vector.broadcast %7 : vector<32x1xf32> to vector<32x48xf32>
    %9 = arith.subf %1, %8 : vector<32x48xf32>
    %10 = arith.mulf %9, %9 : vector<32x48xf32>
    %cst_6 = arith.constant dense<0.000000e+00> : vector<32xf32>
    %11 = vector.multi_reduction <add>, %10, %cst_6 [1] : vector<32x48xf32> to vector<32xf32>
    %12 = vector.shape_cast %11 : vector<32xf32> to vector<32x1xf32>
    %cst_7 = arith.constant 4.800000e+01 : f32
    %13 = vector.broadcast %cst_7 : f32 to vector<32x1xf32>
    %14 = arith.divf %12, %13 : vector<32x1xf32>
    %15 = vector.broadcast %7 : vector<32x1xf32> to vector<32x48xf32>
    %16 = arith.subf %1, %15 : vector<32x48xf32>
    %cst_8 = arith.constant 9.99999974E-6 : f32
    %17 = vector.broadcast %cst_8 : f32 to vector<32x1xf32>
    %18 = arith.addf %14, %17 : vector<32x1xf32>
    %19 = math.rsqrt %18 : vector<32x1xf32>
    %20 = vector.broadcast %19 : vector<32x1xf32> to vector<32x48xf32>
    %21 = arith.mulf %16, %20 : vector<32x48xf32>
    %22 = vector.broadcast %2 : vector<1x48xf32> to vector<32x48xf32>
    %23 = arith.mulf %21, %22 : vector<32x48xf32>
    %24 = vector.broadcast %3 : vector<1x48xf32> to vector<32x48xf32>
    %25 = arith.addf %23, %24 : vector<32x48xf32>
    %26 = arith.truncf %25 : vector<32x48xf32> to vector<32x48xbf16>
    %c0_9 = arith.constant 0 : index
    %c0_10 = arith.constant 0 : index
    %27 = vector.load %arg4[%c0_9, %c0_10] : memref<32x48xbf16, #tpu.memory_space<vmem>>, vector<32x48xbf16>
    tpu.vector_store %arg4[%c0_9, %c0_10], %26 {strides = array<i32>} : memref<32x48xbf16, #tpu.memory_space<vmem>>, vector<32x48xbf16>,
    return
  }
  func.func @transform_0(%arg0: i32) -> (i32, i32) {
    %c0_i32 = arith.constant 0 : i32
    %c0_i32_0 = arith.constant 0 : i32
    return %arg0, %c0_i32 : i32, i32
  }
  func.func @transform_1(%arg0: i32) -> (i32, i32) {
    %c0_i32 = arith.constant 0 : i32
    %c0_i32_0 = arith.constant 0 : i32
    %c0_i32_1 = arith.constant 0 : i32
    return %c0_i32, %c0_i32_0 : i32, i32
  }
  func.func @transform_2(%arg0: i32) -> (i32, i32) {
    %c0_i32 = arith.constant 0 : i32
    %c0_i32_0 = arith.constant 0 : i32
    %c0_i32_1 = arith.constant 0 : i32
    return %c0_i32, %c0_i32_0 : i32, i32
  }
  func.func @transform_3(%arg0: i32) -> (i32, i32) {
    %c0_i32 = arith.constant 0 : i32
    %c0_i32_0 = arith.constant 0 : i32
    return %arg0, %c0_i32 : i32, i32
  }
}

module attributes {stable_mosaic.version = 11 : i64} {
  func.func @_matmul_res_kernel(%arg0: i32, %arg1: i32, %arg2: i32, %arg3: memref<32x128xbf16, #tpu.memory_space<vmem>>, %arg4: memref<128x128xbf16, #tpu.memory_space<vmem>>, %arg5: memref<32x128xbf16, #tpu.memory_space<vmem>>, %arg6: memref<32x128xbf16, #tpu.memory_space<vmem>>, %arg7: memref<32x128xf32, #tpu.memory_space<vmem>>) attributes {dimension_semantics = [#tpu.dimension_semantics<parallel>, #tpu.dimension_semantics<parallel>, #tpu.dimension_semantics<arbitrary>], iteration_bounds = array<i64: 1, 1, 1>, scalar_prefetch = 0 : i64, scratch_operands = 1 : i64, tpu.core_type = #tpu.core_type<tc>, window_params = [{transform_indices = @transform_0, window_bounds = array<i64: 32, 128>}, {transform_indices = @transform_1, window_bounds = array<i64: 128, 128>}, {transform_indices = @transform_2, window_bounds = array<i64: 32, 128>}, {transform_indices = @transform_3, window_bounds = array<i64: 32, 128>}]} {
    %c0_i32 = arith.constant 0 : i32
    %0 = arith.cmpi eq, %arg2, %c0_i32 : i32
    %1 = arith.extui %0 : i1 to i32
    %c0_i32_0 = arith.constant 0 : i32
    %2 = arith.cmpi ne, %1, %c0_i32_0 : i32
    scf.if %2 {
      %cst_10 = arith.constant 0.000000e+00 : f32
      %12 = vector.broadcast %cst_10 : f32 to vector<32x128xf32>
      %c0_11 = arith.constant 0 : index
      %c0_12 = arith.constant 0 : index
      %13 = vector.load %arg7[%c0_11, %c0_12] : memref<32x128xf32, #tpu.memory_space<vmem>>, vector<32x128xf32>
      tpu.vector_store %arg7[%c0_11, %c0_12], %12 {strides = array<i32>} : memref<32x128xf32, #tpu.memory_space<vmem>>, vector<32x128xf32>,
    } else {
    }
    %c0 = arith.constant 0 : index
    %c0_1 = arith.constant 0 : index
    %3 = vector.load %arg7[%c0, %c0_1] : memref<32x128xf32, #tpu.memory_space<vmem>>, vector<32x128xf32>
    %c0_2 = arith.constant 0 : index
    %c0_3 = arith.constant 0 : index
    %4 = vector.load %arg3[%c0_2, %c0_3] : memref<32x128xbf16, #tpu.memory_space<vmem>>, vector<32x128xbf16>
    %c0_4 = arith.constant 0 : index
    %c0_5 = arith.constant 0 : index
    %5 = vector.load %arg4[%c0_4, %c0_5] : memref<128x128xbf16, #tpu.memory_space<vmem>>, vector<128x128xbf16>
    %cst = arith.constant dense<0.000000e+00> : vector<32x128xf32>
    %6 = tpu.matmul %4, %5, %cst {dimension_numbers = #tpu.dot_dimension_numbers<[1], [0], [0], [1], [0, 0, 1, 1], [], []>} : vector<32x128xbf16>, vector<128x128xbf16>, vector<32x128xf32> -> vector<32x128xf32>
    %7 = arith.addf %3, %6 : vector<32x128xf32>
    %c0_6 = arith.constant 0 : index
    %c0_7 = arith.constant 0 : index
    %8 = vector.load %arg7[%c0_6, %c0_7] : memref<32x128xf32, #tpu.memory_space<vmem>>, vector<32x128xf32>
    tpu.vector_store %arg7[%c0_6, %c0_7], %7 {strides = array<i32>} : memref<32x128xf32, #tpu.memory_space<vmem>>, vector<32x128xf32>,
    %c0_i32_8 = arith.constant 0 : i32
    %9 = arith.cmpi eq, %arg2, %c0_i32_8 : i32
    %10 = arith.extui %9 : i1 to i32
    %c0_i32_9 = arith.constant 0 : i32
    %11 = arith.cmpi ne, %10, %c0_i32_9 : i32
    scf.if %11 {
      %c0_10 = arith.constant 0 : index
      %c0_11 = arith.constant 0 : index
      %12 = vector.load %arg7[%c0_10, %c0_11] : memref<32x128xf32, #tpu.memory_space<vmem>>, vector<32x128xf32>
      %c0_12 = arith.constant 0 : index
      %c0_13 = arith.constant 0 : index
      %13 = vector.load %arg5[%c0_12, %c0_13] : memref<32x128xbf16, #tpu.memory_space<vmem>>, vector<32x128xbf16>
      %14 = arith.extf %13 : vector<32x128xbf16> to vector<32x128xf32>
      %15 = arith.addf %12, %14 : vector<32x128xf32>
      %16 = arith.truncf %15 : vector<32x128xf32> to vector<32x128xbf16>
      %c0_14 = arith.constant 0 : index
      %c0_15 = arith.constant 0 : index
      %17 = vector.load %arg6[%c0_14, %c0_15] : memref<32x128xbf16, #tpu.memory_space<vmem>>, vector<32x128xbf16>
      tpu.vector_store %arg6[%c0_14, %c0_15], %16 {strides = array<i32>} : memref<32x128xbf16, #tpu.memory_space<vmem>>, vector<32x128xbf16>,
    } else {
    }
    return
  }
  func.func @transform_0(%arg0: i32, %arg1: i32, %arg2: i32) -> (i32, i32) {
    %c0_i32 = arith.constant 0 : i32
    return %arg0, %arg2 : i32, i32
  }
  func.func @transform_1(%arg0: i32, %arg1: i32, %arg2: i32) -> (i32, i32) {
    %c0_i32 = arith.constant 0 : i32
    return %arg2, %arg1 : i32, i32
  }
  func.func @transform_2(%arg0: i32, %arg1: i32, %arg2: i32) -> (i32, i32) {
    %c0_i32 = arith.constant 0 : i32
    return %arg0, %arg1 : i32, i32
  }
  func.func @transform_3(%arg0: i32, %arg1: i32, %arg2: i32) -> (i32, i32) {
    %c0_i32 = arith.constant 0 : i32
    return %arg0, %arg1 : i32, i32
  }
}

module attributes {stable_mosaic.version = 11 : i64} {
  func.func @_geglu_matmul_kernel(%arg0: i32, %arg1: i32, %arg2: memref<32x48xbf16, #tpu.memory_space<vmem>>, %arg3: memref<48x128xbf16, #tpu.memory_space<vmem>>, %arg4: memref<48x128xbf16, #tpu.memory_space<vmem>>, %arg5: memref<32x128xbf16, #tpu.memory_space<vmem>>) attributes {dimension_semantics = [#tpu.dimension_semantics<parallel>, #tpu.dimension_semantics<parallel>], iteration_bounds = array<i64: 1, 1>, scalar_prefetch = 0 : i64, scratch_operands = 0 : i64, tpu.core_type = #tpu.core_type<tc>, window_params = [{transform_indices = @transform_0, window_bounds = array<i64: 32, 48>}, {transform_indices = @transform_1, window_bounds = array<i64: 48, 128>}, {transform_indices = @transform_2, window_bounds = array<i64: 48, 128>}, {transform_indices = @transform_3, window_bounds = array<i64: 32, 128>}]} {
    %c0 = arith.constant 0 : index
    %c0_0 = arith.constant 0 : index
    %0 = vector.load %arg2[%c0, %c0_0] : memref<32x48xbf16, #tpu.memory_space<vmem>>, vector<32x48xbf16>
    %c0_1 = arith.constant 0 : index
    %c0_2 = arith.constant 0 : index
    %1 = vector.load %arg3[%c0_1, %c0_2] : memref<48x128xbf16, #tpu.memory_space<vmem>>, vector<48x128xbf16>
    %cst = arith.constant dense<0.000000e+00> : vector<32x128xf32>
    %2 = tpu.matmul %0, %1, %cst {dimension_numbers = #tpu.dot_dimension_numbers<[1], [0], [0], [1], [0, 0, 1, 1], [], []>} : vector<32x48xbf16>, vector<48x128xbf16>, vector<32x128xf32> -> vector<32x128xf32>
    %c0_3 = arith.constant 0 : index
    %c0_4 = arith.constant 0 : index
    %3 = vector.load %arg4[%c0_3, %c0_4] : memref<48x128xbf16, #tpu.memory_space<vmem>>, vector<48x128xbf16>
    %cst_5 = arith.constant dense<0.000000e+00> : vector<32x128xf32>
    %4 = tpu.matmul %0, %3, %cst_5 {dimension_numbers = #tpu.dot_dimension_numbers<[1], [0], [0], [1], [0, 0, 1, 1], [], []>} : vector<32x48xbf16>, vector<48x128xbf16>, vector<32x128xf32> -> vector<32x128xf32>
    %cst_6 = arith.constant 0.707106769 : f32
    %5 = vector.broadcast %cst_6 : f32 to vector<32x128xf32>
    %6 = arith.mulf %4, %5 : vector<32x128xf32>
    %7 = math.absf %6 : vector<32x128xf32>
    %cst_7 = arith.constant 0.327591091 : f32
    %8 = vector.broadcast %cst_7 : f32 to vector<32x128xf32>
    %9 = arith.mulf %8, %7 : vector<32x128xf32>
    %cst_8 = arith.constant 1.000000e+00 : f32
    %10 = vector.broadcast %cst_8 : f32 to vector<32x128xf32>
    %11 = arith.addf %10, %9 : vector<32x128xf32>
    %cst_9 = arith.constant 1.000000e+00 : f32
    %12 = vector.broadcast %cst_9 : f32 to vector<32x128xf32>
    %13 = arith.divf %12, %11 : vector<32x128xf32>
    %cst_10 = arith.constant 1.06140542 : f32
    %14 = vector.broadcast %cst_10 : f32 to vector<32x128xf32>
    %15 = arith.mulf %13, %14 : vector<32x128xf32>
    %cst_11 = arith.constant -1.45315206 : f32
    %16 = vector.broadcast %cst_11 : f32 to vector<32x128xf32>
    %17 = arith.addf %16, %15 : vector<32x128xf32>
    %18 = arith.mulf %13, %17 : vector<32x128xf32>
    %cst_12 = arith.constant 1.42141378 : f32
    %19 = vector.broadcast %cst_12 : f32 to vector<32x128xf32>
    %20 = arith.addf %19, %18 : vector<32x128xf32>
    %21 = arith.mulf %13, %20 : vector<32x128xf32>
    %cst_13 = arith.constant -0.284496725 : f32
    %22 = vector.broadcast %cst_13 : f32 to vector<32x128xf32>
    %23 = arith.addf %22, %21 : vector<32x128xf32>
    %24 = arith.mulf %13, %23 : vector<32x128xf32>
    %cst_14 = arith.constant 0.254829586 : f32
    %25 = vector.broadcast %cst_14 : f32 to vector<32x128xf32>
    %26 = arith.addf %25, %24 : vector<32x128xf32>
    %27 = arith.mulf %13, %26 : vector<32x128xf32>
    %cst_15 = arith.constant 0.000000e+00 : f32
    %28 = vector.broadcast %cst_15 : f32 to vector<32x128xf32>
    %29 = arith.subf %28, %7 : vector<32x128xf32>
    %30 = arith.mulf %29, %7 : vector<32x128xf32>
    %31 = math.exp %30 : vector<32x128xf32>
    %32 = arith.mulf %27, %31 : vector<32x128xf32>
    %cst_16 = arith.constant 1.000000e+00 : f32
    %33 = vector.broadcast %cst_16 : f32 to vector<32x128xf32>
    %34 = arith.subf %33, %32 : vector<32x128xf32>
    %cst_17 = arith.constant 0.000000e+00 : f32
    %35 = vector.broadcast %cst_17 : f32 to vector<32x128xf32>
    %36 = arith.cmpf olt, %6, %35 : vector<32x128xf32>
    %cst_18 = arith.constant 0.000000e+00 : f32
    %37 = vector.broadcast %cst_18 : f32 to vector<32x128xf32>
    %38 = arith.subf %37, %34 : vector<32x128xf32>
    %39 = arith.select %36, %38, %34 : vector<32x128xi1>, vector<32x128xf32>
    %cst_19 = arith.constant 5.000000e-01 : f32
    %40 = vector.broadcast %cst_19 : f32 to vector<32x128xf32>
    %41 = arith.mulf %40, %4 : vector<32x128xf32>
    %cst_20 = arith.constant 1.000000e+00 : f32
    %42 = vector.broadcast %cst_20 : f32 to vector<32x128xf32>
    %43 = arith.addf %42, %39 : vector<32x128xf32>
    %44 = arith.mulf %41, %43 : vector<32x128xf32>
    %45 = arith.mulf %44, %2 : vector<32x128xf32>
    %46 = arith.truncf %45 : vector<32x128xf32> to vector<32x128xbf16>
    %c0_21 = arith.constant 0 : index
    %c0_22 = arith.constant 0 : index
    %47 = vector.load %arg5[%c0_21, %c0_22] : memref<32x128xbf16, #tpu.memory_space<vmem>>, vector<32x128xbf16>
    tpu.vector_store %arg5[%c0_21, %c0_22], %46 {strides = array<i32>} : memref<32x128xbf16, #tpu.memory_space<vmem>>, vector<32x128xbf16>,
    return
  }
  func.func @transform_0(%arg0: i32, %arg1: i32) -> (i32, i32) {
    %c0_i32 = arith.constant 0 : i32
    %c0_i32_0 = arith.constant 0 : i32
    return %arg0, %c0_i32 : i32, i32
  }
  func.func @transform_1(%arg0: i32, %arg1: i32) -> (i32, i32) {
    %c0_i32 = arith.constant 0 : i32
    %c0_i32_0 = arith.constant 0 : i32
    return %c0_i32, %arg1 : i32, i32
  }
  func.func @transform_2(%arg0: i32, %arg1: i32) -> (i32, i32) {
    %c0_i32 = arith.constant 0 : i32
    %c0_i32_0 = arith.constant 0 : i32
    return %c0_i32, %arg1 : i32, i32
  }
  func.func @transform_3(%arg0: i32, %arg1: i32) -> (i32, i32) {
    %c0_i32 = arith.constant 0 : i32
    return %arg0, %arg1 : i32, i32
  }
}

module attributes {stable_mosaic.version = 11 : i64} {
  func.func @_layernorm_kernel(%arg0: i32, %arg1: memref<32x128xbf16, #tpu.memory_space<vmem>>, %arg2: memref<1x128xf32, #tpu.memory_space<vmem>>, %arg3: memref<1x128xf32, #tpu.memory_space<vmem>>, %arg4: memref<32x128xbf16, #tpu.memory_space<vmem>>) attributes {dimension_semantics = [#tpu.dimension_semantics<parallel>], iteration_bounds = array<i64: 1>, scalar_prefetch = 0 : i64, scratch_operands = 0 : i64, tpu.core_type = #tpu.core_type<tc>, window_params = [{transform_indices = @transform_0, window_bounds = array<i64: 32, 128>}, {pipeline_mode = #tpu.pipeline_mode<synchronous>, transform_indices = @transform_1, window_bounds = array<i64: 1, 128>}, {pipeline_mode = #tpu.pipeline_mode<synchronous>, transform_indices = @transform_2, window_bounds = array<i64: 1, 128>}, {transform_indices = @transform_3, window_bounds = array<i64: 32, 128>}]} {
    %c0 = arith.constant 0 : index
    %c0_0 = arith.constant 0 : index
    %0 = vector.load %arg1[%c0, %c0_0] : memref<32x128xbf16, #tpu.memory_space<vmem>>, vector<32x128xbf16>
    %1 = arith.extf %0 : vector<32x128xbf16> to vector<32x128xf32>
    %c0_1 = arith.constant 0 : index
    %c0_2 = arith.constant 0 : index
    %2 = vector.load %arg2[%c0_1, %c0_2] : memref<1x128xf32, #tpu.memory_space<vmem>>, vector<1x128xf32>
    %c0_3 = arith.constant 0 : index
    %c0_4 = arith.constant 0 : index
    %3 = vector.load %arg3[%c0_3, %c0_4] : memref<1x128xf32, #tpu.memory_space<vmem>>, vector<1x128xf32>
    %cst = arith.constant dense<0.000000e+00> : vector<32xf32>
    %4 = vector.multi_reduction <add>, %1, %cst [1] : vector<32x128xf32> to vector<32xf32>
    %5 = vector.shape_cast %4 : vector<32xf32> to vector<32x1xf32>
    %cst_5 = arith.constant 1.280000e+02 : f32
    %6 = vector.broadcast %cst_5 : f32 to vector<32x1xf32>
    %7 = arith.divf %5, %6 : vector<32x1xf32>
    %8 = vector.broadcast %7 : vector<32x1xf32> to vector<32x128xf32>
    %9 = arith.subf %1, %8 : vector<32x128xf32>
    %10 = arith.mulf %9, %9 : vector<32x128xf32>
    %cst_6 = arith.constant dense<0.000000e+00> : vector<32xf32>
    %11 = vector.multi_reduction <add>, %10, %cst_6 [1] : vector<32x128xf32> to vector<32xf32>
    %12 = vector.shape_cast %11 : vector<32xf32> to vector<32x1xf32>
    %cst_7 = arith.constant 1.280000e+02 : f32
    %13 = vector.broadcast %cst_7 : f32 to vector<32x1xf32>
    %14 = arith.divf %12, %13 : vector<32x1xf32>
    %15 = vector.broadcast %7 : vector<32x1xf32> to vector<32x128xf32>
    %16 = arith.subf %1, %15 : vector<32x128xf32>
    %cst_8 = arith.constant 9.99999974E-6 : f32
    %17 = vector.broadcast %cst_8 : f32 to vector<32x1xf32>
    %18 = arith.addf %14, %17 : vector<32x1xf32>
    %19 = math.rsqrt %18 : vector<32x1xf32>
    %20 = vector.broadcast %19 : vector<32x1xf32> to vector<32x128xf32>
    %21 = arith.mulf %16, %20 : vector<32x128xf32>
    %22 = vector.broadcast %2 : vector<1x128xf32> to vector<32x128xf32>
    %23 = arith.mulf %21, %22 : vector<32x128xf32>
    %24 = vector.broadcast %3 : vector<1x128xf32> to vector<32x128xf32>
    %25 = arith.addf %23, %24 : vector<32x128xf32>
    %26 = arith.truncf %25 : vector<32x128xf32> to vector<32x128xbf16>
    %c0_9 = arith.constant 0 : index
    %c0_10 = arith.constant 0 : index
    %27 = vector.load %arg4[%c0_9, %c0_10] : memref<32x128xbf16, #tpu.memory_space<vmem>>, vector<32x128xbf16>
    tpu.vector_store %arg4[%c0_9, %c0_10], %26 {strides = array<i32>} : memref<32x128xbf16, #tpu.memory_space<vmem>>, vector<32x128xbf16>,
    return
  }
  func.func @transform_0(%arg0: i32) -> (i32, i32) {
    %c0_i32 = arith.constant 0 : i32
    %c0_i32_0 = arith.constant 0 : i32
    return %arg0, %c0_i32 : i32, i32
  }
  func.func @transform_1(%arg0: i32) -> (i32, i32) {
    %c0_i32 = arith.constant 0 : i32
    %c0_i32_0 = arith.constant 0 : i32
    %c0_i32_1 = arith.constant 0 : i32
    return %c0_i32, %c0_i32_0 : i32, i32
  }
  func.func @transform_2(%arg0: i32) -> (i32, i32) {
    %c0_i32 = arith.constant 0 : i32
    %c0_i32_0 = arith.constant 0 : i32
    %c0_i32_1 = arith.constant 0 : i32
    return %c0_i32, %c0_i32_0 : i32, i32
  }
  func.func @transform_3(%arg0: i32) -> (i32, i32) {
    %c0_i32 = arith.constant 0 : i32
    %c0_i32_0 = arith.constant 0 : i32
    return %arg0, %c0_i32 : i32, i32
  }
}

module attributes {stable_mosaic.version = 11 : i64} {
  func.func @_matmul_bias_kernel(%arg0: i32, %arg1: i32, %arg2: i32, %arg3: memref<16x128xbf16, #tpu.memory_space<vmem>>, %arg4: memref<128x128xbf16, #tpu.memory_space<vmem>>, %arg5: memref<1x128xf32, #tpu.memory_space<vmem>>, %arg6: memref<16x128xf32, #tpu.memory_space<vmem>>, %arg7: memref<16x128xf32, #tpu.memory_space<vmem>>) attributes {dimension_semantics = [#tpu.dimension_semantics<parallel>, #tpu.dimension_semantics<parallel>, #tpu.dimension_semantics<arbitrary>], iteration_bounds = array<i64: 1, 1, 1>, scalar_prefetch = 0 : i64, scratch_operands = 1 : i64, tpu.core_type = #tpu.core_type<tc>, window_params = [{transform_indices = @transform_0, window_bounds = array<i64: 16, 128>}, {transform_indices = @transform_1, window_bounds = array<i64: 128, 128>}, {transform_indices = @transform_2, window_bounds = array<i64: 1, 128>}, {transform_indices = @transform_3, window_bounds = array<i64: 16, 128>}]} {
    %c0_i32 = arith.constant 0 : i32
    %0 = arith.cmpi eq, %arg2, %c0_i32 : i32
    %1 = arith.extui %0 : i1 to i32
    %c0_i32_0 = arith.constant 0 : i32
    %2 = arith.cmpi ne, %1, %c0_i32_0 : i32
    scf.if %2 {
      %cst_10 = arith.constant 0.000000e+00 : f32
      %12 = vector.broadcast %cst_10 : f32 to vector<16x128xf32>
      %c0_11 = arith.constant 0 : index
      %c0_12 = arith.constant 0 : index
      %13 = vector.load %arg7[%c0_11, %c0_12] : memref<16x128xf32, #tpu.memory_space<vmem>>, vector<16x128xf32>
      tpu.vector_store %arg7[%c0_11, %c0_12], %12 {strides = array<i32>} : memref<16x128xf32, #tpu.memory_space<vmem>>, vector<16x128xf32>,
    } else {
    }
    %c0 = arith.constant 0 : index
    %c0_1 = arith.constant 0 : index
    %3 = vector.load %arg7[%c0, %c0_1] : memref<16x128xf32, #tpu.memory_space<vmem>>, vector<16x128xf32>
    %c0_2 = arith.constant 0 : index
    %c0_3 = arith.constant 0 : index
    %4 = vector.load %arg3[%c0_2, %c0_3] : memref<16x128xbf16, #tpu.memory_space<vmem>>, vector<16x128xbf16>
    %c0_4 = arith.constant 0 : index
    %c0_5 = arith.constant 0 : index
    %5 = vector.load %arg4[%c0_4, %c0_5] : memref<128x128xbf16, #tpu.memory_space<vmem>>, vector<128x128xbf16>
    %cst = arith.constant dense<0.000000e+00> : vector<16x128xf32>
    %6 = tpu.matmul %4, %5, %cst {dimension_numbers = #tpu.dot_dimension_numbers<[1], [0], [0], [1], [0, 0, 1, 1], [], []>} : vector<16x128xbf16>, vector<128x128xbf16>, vector<16x128xf32> -> vector<16x128xf32>
    %7 = arith.addf %3, %6 : vector<16x128xf32>
    %c0_6 = arith.constant 0 : index
    %c0_7 = arith.constant 0 : index
    %8 = vector.load %arg7[%c0_6, %c0_7] : memref<16x128xf32, #tpu.memory_space<vmem>>, vector<16x128xf32>
    tpu.vector_store %arg7[%c0_6, %c0_7], %7 {strides = array<i32>} : memref<16x128xf32, #tpu.memory_space<vmem>>, vector<16x128xf32>,
    %c0_i32_8 = arith.constant 0 : i32
    %9 = arith.cmpi eq, %arg2, %c0_i32_8 : i32
    %10 = arith.extui %9 : i1 to i32
    %c0_i32_9 = arith.constant 0 : i32
    %11 = arith.cmpi ne, %10, %c0_i32_9 : i32
    scf.if %11 {
      %c0_10 = arith.constant 0 : index
      %c0_11 = arith.constant 0 : index
      %12 = vector.load %arg7[%c0_10, %c0_11] : memref<16x128xf32, #tpu.memory_space<vmem>>, vector<16x128xf32>
      %c0_12 = arith.constant 0 : index
      %c0_13 = arith.constant 0 : index
      %13 = vector.load %arg5[%c0_12, %c0_13] : memref<1x128xf32, #tpu.memory_space<vmem>>, vector<1x128xf32>
      %14 = vector.broadcast %13 : vector<1x128xf32> to vector<16x128xf32>
      %15 = arith.addf %12, %14 : vector<16x128xf32>
      %c0_14 = arith.constant 0 : index
      %c0_15 = arith.constant 0 : index
      %16 = vector.load %arg6[%c0_14, %c0_15] : memref<16x128xf32, #tpu.memory_space<vmem>>, vector<16x128xf32>
      tpu.vector_store %arg6[%c0_14, %c0_15], %15 {strides = array<i32>} : memref<16x128xf32, #tpu.memory_space<vmem>>, vector<16x128xf32>,
    } else {
    }
    return
  }
  func.func @transform_0(%arg0: i32, %arg1: i32, %arg2: i32) -> (i32, i32) {
    %c0_i32 = arith.constant 0 : i32
    return %arg0, %arg2 : i32, i32
  }
  func.func @transform_1(%arg0: i32, %arg1: i32, %arg2: i32) -> (i32, i32) {
    %c0_i32 = arith.constant 0 : i32
    return %arg2, %arg1 : i32, i32
  }
  func.func @transform_2(%arg0: i32, %arg1: i32, %arg2: i32) -> (i32, i32) {
    %c0_i32 = arith.constant 0 : i32
    %c0_i32_0 = arith.constant 0 : i32
    return %c0_i32, %arg1 : i32, i32
  }
  func.func @transform_3(%arg0: i32, %arg1: i32, %arg2: i32) -> (i32, i32) {
    %c0_i32 = arith.constant 0 : i32
    return %arg0, %arg1 : i32, i32
  }
}

module attributes {stable_mosaic.version = 11 : i64} {
  func.func @_group_logits_kernel(%arg0: i32, %arg1: i32, %arg2: memref<1x8x48xbf16, #tpu.memory_space<vmem>>, %arg3: memref<1x48x128xbf16, #tpu.memory_space<vmem>>, %arg4: memref<1x8x128xf32, #tpu.memory_space<vmem>>) attributes {dimension_semantics = [#tpu.dimension_semantics<parallel>, #tpu.dimension_semantics<parallel>], iteration_bounds = array<i64: 3, 1>, scalar_prefetch = 0 : i64, scratch_operands = 0 : i64, tpu.core_type = #tpu.core_type<tc>, window_params = [{transform_indices = @transform_0, window_bounds = array<i64: 1, 8, 48>}, {transform_indices = @transform_1, window_bounds = array<i64: 1, 48, 128>}, {transform_indices = @transform_2, window_bounds = array<i64: 1, 8, 128>}]} {
    %c0 = arith.constant 0 : index
    %c0_0 = arith.constant 0 : index
    %c0_1 = arith.constant 0 : index
    %0 = vector.load %arg2[%c0, %c0_0, %c0_1] : memref<1x8x48xbf16, #tpu.memory_space<vmem>>, vector<1x8x48xbf16>
    %1 = vector.shape_cast %0 : vector<1x8x48xbf16> to vector<8x48xbf16>
    %c0_2 = arith.constant 0 : index
    %c0_3 = arith.constant 0 : index
    %c0_4 = arith.constant 0 : index
    %2 = vector.load %arg3[%c0_2, %c0_3, %c0_4] : memref<1x48x128xbf16, #tpu.memory_space<vmem>>, vector<1x48x128xbf16>
    %3 = vector.shape_cast %2 : vector<1x48x128xbf16> to vector<48x128xbf16>
    %cst = arith.constant dense<0.000000e+00> : vector<8x128xf32>
    %4 = tpu.matmul %1, %3, %cst {dimension_numbers = #tpu.dot_dimension_numbers<[1], [0], [0], [1], [0, 0, 1, 1], [], []>} : vector<8x48xbf16>, vector<48x128xbf16>, vector<8x128xf32> -> vector<8x128xf32>
    %c0_5 = arith.constant 0 : index
    %c0_6 = arith.constant 0 : index
    %c0_7 = arith.constant 0 : index
    %5 = vector.load %arg4[%c0_5, %c0_6, %c0_7] : memref<1x8x128xf32, #tpu.memory_space<vmem>>, vector<1x8x128xf32>
    %6 = vector.shape_cast %5 : vector<1x8x128xf32> to vector<8x128xf32>
    %7 = vector.shape_cast %4 : vector<8x128xf32> to vector<1x8x128xf32>
    tpu.vector_store %arg4[%c0_5, %c0_6, %c0_7], %7 {strides = array<i32>} : memref<1x8x128xf32, #tpu.memory_space<vmem>>, vector<1x8x128xf32>,
    return
  }
  func.func @transform_0(%arg0: i32, %arg1: i32) -> (i32, i32, i32) {
    %c0_i32 = arith.constant 0 : i32
    %c0_i32_0 = arith.constant 0 : i32
    return %arg0, %arg1, %c0_i32 : i32, i32, i32
  }
  func.func @transform_1(%arg0: i32, %arg1: i32) -> (i32, i32, i32) {
    %c0_i32 = arith.constant 0 : i32
    %c0_i32_0 = arith.constant 0 : i32
    %c0_i32_1 = arith.constant 0 : i32
    return %arg0, %c0_i32, %c0_i32_0 : i32, i32, i32
  }
  func.func @transform_2(%arg0: i32, %arg1: i32) -> (i32, i32, i32) {
    %c0_i32 = arith.constant 0 : i32
    %c0_i32_0 = arith.constant 0 : i32
    return %arg0, %arg1, %c0_i32 : i32, i32, i32
  }
}

</mosaic_0001>

<bundles_post_ra>
// kernel: tile.13
= control target key start
LH: loop header
LB: loop body
LE: loop exit
PB: predicated region body
PF: predicated region fallthrough
CT: control target
= control target key end

     0   :  { %s22_s0 = inlined_call_operand.vmem [shape: s32[3], index: 0, kind: input, shape index: {}]   ;;  %s23_s1 = inlined_call_operand.vmem [shape: s32[2,3], index: 1, kind: output, shape index: {}]  }
   0x1   :  { %v4_v0 = vld [vmem:[%s22_s0] ss:$0 sm:$0xff] }
   0x2   :  { %5 = vst [vmem:[%s23_s1] sm:$0x3] %v4_v0 }

// kernel: _lambda_.17
= control target key start
LH: loop header
LB: loop body
LE: loop exit
PB: predicated region body
PF: predicated region fallthrough
CT: control target
= control target key end

     0   :  { %vm33_vm0 = vcmask 392192   ;;  %vm204_vm1 = vcmask 519168   ;;  %s515_s0 = inlined_call_operand.vmem [shape: bf16[32,48], index: 0, kind: input, shape index: {}]   ;;  %s516_s4 = inlined_call_operand.vmem [shape: bf16[48,128], index: 4, kind: input, shape index: {}]   ;;  %s517_s3 = inlined_call_operand.vmem [shape: bf16[48,64], index: 3, kind: input, shape index: {}]   ;;  %s518_s1 = inlined_call_operand.vmem [shape: f32[1,48], index: 1, kind: input, shape index: {}]   ;;  %s519_s2 = inlined_call_operand.vmem [shape: f32[1,48], index: 2, kind: input, shape index: {}]   ;;  %s520_s6 = inlined_call_operand.vmem [shape: bf16[32,128], index: 6, kind: output, shape index: {1}]   ;;  %s521_s5 = inlined_call_operand.vmem [shape: bf16[32,64], index: 5, kind: output, shape index: {0}]  }
   0x1   :  { %v23_v0 = vld [vmem:[%s515_s0] sm:$0xff]   ;;  %v25_v1 = vld [vmem:[%s515_s0 + $0x8] sm:$0xff]   ;;  %v402_v34 = vld [vmem:[%s516_s4 + $0x10] sm:$0xff]  }
   0x2   :  { %v27_v2 = vunpack.c.l.bf16 %v23_v0  ;;  %v29_v3 = vunpack.c.l.bf16 %v25_v1  ;;  %v28_v4 = vunpack.c.h.bf16 %v23_v0  ;;  %v30_v5 = vunpack.c.h.bf16 %v25_v1  ;;  %v398_v30 = vld [vmem:[%s516_s4] sm:$0xff]   ;;  %v400_v32 = vld [vmem:[%s516_s4 + $0x8] sm:$0xff]   ;;  %v403_v35 = vld [vmem:[%s517_s3 + $0x10] sm:$0xff]   ;;  %393 = vmatprep.mubr.msk.bf16.mxu1 %vm33_vm0, %v23_v0 }
   0x3   :  { %387 = vmatprep.subr.bf16.mxu1 %v398_v30  ;;  %v399_v31 = vld [vmem:[%s517_s3] sm:$0xff]   ;;  %v401_v33 = vld [vmem:[%s517_s3 + $0x8] sm:$0xff]  }
   0x4   :  { %v34_v6 = vsel %vm33_vm0, %v27_v2, 0.0  ;;  %v40_v7 = vsel %vm33_vm0, %v29_v3, 0.0  ;;  %v37_v8 = vsel %vm33_vm0, %v28_v4, 0.0  ;;  %v43_v9 = vsel %vm33_vm0, %v30_v5, 0.0  ;;  %388 = vmatpush3.bf16.msra.mxu1 %v398_v30  ;;  %377 = vmatprep.subr.bf16.mxu0 %v399_v31  ;;  %v326_v50 = vld [vmem:[%s518_s1] ss:$0 sm:$0xff] }
   0x5   :  { %35 = vadd.xlane.f32.xlu0 %v34_v6  ;;  %41 = vadd.xlane.f32.xlu1 %v40_v7  ;;  %v327_v56 = vld [vmem:[%s519_s2] ss:$0 sm:$0xff] }
   0x6   :  { %378 = vmatpush3.bf16.msra.mxu0 %v399_v31  ;;  %389 = vmatprep.subr.bf16.mxu1 %v400_v32 }
   0x7   :  { %379 = vmatprep.subr.bf16.mxu0 %v401_v33 }
   0x8   :  { %390 = vmatpush3.bf16.msra.mxu1 %v400_v32 }
   0x9   :  { %38 = vadd.xlane.f32.xlu0 %v37_v8  ;;  %44 = vadd.xlane.f32.xlu1 %v43_v9 }
   0xa   :  { %380 = vmatpush3.bf16.msra.mxu0 %v401_v33  ;;  %391 = vmatprep.subr.bf16.mxu1 %v402_v34 }
   0xb   :  { %381 = vmatprep.subr.bf16.mxu0 %v403_v35 }
   0xc   :  { %392 = vmatpush3.bf16.msra.mxu1 %v402_v34 }
   0xe   :  { %382 = vmatpush3.bf16.msra.mxu0 %v403_v35 }
   0xf   :  { %394 = vmatmul.mubr.msk.bf16.vlgmr.msra.gmra.mrb[0].mxu1 %vm33_vm0, %v25_v1 }
  0x92   :  { %v36_v10 = vpop.xlane.xlu0 %35  ;;  %v42_v11 = vpop.xlane.xlu1 %41 }
  0x93   :  { %v47_v12 = vmul.f32 0.020833334, %v36_v10  ;;  %v49_v13 = vmul.f32 0.020833334, %v42_v11 }
  0x95   :  { %v51_v14 = vsub.f32 %v27_v2, %v47_v12  ;;  %v460_v15 = vsub.f32 %v29_v3, %v49_v13 }
  0x96   :  { %v39_v16 = vpop.xlane.xlu0 %38  ;;  %v45_v17 = vpop.xlane.xlu1 %44 }
  0x97   :  { %v48_v18 = vmul.f32 0.020833334, %v39_v16  ;;  %v50_v19 = vmul.f32 0.020833334, %v45_v17  ;;  %v55_v20 = vmul.f32 %v51_v14, %v51_v14  ;;  %v57_v21 = vmul.f32 %v460_v15, %v460_v15 }
  0x99   :  { %v52_v22 = vsub.f32 %v28_v4, %v48_v18  ;;  %v54_v23 = vsub.f32 %v30_v5, %v50_v19  ;;  %v59_v24 = vsel %vm33_vm0, %v55_v20, 0.0  ;;  %v65_v25 = vsel %vm33_vm0, %v57_v21, 0.0 }
  0x9a   :  { %60 = vadd.xlane.f32.xlu0 %v59_v24 }
  0x9b   :  { %v56_v26 = vmul.f32 %v52_v22, %v52_v22  ;;  %v58_v27 = vmul.f32 %v54_v23, %v54_v23 }
  0x9d   :  { %v62_v28 = vsel %vm33_vm0, %v56_v26, 0.0  ;;  %v68_v29 = vsel %vm33_vm0, %v58_v27, 0.0 }
  0x9e   :  { %66 = vadd.xlane.f32.xlu0 %v65_v25  ;;  %63 = vadd.xlane.f32.xlu1 %v62_v28 }
  0xa2   :  { %69 = vadd.xlane.f32.xlu1 %v68_v29 }
  0xe2   :  { %v395_v4 = vpop.f32.mrb[0].mxu1 }
  0xe3   :  { %v283_v5 = vpop.f32.mrb[1].mxu1 }
  0xe4   :  { %v396_v6 = vpop.f32.mrb[2].mxu1 }
  0xe5   :  { %v364_v7 = vpack.c.bf16 %v396_v6, %v395_v4  ;;  %v286_v8 = vpop.f32.mrb[3].mxu1 }
  0xe6   :  { %v359_v9 = vpack.c.bf16 %v286_v8, %v283_v5 }
  0xe7   :  { %366 = vst [vmem:[%s520_s6 + $0x8] sm:$0xff] %v364_v7  }
  0xe8   :  { %360 = vst [vmem:[%s520_s6] sm:$0xff] %v359_v9  }
 0x127   :  { %v61_v36 = vpop.xlane.xlu0 %60 }
 0x128   :  { %v71_v37 = vmul.f32 0.020833334, %v61_v36 }
 0x12a   :  { %v75_v38 = vadd.f32 1e-05, %v71_v37 }
 0x12b   :  { %v64_v39 = vpop.xlane.xlu1 %63  ;;  %v67_v40 = vpop.xlane.xlu0 %66 }
 0x12c   :  { %407 = vrsqrt.f32 %v75_v38  ;;  %v72_v41 = vmul.f32 0.020833334, %v64_v39  ;;  %v73_v42 = vmul.f32 0.020833334, %v67_v40 }
 0x12e   :  { %v76_v43 = vadd.f32 1e-05, %v72_v41  ;;  %v77_v44 = vadd.f32 1e-05, %v73_v42 }
 0x12f   :  { %v70_v45 = vpop.xlane.xlu1 %69 }
 0x130   :  { %409 = vrsqrt.f32 %v76_v43  ;;  %v74_v46 = vmul.f32 0.020833334, %v70_v45 }
 0x131   :  { %411 = vrsqrt.f32 %v77_v44 }
 0x132   :  { %v78_v47 = vadd.f32 1e-05, %v74_v46 }
 0x134   :  { %413 = vrsqrt.f32 %v78_v47 }
 0x136   :  { %v408_v48 = vpop.eup %407 }
 0x137   :  { %v83_v49 = vmul.f32 %v408_v48, %v51_v14 }
 0x139   :  { %v93_v54 = vmul.f32 %v326_v50, %v83_v49 }
 0x13a   :  { %v410_v51 = vpop.eup %409 }
 0x13b   :  { %v412_v52 = vpop.eup %411  ;;  %v84_v53 = vmul.f32 %v410_v51, %v52_v22  ;;  %v103_v60 = vadd.f32 %v327_v56, %v93_v54 }
 0x13c   :  { %v85_v55 = vmul.f32 %v412_v52, %v460_v15 }
 0x13d   :  { %v94_v57 = vmul.f32 %v326_v50, %v84_v53 }
 0x13e   :  { %v414_v58 = vpop.eup %413  ;;  %v95_v62 = vmul.f32 %v326_v50, %v85_v55 }
 0x13f   :  { %v86_v59 = vmul.f32 %v414_v58, %v54_v23  ;;  %v104_v61 = vadd.f32 %v327_v56, %v94_v57 }
 0x140   :  { %v105_v1 = vadd.f32 %v327_v56, %v95_v62 }
 0x141   :  { %v107_v63 = vpack.c.bf16 %v104_v61, %v103_v60  ;;  %v96_v0 = vmul.f32 %v326_v50, %v86_v59 }
 0x143   :  { %383 = vmatprep.mubr.msk.bf16.mxu0 %vm33_vm0, %v107_v63  ;;  %v106_v2 = vadd.f32 %v327_v56, %v96_v0 }
 0x145   :  { %v108_v3 = vpack.c.bf16 %v106_v2, %v105_v1 }
 0x147   :  { %384 = vmatmul.mubr.msk.bf16.vlgmr.msra.gmra.mrb[0].mxu0 %vm33_vm0, %v108_v3 }
 0x21a   :  { %v385_v10 = vpop.f32.mrb[0].mxu0 }
 0x21b   :  { %v350_v11 = vpack.c.bf16 %v385_v10, %v385_v10  ;;  %v173_v12 = vpop.f32.mrb[1].mxu0 }
 0x21c   :  { %v348_v13 = vpack.c.bf16 %v173_v12, %v173_v12  ;;  %v386_v14 = vpop.f32.mrb[2].mxu0 }
 0x21d   :  { %207 = vst.msk [vmem:[%s521_s5 + $0x8] sm:$0xf] %vm204_vm1, %v350_v11  ;;  %v351_v15 = vpack.c.bf16 %v386_v14, %v386_v14  ;;  %v176_v16 = vpop.f32.mrb[3].mxu0 }
 0x21e   :  { %205 = vst.msk [vmem:[%s521_s5] sm:$0xf] %vm204_vm1, %v348_v13  ;;  %v349_v17 = vpack.c.bf16 %v176_v16, %v176_v16 }
 0x21f   :  { %208 = vst.msk [vmem:[%s521_s5 + $0xc] sm:$0xf] %vm204_vm1, %v351_v15 }
 0x220   :  { %206 = vst.msk [vmem:[%s521_s5 + $0x4] sm:$0xf] %vm204_vm1, %v349_v17 }

// kernel: _lambda_.20
= control target key start
LH: loop header
LB: loop body
LE: loop exit
PB: predicated region body
PF: predicated region fallthrough
CT: control target
= control target key end

     0   :  { %vm24_vm0 = vcmask 392192   ;;  %vm114_vm1 = vcmask 388096   ;;  %s206_s0 = inlined_call_operand.vmem [shape: bf16[32,48], index: 0, kind: input, shape index: {}]   ;;  %s207_s1 = inlined_call_operand.vmem [shape: f32[1,48], index: 1, kind: input, shape index: {}]   ;;  %s208_s2 = inlined_call_operand.vmem [shape: f32[1,48], index: 2, kind: input, shape index: {}]   ;;  %s209_s3 = inlined_call_operand.vmem [shape: bf16[32,48], index: 3, kind: output, shape index: {}]  }
   0x1   :  { %v134_v0 = vld [vmem:[%s206_s0] sm:$0xff]   ;;  %v141_v1 = vld [vmem:[%s206_s0 + $0x8] sm:$0xff]  }
   0x2   :  { %v135_v2 = vunpack.c.l.bf16 %v134_v0  ;;  %v139_v3 = vunpack.c.l.bf16 %v141_v1  ;;  %v136_v4 = vunpack.c.h.bf16 %v134_v0  ;;  %v140_v5 = vunpack.c.h.bf16 %v141_v1  ;;  %v123_v43 = vld [vmem:[%s207_s1] ss:$0 sm:$0xff] }
   0x3   :  { %v124_v45 = vld [vmem:[%s208_s2] ss:$0 sm:$0xff] }
   0x4   :  { %v25_v6 = vsel %vm24_vm0, %v135_v2, 0.0  ;;  %v31_v7 = vsel %vm24_vm0, %v139_v3, 0.0  ;;  %v28_v8 = vsel %vm24_vm0, %v136_v4, 0.0  ;;  %v34_v9 = vsel %vm24_vm0, %v140_v5, 0.0 }
   0x5   :  { %26 = vadd.xlane.f32.xlu0 %v25_v6  ;;  %32 = vadd.xlane.f32.xlu1 %v31_v7 }
   0x9   :  { %29 = vadd.xlane.f32.xlu0 %v28_v8  ;;  %35 = vadd.xlane.f32.xlu1 %v34_v9 }
  0x92   :  { %v27_v10 = vpop.xlane.xlu0 %26  ;;  %v33_v11 = vpop.xlane.xlu1 %32 }
  0x93   :  { %v38_v12 = vmul.f32 0.020833334, %v27_v10  ;;  %v40_v13 = vmul.f32 0.020833334, %v33_v11 }
  0x95   :  { %v42_v14 = vsub.f32 %v135_v2, %v38_v12  ;;  %v44_v15 = vsub.f32 %v139_v3, %v40_v13 }
  0x96   :  { %v30_v16 = vpop.xlane.xlu0 %29  ;;  %v36_v17 = vpop.xlane.xlu1 %35 }
  0x97   :  { %v39_v18 = vmul.f32 0.020833334, %v30_v16  ;;  %v41_v19 = vmul.f32 0.020833334, %v36_v17  ;;  %v46_v20 = vmul.f32 %v42_v14, %v42_v14  ;;  %v48_v21 = vmul.f32 %v44_v15, %v44_v15 }
  0x99   :  { %v43_v22 = vsub.f32 %v136_v4, %v39_v18  ;;  %v45_v23 = vsub.f32 %v140_v5, %v41_v19  ;;  %v50_v24 = vsel %vm24_vm0, %v46_v20, 0.0  ;;  %v56_v25 = vsel %vm24_vm0, %v48_v21, 0.0 }
  0x9a   :  { %51 = vadd.xlane.f32.xlu0 %v50_v24 }
  0x9b   :  { %v47_v26 = vmul.f32 %v43_v22, %v43_v22  ;;  %v49_v27 = vmul.f32 %v45_v23, %v45_v23 }
  0x9d   :  { %v53_v28 = vsel %vm24_vm0, %v47_v26, 0.0  ;;  %v59_v29 = vsel %vm24_vm0, %v49_v27, 0.0 }
  0x9e   :  { %57 = vadd.xlane.f32.xlu0 %v56_v25  ;;  %54 = vadd.xlane.f32.xlu1 %v53_v28 }
  0xa2   :  { %60 = vadd.xlane.f32.xlu1 %v59_v29 }
 0x127   :  { %v52_v30 = vpop.xlane.xlu0 %51 }
 0x128   :  { %v62_v31 = vmul.f32 0.020833334, %v52_v30 }
 0x12a   :  { %v66_v32 = vadd.f32 1e-05, %v62_v31 }
 0x12b   :  { %v55_v33 = vpop.xlane.xlu1 %54  ;;  %v58_v34 = vpop.xlane.xlu0 %57 }
 0x12c   :  { %142 = vrsqrt.f32 %v66_v32  ;;  %v63_v35 = vmul.f32 0.020833334, %v55_v33  ;;  %v64_v36 = vmul.f32 0.020833334, %v58_v34 }
 0x12e   :  { %v67_v37 = vadd.f32 1e-05, %v63_v35  ;;  %v68_v38 = vadd.f32 1e-05, %v64_v36 }
 0x12f   :  { %v61_v39 = vpop.xlane.xlu1 %60 }
 0x130   :  { %144 = vrsqrt.f32 %v67_v37  ;;  %v65_v40 = vmul.f32 0.020833334, %v61_v39 }
 0x131   :  { %146 = vrsqrt.f32 %v68_v38 }
 0x132   :  { %v69_v41 = vadd.f32 1e-05, %v65_v40 }
 0x134   :  { %148 = vrsqrt.f32 %v69_v41 }
 0x136   :  { %v143_v42 = vpop.eup %142 }
 0x137   :  { %v74_v44 = vmul.f32 %v143_v42, %v42_v14 }
 0x139   :  { %v84_v46 = vmul.f32 %v123_v43, %v74_v44 }
 0x13a   :  { %v145_v47 = vpop.eup %144 }
 0x13b   :  { %v147_v48 = vpop.eup %146  ;;  %v94_v49 = vadd.f32 %v124_v45, %v84_v46  ;;  %v75_v50 = vmul.f32 %v145_v47, %v43_v22 }
 0x13c   :  { %v76_v51 = vmul.f32 %v147_v48, %v44_v15 }
 0x13d   :  { %v129_v52 = vpack.c.bf16 %v94_v49, %v94_v49  ;;  %v85_v53 = vmul.f32 %v123_v43, %v75_v50 }
 0x13e   :  { %v149_v54 = vpop.eup %148  ;;  %v86_v55 = vmul.f32 %v123_v43, %v76_v51 }
 0x13f   :  { %115 = vst.msk [vmem:[%s209_s3] sm:$0xf] %vm114_vm1, %v129_v52  ;;  %v95_v56 = vadd.f32 %v124_v45, %v85_v53  ;;  %v77_v57 = vmul.f32 %v149_v54, %v45_v23 }
 0x140   :  { %v96_v58 = vadd.f32 %v124_v45, %v86_v55 }
 0x141   :  { %v130_v59 = vpack.c.bf16 %v95_v56, %v95_v56  ;;  %v87_v60 = vmul.f32 %v123_v43, %v77_v57 }
 0x142   :  { %v131_v61 = vpack.c.bf16 %v96_v58, %v96_v58 }
 0x143   :  { %116 = vst.msk [vmem:[%s209_s3 + $0x4] sm:$0xf] %vm114_vm1, %v130_v59  ;;  %v97_v62 = vadd.f32 %v124_v45, %v87_v60 }
 0x144   :  { %117 = vst.msk [vmem:[%s209_s3 + $0x8] sm:$0xf] %vm114_vm1, %v131_v61 }
 0x145   :  { %v132_v63 = vpack.c.bf16 %v97_v62, %v97_v62 }
 0x147   :  { %118 = vst.msk [vmem:[%s209_s3 + $0xc] sm:$0xf] %vm114_vm1, %v132_v63 }

// kernel: _lambda_.19
= control target key start
LH: loop header
LB: loop body
LE: loop exit
PB: predicated region body
PF: predicated region fallthrough
CT: control target
= control target key end

     0   :  { %s347_s1 = inlined_call_operand.vmem [shape: bf16[128,128], index: 1, kind: input, shape index: {}]   ;;  %s348_s0 = inlined_call_operand.vmem [shape: bf16[32,128], index: 0, kind: input, shape index: {}]   ;;  %s349_s2 = inlined_call_operand.vmem [shape: bf16[32,128], index: 2, kind: input, shape index: {}]   ;;  %s350_s3 = inlined_call_operand.vmem [shape: bf16[32,128], index: 3, kind: output, shape index: {}]  }
   0x1   :  { %v275_v0 = vld [vmem:[%s347_s1] sm:$0xff]   ;;  %v276_v1 = vld [vmem:[%s347_s1 + $0x8] sm:$0xff]   ;;  %v277_v2 = vld [vmem:[%s347_s1 + $0x10] sm:$0xff]  }
   0x2   :  { %255 = vmatprep.subr.bf16.mxu0 %v275_v0  ;;  %v278_v3 = vld [vmem:[%s347_s1 + $0x18] sm:$0xff]   ;;  %v283_v4 = vld [vmem:[%s348_s0] sm:$0xff]   ;;  %v280_v6 = vld [vmem:[%s347_s1 + $0x28] sm:$0xff]  }
   0x3   :  { %256 = vmatpush3.bf16.msra.mxu0 %v275_v0  ;;  %271 = vmatprep.mubr.bf16.mxu0 %v283_v4  ;;  %v279_v5 = vld [vmem:[%s347_s1 + $0x20] sm:$0xff]   ;;  %v281_v7 = vld [vmem:[%s347_s1 + $0x30] sm:$0xff]   ;;  %v282_v8 = vld [vmem:[%s347_s1 + $0x38] sm:$0xff]  }
   0x4   :  { %257 = vmatprep.subr.bf16.mxu0 %v276_v1  ;;  %v284_v9 = vld [vmem:[%s348_s0 + $0x8] sm:$0xff]   ;;  %v226_v11 = vld [vmem:[%s349_s2] sm:$0xff]  }
   0x5   :  { %v243_v10 = vld [vmem:[%s349_s2 + $0x8] sm:$0xff]   ;;  %v227_v15 = vunpack.c.l.bf16 %v226_v11  ;;  %v228_v16 = vunpack.c.h.bf16 %v226_v11 }
   0x6   :  { %v231_v12 = vunpack.c.l.bf16 %v243_v10  ;;  %v232_v13 = vunpack.c.h.bf16 %v243_v10 }
   0x7   :  { %258 = vmatpush3.bf16.msra.mxu0 %v276_v1 }
   0x8   :  { %259 = vmatprep.subr.bf16.mxu0 %v277_v2 }
   0xb   :  { %260 = vmatpush3.bf16.msra.mxu0 %v277_v2 }
   0xc   :  { %261 = vmatprep.subr.bf16.mxu0 %v278_v3 }
   0xf   :  { %262 = vmatpush3.bf16.msra.mxu0 %v278_v3 }
  0x10   :  { %263 = vmatprep.subr.bf16.mxu0 %v279_v5 }
  0x13   :  { %264 = vmatpush3.bf16.msra.mxu0 %v279_v5 }
  0x14   :  { %265 = vmatprep.subr.bf16.mxu0 %v280_v6 }
  0x17   :  { %266 = vmatpush3.bf16.msra.mxu0 %v280_v6 }
  0x18   :  { %267 = vmatprep.subr.bf16.mxu0 %v281_v7 }
  0x1b   :  { %268 = vmatpush3.bf16.msra.mxu0 %v281_v7 }
  0x1c   :  { %269 = vmatprep.subr.bf16.mxu0 %v282_v8 }
  0x1f   :  { %270 = vmatpush3.bf16.msra.mxu0 %v282_v8 }
  0x22   :  { %272 = vmatmul.mubr.bf16.vlgmr.msra.gmra.mrb[0].mxu0 %v284_v9 }
  0xf5   :  { %v273_v14 = vpop.f32.mrb[0].mxu0 }
  0xf6   :  { %v141_v17 = vpop.f32.mrb[1].mxu0  ;;  %v181_v19 = vadd.f32 %v273_v14, %v231_v12 }
  0xf7   :  { %v274_v18 = vpop.f32.mrb[2].mxu0  ;;  %v179_v22 = vadd.f32 %v227_v15, %v141_v17 }
  0xf8   :  { %v182_v20 = vadd.f32 %v274_v18, %v232_v13  ;;  %v144_v21 = vpop.f32.mrb[3].mxu0 }
  0xf9   :  { %v180_v23 = vadd.f32 %v228_v16, %v144_v21 }
  0xfa   :  { %v241_v24 = vpack.c.bf16 %v182_v20, %v181_v19 }
  0xfb   :  { %v236_v25 = vpack.c.bf16 %v180_v23, %v179_v22 }
  0xfc   :  { %244 = vst [vmem:[%s350_s3 + $0x8] sm:$0xff] %v241_v24  }
  0xfd   :  { %237 = vst [vmem:[%s350_s3] sm:$0xff] %v236_v25  }

// kernel: _lambda_.21
= control target key start
LH: loop header
LB: loop body
LE: loop exit
PB: predicated region body
PF: predicated region fallthrough
CT: control target
= control target key end

     0   :  { %vm53_vm0 = vcmask 392192   ;;  %s501_s2 = inlined_call_operand.vmem [shape: bf16[48,128], index: 2, kind: input, shape index: {}]   ;;  %s502_s0 = inlined_call_operand.vmem [shape: bf16[32,48], index: 0, kind: input, shape index: {}]   ;;  %s503_s1 = inlined_call_operand.vmem [shape: bf16[48,128], index: 1, kind: input, shape index: {}]   ;;  %s504_s3 = inlined_call_operand.vmem [shape: bf16[32,128], index: 3, kind: output, shape index: {}]  }
   0x1   :  { %v379_v0 = vld [vmem:[%s501_s2] sm:$0xff]   ;;  %v380_v1 = vld [vmem:[%s501_s2 + $0x8] sm:$0xff]   ;;  %v381_v3 = vld [vmem:[%s501_s2 + $0x10] sm:$0xff]  }
   0x2   :  { %369 = vmatprep.subr.bf16.mxu1 %v379_v0  ;;  %v382_v2 = vld [vmem:[%s502_s0] sm:$0xff]   ;;  %v385_v5 = vld [vmem:[%s503_s1 + $0x8] sm:$0xff]   ;;  %v386_v6 = vld [vmem:[%s503_s1 + $0x10] sm:$0xff]  }
   0x3   :  { %370 = vmatpush3.bf16.msra.mxu1 %v379_v0  ;;  %375 = vmatprep.mubr.msk.bf16.mxu1 %vm53_vm0, %v382_v2  ;;  %v384_v4 = vld [vmem:[%s503_s1] sm:$0xff]   ;;  %v383_v7 = vld [vmem:[%s502_s0 + $0x8] sm:$0xff]  }
   0x4   :  { %371 = vmatprep.subr.bf16.mxu1 %v380_v1  ;;  %365 = vmatprep.mubr.msk.bf16.mxu0 %vm53_vm0, %v382_v2 }
   0x5   :  { %359 = vmatprep.subr.bf16.mxu0 %v384_v4 }
   0x6   :  { %360 = vmatpush3.bf16.msra.mxu0 %v384_v4 }
   0x7   :  { %372 = vmatpush3.bf16.msra.mxu1 %v380_v1  ;;  %361 = vmatprep.subr.bf16.mxu0 %v385_v5 }
   0x8   :  { %373 = vmatprep.subr.bf16.mxu1 %v381_v3 }
   0xa   :  { %362 = vmatpush3.bf16.msra.mxu0 %v385_v5 }
   0xb   :  { %374 = vmatpush3.bf16.msra.mxu1 %v381_v3  ;;  %363 = vmatprep.subr.bf16.mxu0 %v386_v6 }
   0xe   :  { %376 = vmatmul.mubr.msk.bf16.vlgmr.msra.gmra.mrb[0].mxu1 %vm53_vm0, %v383_v7  ;;  %364 = vmatpush3.bf16.msra.mxu0 %v386_v6 }
  0x11   :  { %366 = vmatmul.mubr.msk.bf16.vlgmr.msra.gmra.mrb[0].mxu0 %vm53_vm0, %v383_v7 }
  0xe1   :  { %v451_v8 = vpop.f32.mrb[0].mxu1 }
  0xe2   :  { %v454_v9 = vmul.f32 0.70710677, %v451_v8  ;;  %v456_v10 = vpop.f32.mrb[1].mxu1 }
  0xe3   :  { %v459_v11 = vmul.f32 0.70710677, %v456_v10  ;;  %v461_v12 = vpop.f32.mrb[2].mxu1 }
  0xe4   :  { %v188_v13 = vand.u32 2147483647, %v454_v9  ;;  %v465_v14 = vmul.f32 0.70710677, %v461_v12  ;;  %v468_v16 = vpop.f32.mrb[3].mxu1  ;;  %v474_v23 = vpop.f32.mrb[0].mxu0 }
  0xe5   :  { %v186_v15 = vand.u32 2147483647, %v459_v11  ;;  %v472_v20 = vmul.f32 0.70710677, %v468_v16  ;;  %v477_v26 = vpop.f32.mrb[1].mxu0  ;;  %vm268_vm1 = vcmp.lt.f32.partialorder %v454_v9, 0.0 }
  0xe6   :  { %v192_v17 = vmul.f32 0.3275911, %v188_v13  ;;  %v189_v18 = vand.u32 2147483647, %v465_v14  ;;  %v479_v28 = vpop.f32.mrb[2].mxu0  ;;  %v244_v32 = vsub.f32 0.0, %v188_v13 }
  0xe7   :  { %v190_v19 = vmul.f32 0.3275911, %v186_v15  ;;  %v187_v25 = vand.u32 2147483647, %v472_v20  ;;  %v481_v30 = vpop.f32.mrb[3].mxu0  ;;  %v242_v33 = vsub.f32 0.0, %v186_v15 }
  0xe8   :  { %v196_v21 = vadd.f32 1.0, %v192_v17  ;;  %v193_v22 = vmul.f32 0.3275911, %v189_v18  ;;  %v248_v35 = vmul.f32 %v244_v32, %v188_v13  ;;  %v245_v36 = vsub.f32 0.0, %v189_v18 }
  0xe9   :  { %v194_v24 = vadd.f32 1.0, %v190_v19  ;;  %v191_v29 = vmul.f32 0.3275911, %v187_v25  ;;  %v246_v38 = vmul.f32 %v242_v33, %v186_v15  ;;  %v243_v40 = vsub.f32 0.0, %v187_v25 }
  0xea   :  { %387 = vrcp.f32 %v196_v21  ;;  %v197_v27 = vadd.f32 1.0, %v193_v22  ;;  %v254_v44 = vmul.f32 1.442695, %v248_v35  ;;  %v249_v45 = vmul.f32 %v245_v36, %v189_v18 }
  0xeb   :  { %389 = vrcp.f32 %v194_v24  ;;  %v195_v31 = vadd.f32 1.0, %v191_v29  ;;  %v250_v47 = vmul.f32 1.442695, %v246_v38  ;;  %v247_v51 = vmul.f32 %v243_v40, %v187_v25 }
  0xec   :  { %391 = vrcp.f32 %v197_v27  ;;  %v256_v56 = vmul.f32 1.442695, %v249_v45  ;;  %vm266_vm2 = vcmp.lt.f32.partialorder %v459_v11, 0.0  ;;  %vm269_vm3 = vcmp.lt.f32.partialorder %v465_v14, 0.0 }
  0xed   :  { %393 = vrcp.f32 %v195_v31  ;;  %v252_v61 = vmul.f32 1.442695, %v247_v51  ;;  %v281_v11 = vmul.f32 0.5, %v461_v12  ;;  %vm267_vm4 = vcmp.lt.f32.partialorder %v472_v20, 0.0 }
  0xee   :  { %395 = vpow2.f32 %v254_v44 }
  0xef   :  { %397 = vpow2.f32 %v250_v47  ;;  %v280_v47 = vmul.f32 0.5, %v451_v8 }
  0xf0   :  { %399 = vpow2.f32 %v256_v56 }
  0xf1   :  { %401 = vpow2.f32 %v252_v61 }
  0xf4   :  { %v388_v34 = vpop.eup %387 }
  0xf5   :  { %v390_v37 = vpop.eup %389  ;;  %v208_v39 = vmul.f32 1.0614054, %v388_v34 }
  0xf6   :  { %v206_v41 = vmul.f32 1.0614054, %v390_v37  ;;  %v392_v43 = vpop.eup %391 }
  0xf7   :  { %v212_v42 = vadd.f32 -1.4531521, %v208_v39  ;;  %v209_v49 = vmul.f32 1.0614054, %v392_v43  ;;  %v394_v50 = vpop.eup %393 }
  0xf8   :  { %v210_v46 = vadd.f32 -1.4531521, %v206_v41  ;;  %v207_v55 = vmul.f32 1.0614054, %v394_v50  ;;  %v396_v22 = vpop.eup %395 }
  0xf9   :  { %v216_v48 = vmul.f32 %v388_v34, %v212_v42  ;;  %v213_v54 = vadd.f32 -1.4531521, %v209_v49  ;;  %v398_v25 = vpop.eup %397 }
  0xfa   :  { %v214_v52 = vmul.f32 %v390_v37, %v210_v46  ;;  %v211_v60 = vadd.f32 -1.4531521, %v207_v55  ;;  %v400_v38 = vpop.eup %399 }
  0xfb   :  { %v220_v53 = vadd.f32 1.4214138, %v216_v48  ;;  %v217_v59 = vmul.f32 %v392_v43, %v213_v54  ;;  %v402_v44 = vpop.eup %401 }
  0xfc   :  { %v218_v57 = vadd.f32 1.4214138, %v214_v52  ;;  %v215_v1 = vmul.f32 %v394_v50, %v211_v60 }
  0xfd   :  { %v224_v58 = vmul.f32 %v388_v34, %v220_v53  ;;  %v221_v0 = vadd.f32 1.4214138, %v217_v59 }
  0xfe   :  { %v222_v62 = vmul.f32 %v390_v37, %v218_v57  ;;  %v219_v5 = vadd.f32 1.4214138, %v215_v1 }
  0xff   :  { %v228_v63 = vadd.f32 -0.28449672, %v224_v58  ;;  %v225_v4 = vmul.f32 %v392_v43, %v221_v0 }
 0x100   :  { %v226_v2 = vadd.f32 -0.28449672, %v222_v62  ;;  %v223_v15 = vmul.f32 %v394_v50, %v219_v5 }
 0x101   :  { %v232_v3 = vmul.f32 %v388_v34, %v228_v63  ;;  %v229_v13 = vadd.f32 -0.28449672, %v225_v4 }
 0x102   :  { %v230_v6 = vmul.f32 %v390_v37, %v226_v2  ;;  %v227_v21 = vadd.f32 -0.28449672, %v223_v15 }
 0x103   :  { %v236_v7 = vadd.f32 0.2548296, %v232_v3  ;;  %v233_v19 = vmul.f32 %v392_v43, %v229_v13 }
 0x104   :  { %v234_v17 = vadd.f32 0.2548296, %v230_v6  ;;  %v231_v31 = vmul.f32 %v394_v50, %v227_v21 }
 0x105   :  { %v240_v18 = vmul.f32 %v388_v34, %v236_v7  ;;  %v237_v29 = vadd.f32 0.2548296, %v233_v19 }
 0x106   :  { %v238_v24 = vmul.f32 %v390_v37, %v234_v17  ;;  %v235_v36 = vadd.f32 0.2548296, %v231_v31 }
 0x107   :  { %v260_v27 = vmul.f32 %v396_v22, %v240_v18  ;;  %v241_v35 = vmul.f32 %v392_v43, %v237_v29  ;;  %v278_v43 = vmul.f32 0.5, %v456_v10  ;;  %v279_v10 = vmul.f32 0.5, %v468_v16 }
 0x108   :  { %v258_v32 = vmul.f32 %v398_v25, %v238_v24  ;;  %v239_v42 = vmul.f32 %v394_v50, %v235_v36 }
 0x109   :  { %v264_v33 = vsub.f32 1.0, %v260_v27  ;;  %v261_v41 = vmul.f32 %v400_v38, %v241_v35 }
 0x10a   :  { %v262_v39 = vsub.f32 1.0, %v258_v32  ;;  %v259_v46 = vmul.f32 %v402_v44, %v239_v42 }
 0x10b   :  { %v272_v40 = vsub.f32 0.0, %v264_v33  ;;  %v265_v45 = vsub.f32 1.0, %v261_v41 }
 0x10c   :  { %v270_v34 = vsub.f32 0.0, %v262_v39  ;;  %v263_v53 = vsub.f32 1.0, %v259_v46 }
 0x10d   :  { %v276_v37 = vsel %vm268_vm1, %v272_v40, %v264_v33  ;;  %v273_v52 = vsub.f32 0.0, %v265_v45 }
 0x10e   :  { %v284_v48 = vadd.f32 1.0, %v276_v37  ;;  %v274_v49 = vsel %vm266_vm2, %v270_v34, %v262_v39  ;;  %v271_v55 = vsub.f32 0.0, %v263_v53 }
 0x10f   :  { %v282_v51 = vadd.f32 1.0, %v274_v49  ;;  %v277_v9 = vsel %vm269_vm3, %v273_v52, %v265_v45 }
 0x110   :  { %v288_v50 = vmul.f32 %v284_v48, %v280_v47  ;;  %v285_v8 = vadd.f32 1.0, %v277_v9  ;;  %v275_v58 = vsel %vm267_vm4, %v271_v55, %v263_v53 }
 0x111   :  { %v286_v54 = vmul.f32 %v282_v51, %v278_v43  ;;  %v283_v60 = vadd.f32 1.0, %v275_v58 }
 0x112   :  { %v292_v56 = vmul.f32 %v474_v23, %v288_v50  ;;  %v289_v59 = vmul.f32 %v285_v8, %v281_v11 }
 0x113   :  { %v290_v57 = vmul.f32 %v286_v54, %v477_v26  ;;  %v287_v61 = vmul.f32 %v283_v60, %v279_v10 }
 0x114   :  { %v293_v14 = vmul.f32 %v479_v28, %v289_v59 }
 0x115   :  { %v291_v63 = vmul.f32 %v287_v61, %v481_v30 }
 0x116   :  { %v346_v62 = vpack.c.bf16 %v293_v14, %v292_v56 }
 0x117   :  { %v341_v12 = vpack.c.bf16 %v291_v63, %v290_v57 }
 0x118   :  { %348 = vst [vmem:[%s504_s3 + $0x8] sm:$0xff] %v346_v62  }
 0x119   :  { %342 = vst [vmem:[%s504_s3] sm:$0xff] %v341_v12  }

// kernel: _lambda_.18
= control target key start
LH: loop header
LB: loop body
LE: loop exit
PB: predicated region body
PF: predicated region fallthrough
CT: control target
= control target key end

     0   :  { %s1741_s15 = smov 0   ;;  %s1743_s16 = smov 0   ;;  %s2141_s0 = inlined_call_operand.vmem [shape: bf16[2,16,64], index: 0, kind: input, shape index: {}]   ;;  %s2142_s1 = inlined_call_operand.vmem [shape: bf16[2,16,128], index: 1, kind: input, shape index: {}]   ;;  %s2143_s2 = inlined_call_operand.vmem [shape: bf16[2,128,16], index: 2, kind: input, shape index: {}]   ;;  %s2144_s3 = inlined_call_operand.vmem [shape: bf16[4,16,128], index: 3, kind: input, shape index: {}]   ;;  %s2145_s4 = inlined_call_operand.vmem [shape: bf16[2,16,64], index: 4, kind: output, shape index: {}]  }
   0x1   :  { %s1745_s17 = smov 0  }
   0x2 LB: > { %s33_s18 = sadd.s32 1, %s1700_s16  ;;  %p1370_p0 = scmp.ge.s32.totalorder %s1704_s17, 1  ;;  %s1704_s17 = sphi %s1745_s17, %s14_s17   ;;  %s1700_s16 = sphi %s1743_s16, %s2147_s16   ;;  %s1696_s15 = sphi %s1741_s15, %s2146_s15  }
   0x3   : > { %p35_p1 = scmp.ge.s32.totalorder %s33_s18, 2  ;;  %p238_p2 = scmp.lt.s32.totalorder %s1704_s17, 3 }
   0x5   : > { %s2149_s18 = smov (%p35_p1, %s33_s18), 0  ;;  %p239_p3 = pnand %p1370_p0, %p238_p2 }
   0x6   : > { %p298_p4 = scmp.lt.s32.totalorder (!%p239_p3), %s1696_s15, 1  ;;  %vm366_vm0 = vcmask (!%p239_p3), 130048   ;;  %v1706_v0 = vmov (!%p239_p3), 0.0   ;;  %vm1707_vm1 = vmmov (!%p239_p3), 0   ;;  %s1708_s30 = smov (!%p239_p3), 112   ;;  %vm349_vm2 = vcmask (!%p239_p3), 7168  }
   0x7   : > { %242 = sbr.rel (%p239_p3) target bundleno = 1604 (0x644), region = 36  ;;  %1484 = vmatprep.subr.bf16.mxu1 (!%p239_p3), %v1706_v0  ;;  %1486 = vmatprep.mubr.msk.bf16.mxu1 (!%p239_p3), %vm1707_vm1, %v1706_v0  ;;  %367 = vst.msk [vmem:[#allocation4] sm:$0xff] (!%p239_p3), %vm366_vm0, %v1706_v0  ;;  %368 = vst.msk [vmem:[#allocation4 + $0x8] sm:$0xff] (!%p239_p3), %vm366_vm0, %v1706_v0  ;;  %v1709_v4 = vmov (!%p239_p3), -1e+30   ;;  %v1422_v5 = vld [vmem:[%s2144_s3] sm:$0xff] (!%p239_p3)  }
   0x8   : > { %369 = vst.msk [vmem:[#allocation4 + $0x10] sm:$0xff] (!%p239_p3), %vm366_vm0, %v1706_v0  ;;  %370 = vst.msk [vmem:[#allocation4 + $0x18] sm:$0xff] (!%p239_p3), %vm366_vm0, %v1706_v0  ;;  %1510 = vmatprep.subr.bf16.mxu0 (!%p239_p3), %v1706_v0  ;;  %1512 = vmatprep.mubr.msk.bf16.mxu0 (!%p239_p3), %vm1707_vm1, %v1706_v0  ;;  %v1423_v6 = vunpack.c.l.bf16 (!%p239_p3), %v1422_v5  ;;  %v1424_v7 = vunpack.c.h.bf16 (!%p239_p3), %v1422_v5  ;;  %v1710_v14 = vmov (!%p239_p3), 0   ;;  %v1437_v15 = vld [vmem:[%s2144_s3 + $0x8] sm:$0xff] (!%p239_p3)   ;;  %s1711_s9 = smov (!%p239_p3), 96   ;;  %s1712_s10 = smov (!%p239_p3), 80  }
   0x9   : > { %371 = vst.msk [vmem:[#allocation4 + $0x20] sm:$0xff] (!%p239_p3), %vm366_vm0, %v1706_v0  ;;  %372 = vst.msk [vmem:[#allocation4 + $0x28] sm:$0xff] (!%p239_p3), %vm366_vm0, %v1706_v0  ;;  %1622 = vset.pattern.permute.xlu1 (!%p239_p3), %v1710_v14  ;;  %1623 = vset.pattern.permute.xlu0 (!%p239_p3), %v1710_v14  ;;  %v1427_v16 = vunpack.c.l.bf16 (!%p239_p3), %v1437_v15  ;;  %v1428_v20 = vunpack.c.h.bf16 (!%p239_p3), %v1437_v15  ;;  %vm1113_vm3 = vcmask (!%p239_p3), 125952   ;;  %vm1148_vm4 = vcmask (!%p239_p3), 257152   ;;  %s1714_s22 = smov (!%p239_p3), 32  }
   0xa   : > { %373 = vst.msk [vmem:[#allocation4 + $0x30] sm:$0xff] (!%p239_p3), %vm366_vm0, %v1706_v0  ;;  %374 = vst.msk [vmem:[#allocation4 + $0x38] sm:$0xff] (!%p239_p3), %vm366_vm0, %v1706_v0  ;;  %vm1183_vm5 = vcmask (!%p239_p3), 388352   ;;  %vm1218_vm6 = vcmask (!%p239_p3), 519552  }
   0xb   : > { %350 = vst.msk [vmem:[#allocation2] sm:$0xff] (!%p239_p3), %vm349_vm2, %v1709_v4  ;;  %351 = vst.msk [vmem:[#allocation2 + $0x8] sm:$0xff] (!%p239_p3), %vm349_vm2, %v1709_v4 }
   0xc   : > { %352 = vst.msk [vmem:[#allocation2 + $0x10] sm:$0xff] (!%p239_p3), %vm349_vm2, %v1709_v4  ;;  %353 = vst.msk [vmem:[#allocation2 + $0x18] sm:$0xff] (!%p239_p3), %vm349_vm2, %v1709_v4 }
   0xd   : > { %354 = vst.msk [vmem:[#allocation2 + $0x20] sm:$0xff] (!%p239_p3), %vm349_vm2, %v1709_v4  ;;  %355 = vst.msk [vmem:[#allocation2 + $0x28] sm:$0xff] (!%p239_p3), %vm349_vm2, %v1709_v4 }
   0xe   : > { %s2151_s15 = smov (!%p298_p4, %s1696_s15), 1  ;;  %356 = vst.msk [vmem:[#allocation2 + $0x30] sm:$0xff] %vm349_vm2, %v1709_v4  ;;  %357 = vst.msk [vmem:[#allocation2 + $0x38] sm:$0xff] %vm349_vm2, %v1709_v4 }
   0xf   : > { %s1782_s19 = sshll.u32 %s2151_s15, 3  ;;  %s1411_s20 = sshll.u32 %s2151_s15, 6  ;;  %358 = vst.msk [vmem:[#allocation3] sm:$0xff] %vm349_vm2, %v1706_v0  ;;  %359 = vst.msk [vmem:[#allocation3 + $0x8] sm:$0xff] %vm349_vm2, %v1706_v0 }
  0x10   : > { %s314_s23 = scalar_lea.vmem %s2142_s1, %s1782_s19  ;;  %s305_s26 = scalar_lea.vmem %s2141_s0, %s1782_s19  ;;  %360 = vst.msk [vmem:[#allocation3 + $0x10] sm:$0xff] %vm349_vm2, %v1706_v0  ;;  %361 = vst.msk [vmem:[#allocation3 + $0x18] sm:$0xff] %vm349_vm2, %v1706_v0 }
  0x11   : > { %v1788_v1 = vld [vmem:[%s314_s23] sm:$0xff]   ;;  %s1797_s29 = scalar_lea.vmem %s2143_s2, %s1411_s20  ;;  %362 = vst.msk [vmem:[#allocation3 + $0x20] sm:$0xff] %vm349_vm2, %v1706_v0  ;;  %363 = vst.msk [vmem:[#allocation3 + $0x28] sm:$0xff] %vm349_vm2, %v1706_v0  ;;  %s2116_s21 = scalar_lea.vmem %s2145_s4, %s1782_s19 }
  0x12   : > { %v1799_v2 = vld [vmem:[%s305_s26] sm:$0xff]   ;;  %1485 = vmatpush3.bf16.msra.mxu1 %v1788_v1  ;;  %1511 = vmatpush3.bf16.msra.mxu0 %v1788_v1  ;;  %364 = vst.msk [vmem:[#allocation3 + $0x30] sm:$0xff] %vm349_vm2, %v1706_v0  ;;  %365 = vst.msk [vmem:[#allocation3 + $0x38] sm:$0xff] %vm349_vm2, %v1706_v0  ;;  %v1863_v25 = vld [vmem:[%s1797_s29 + $0x8] sm:$0xff]   ;;  %s1713_s19 = smov 16   ;;  %s1715_s23 = smov 48  }
  0x13   : > { %613 = vrot.lane.b32.xlu0 %v1799_v2, %s1708_s30  ;;  %1490 = vmatprep.subr.bf16.mxu1 %v1706_v0  ;;  %v1856_v24 = vld [vmem:[%s1797_s29] sm:$0xff]   ;;  %v1869_v27 = vld [vmem:[%s1797_s29 + $0x10] sm:$0xff]   ;;  %v1874_v29 = vld [vmem:[#allocation2 + $0x8] sm:$0xff] }
  0x14   : > { %1516 = vmatprep.subr.bf16.mxu0 %v1706_v0  ;;  %v1865_v26 = vld [vmem:[#allocation2] sm:$0xff]  ;;  %v1891_v34 = vld [vmem:[%s1797_s29 + $0x18] sm:$0xff]   ;;  %v1910_v37 = vld [vmem:[%s1797_s29 + $0x28] sm:$0xff]  }
  0x15   : > { %1487 = vmatmul.mubr.msk.bf16.vlgmr.msra.gmra.mrb[0].mxu1 %vm366_vm0, %v1799_v2  ;;  %v1903_v36 = vld [vmem:[%s1797_s29 + $0x20] sm:$0xff]   ;;  %v1915_v38 = vld [vmem:[%s1797_s29 + $0x30] sm:$0xff]   ;;  %v1922_v39 = vld [vmem:[%s1797_s29 + $0x38] sm:$0xff]  }
  0x16   : > { %1506 = vmatprep.mubr.msk.bf16.mxu1 %vm1707_vm1, %v1706_v0  ;;  %1491 = vmatpush3.bf16.msra.mxu1 %v1856_v24  ;;  %v1931_v40 = vld [vmem:[#allocation2 + $0x10] sm:$0xff]  ;;  %v1936_v43 = vld [vmem:[#allocation2 + $0x18] sm:$0xff] }
  0x17   : > { %1492 = vmatprep.subr.bf16.mxu1 %v1706_v0 }
  0x1a   : > { %1493 = vmatpush3.bf16.msra.mxu1 %v1863_v25 }
  0x1b   : > { %1494 = vmatprep.subr.bf16.mxu1 %v1706_v0 }
  0x1e   : > { %1495 = vmatpush3.bf16.msra.mxu1 %v1869_v27 }
  0x1f   : > { %1496 = vmatprep.subr.bf16.mxu1 %v1706_v0 }
  0x22   : > { %1497 = vmatpush3.bf16.msra.mxu1 %v1891_v34 }
  0x23   : > { %1498 = vmatprep.subr.bf16.mxu1 %v1706_v0 }
  0x26   : > { %1499 = vmatpush3.bf16.msra.mxu1 %v1903_v36 }
  0x27   : > { %1500 = vmatprep.subr.bf16.mxu1 %v1706_v0 }
  0x2a   : > { %1501 = vmatpush3.bf16.msra.mxu1 %v1910_v37 }
  0x2b   : > { %1502 = vmatprep.subr.bf16.mxu1 %v1706_v0 }
  0x2e   : > { %1503 = vmatpush3.bf16.msra.mxu1 %v1915_v38 }
  0x2f   : > { %1504 = vmatprep.subr.bf16.mxu1 %v1706_v0 }
  0x32   : > { %1505 = vmatpush3.bf16.msra.mxu1 %v1922_v39 }
  0x33   : > { %1536 = vmatprep.subr.bf16.mxu1 %v1706_v0 }
  0x85   : > { %v614_v3 = vpop.permute.xlu0 %613 }
  0x86   : > { %1513 = vmatmul.mubr.msk.bf16.vlgmr.msra.gmra.mrb[0].mxu0 %vm366_vm0, %v614_v3 }
  0x87   : > { %1532 = vmatprep.mubr.msk.bf16.mxu0 %vm1707_vm1, %v1706_v0  ;;  %1517 = vmatpush3.bf16.msra.mxu0 %v1856_v24 }
  0x88   : > { %1518 = vmatprep.subr.bf16.mxu0 %v1706_v0 }
  0x8b   : > { %1519 = vmatpush3.bf16.msra.mxu0 %v1863_v25 }
  0x8c   : > { %1520 = vmatprep.subr.bf16.mxu0 %v1706_v0 }
  0x8f   : > { %1521 = vmatpush3.bf16.msra.mxu0 %v1869_v27 }
  0x90   : > { %1522 = vmatprep.subr.bf16.mxu0 %v1706_v0 }
  0x93   : > { %1523 = vmatpush3.bf16.msra.mxu0 %v1891_v34 }
  0x94   : > { %1524 = vmatprep.subr.bf16.mxu0 %v1706_v0 }
  0x97   : > { %1525 = vmatpush3.bf16.msra.mxu0 %v1903_v36 }
  0x98   : > { %1526 = vmatprep.subr.bf16.mxu0 %v1706_v0 }
  0x9b   : > { %1527 = vmatpush3.bf16.msra.mxu0 %v1910_v37 }
  0x9c   : > { %1528 = vmatprep.subr.bf16.mxu0 %v1706_v0 }
  0x9f   : > { %1529 = vmatpush3.bf16.msra.mxu0 %v1915_v38 }
  0xa0   : > { %1530 = vmatprep.subr.bf16.mxu0 %v1706_v0 }
  0xa3   : > { %1531 = vmatpush3.bf16.msra.mxu0 %v1922_v39 }
  0xa4   : > { %1562 = vmatprep.subr.bf16.mxu0 %v1706_v0 }
  0xe8   : > { %v448_v8 = vpop.f32.mrb[0].mxu1 }
  0xe9   : > { %v1840_v9 = vadd.f32 %v1423_v6, %v448_v8  ;;  %v1488_v10 = vpop.f32.mrb[1].mxu1 }
  0xea   : > { %v451_v11 = vpop.f32.mrb[2].mxu1 }
  0xeb   : > { %457 = vmax.xlane.f32.xlu0 %v1840_v9  ;;  %v1843_v12 = vadd.f32 %v1424_v7, %v451_v11  ;;  %v1489_v13 = vpop.f32.mrb[3].mxu1 }
  0xed   : > { %459 = vmax.xlane.f32.xlu1 %v1843_v12 }
 0x159   : > { %v652_v17 = vpop.f32.mrb[0].mxu0 }
 0x15a   : > { %v1849_v18 = vadd.f32 %v1427_v16, %v652_v17  ;;  %v1514_v19 = vpop.f32.mrb[1].mxu0 }
 0x15b   : > { %v655_v21 = vpop.f32.mrb[2].mxu0 }
 0x15c   : > { %v1515_v22 = vpop.f32.mrb[3].mxu0  ;;  %662 = vmax.xlane.f32.xlu1 %v1849_v18  ;;  %v1852_v23 = vadd.f32 %v1428_v20, %v655_v21  ;;  %v1439_v20 = vld [vmem:[%s2144_s3 + $0x18] sm:$0xff]  }
 0x15d   : > { %v1435_v22 = vunpack.c.l.bf16 %v1439_v20 }
 0x160   : > { %664 = vmax.xlane.f32.xlu1 %v1852_v23 }
 0x178   : > { %v458_v28 = vpop.xlane.xlu0 %457 }
 0x179   : > { %v1877_v30 = vmax.f32 %v1865_v26, %v458_v28 }
 0x17a   : > { %v460_v31 = vpop.xlane.xlu1 %459 }
 0x17b   : > { %v463_v32 = vsub.f32 %v1865_v26, %v1877_v30  ;;  %606 = vst.msk [vmem:[#allocation2] sm:$0xff] %vm349_vm2, %v1877_v30  ;;  %471 = vperm.xlu1 %1622, %v1877_v30   ;;  %v1887_v33 = vmax.f32 %v1874_v29, %v460_v31  ;;  %v486_v26 = vld [vmem:[#allocation3 + $0x8] sm:$0xff] }
 0x17d   : > { %v464_v35 = vsub.f32 %v1874_v29, %v1887_v33  ;;  %607 = vst.msk [vmem:[#allocation2 + $0x8] sm:$0xff] %vm349_vm2, %v1887_v33 }
 0x17f   : > { %476 = vperm.xlu1 %1622, %v1887_v33  }
 0x1e9   : > { %v663_v41 = vpop.xlane.xlu1 %662 }
 0x1ea   : > { %v1934_v42 = vmax.f32 %v1931_v40, %v663_v41 }
 0x1ec   : > { %v668_v44 = vsub.f32 %v1931_v40, %v1934_v42  ;;  %764 = vst.msk [vmem:[#allocation2 + $0x10] sm:$0xff] %vm349_vm2, %v1934_v42  ;;  %676 = vperm.xlu1 %1622, %v1934_v42  }
 0x1ed   : > { %v665_v45 = vpop.xlane.xlu1 %664 }
 0x1ee   : > { %v1944_v46 = vmax.f32 %v1936_v43, %v665_v45 }
 0x1f0   : > { %v669_v47 = vsub.f32 %v1936_v43, %v1944_v46  ;;  %765 = vst.msk [vmem:[#allocation2 + $0x18] sm:$0xff] %vm349_vm2, %v1944_v46  ;;  %681 = vperm.xlu0 %1623, %v1944_v46   ;;  %771 = vrot.lane.b32.xlu1 %v1799_v2, %s1711_s9 }
 0x1f4   : > { %929 = vrot.lane.b32.xlu1 %v1799_v2, %s1712_s10 }
 0x1fa   : > { %v472_v48 = vpop.permute.xlu1 %471 }
 0x1fb   : > { %v479_v49 = vsub.f32 %v1840_v9, %v472_v48  ;;  %v1438_v9 = vld [vmem:[%s2144_s3 + $0x10] sm:$0xff]  }
 0x1fc   : > { %v1431_v10 = vunpack.c.l.bf16 %v1438_v9  ;;  %v1432_v11 = vunpack.c.h.bf16 %v1438_v9 }
 0x1fd   : > { %v481_v50 = vmul.f32 1.442695, %v479_v49 }
 0x1fe   : > { %v477_v51 = vpop.permute.xlu1 %476 }
 0x1ff   : > { %v480_v52 = vsub.f32 %v1843_v12, %v477_v51  ;;  %1634 = vpow2.f32 %v481_v50  ;;  %v2050_v50 = vld [vmem:[#allocation2 + $0x30] sm:$0xff] }
 0x201   : > { %v483_v53 = vmul.f32 1.442695, %v480_v52 }
 0x203   : > { %1636 = vpow2.f32 %v483_v53  ;;  %v977_v53 = vld [vmem:[#allocation2 + $0x38] sm:$0xff] }
 0x209   : > { %v1955_v54 = vpop.eup %1634 }
 0x20d   : > { %v1957_v55 = vpop.eup %1636 }
 0x20e   : > { %v512_v56 = vpack.c.bf16 %v1957_v55, %v1955_v54 }
 0x210   : > { %1507 = vmatmul.mubr.bf16.vlgmr.msra.gmra.mrb[4].mxu1 %v512_v56 }
 0x211   : > { %1537 = vmatpush3.bf16.msra.mxu1 %v1788_v1  ;;  %1538 = vmatprep.mubr.msk.bf16.mxu1 %vm1707_vm1, %v1706_v0 }
 0x212   : > { %1542 = vmatprep.subr.bf16.mxu1 %v1706_v0 }
 0x26b   : > { %v677_v57 = vpop.permute.xlu1 %676 }
 0x26c   : > { %v684_v58 = vsub.f32 %v1849_v18, %v677_v57 }
 0x26e   : > { %v686_v59 = vmul.f32 1.442695, %v684_v58 }
 0x26f   : > { %v682_v60 = vpop.permute.xlu0 %681  ;;  %v772_v61 = vpop.permute.xlu1 %771 }
 0x270   : > { %v685_v62 = vsub.f32 %v1852_v23, %v682_v60  ;;  %1539 = vmatmul.mubr.msk.bf16.vlgmr.msra.gmra.mrb[8].mxu1 %vm366_vm0, %v772_v61  ;;  %1638 = vpow2.f32 %v686_v59  ;;  %v467_v59 = vmul.f32 1.442695, %v464_v35  ;;  %v670_v60 = vmul.f32 1.442695, %v668_v44 }
 0x271   : > { %1543 = vmatpush3.bf16.msra.mxu1 %v1856_v24  ;;  %1558 = vmatprep.mubr.msk.bf16.mxu1 %vm1707_vm1, %v1706_v0 }
 0x272   : > { %v688_v63 = vmul.f32 1.442695, %v685_v62  ;;  %1544 = vmatprep.subr.bf16.mxu1 %v1706_v0 }
 0x273   : > { %v930_v5 = vpop.permute.xlu1 %929 }
 0x274   : > { %1640 = vpow2.f32 %v688_v63 }
 0x275   : > { %1545 = vmatpush3.bf16.msra.mxu1 %v1863_v25  ;;  %1642 = vpow2.f32 %v467_v59 }
 0x276   : > { %1546 = vmatprep.subr.bf16.mxu1 %v1706_v0  ;;  %1644 = vpow2.f32 %v670_v60 }
 0x279   : > { %1547 = vmatpush3.bf16.msra.mxu1 %v1869_v27 }
 0x27a   : > { %1548 = vmatprep.subr.bf16.mxu1 %v1706_v0  ;;  %v1976_v2 = vpop.eup %1638 }
 0x27d   : > { %1549 = vmatpush3.bf16.msra.mxu1 %v1891_v34 }
 0x27e   : > { %v1979_v3 = vpop.eup %1640  ;;  %1550 = vmatprep.subr.bf16.mxu1 %v1706_v0 }
 0x27f   : > { %v718_v4 = vpack.c.bf16 %v1979_v3, %v1976_v2  ;;  %v1643_v63 = vpop.eup %1642 }
 0x281   : > { %1533 = vmatmul.mubr.bf16.vlgmr.msra.gmra.mrb[4].mxu0 %v718_v4  ;;  %1551 = vmatpush3.bf16.msra.mxu1 %v1903_v36 }
 0x282   : > { %1563 = vmatpush3.bf16.msra.mxu0 %v1788_v1  ;;  %1564 = vmatprep.mubr.msk.bf16.mxu0 %vm1707_vm1, %v1706_v0 }
 0x283   : > { %1552 = vmatprep.subr.bf16.mxu1 %v1706_v0  ;;  %1568 = vmatprep.subr.bf16.mxu0 %v1706_v0 }
 0x285   : > { %1553 = vmatpush3.bf16.msra.mxu1 %v1910_v37 }
 0x286   : > { %1554 = vmatprep.subr.bf16.mxu1 %v1706_v0 }
 0x289   : > { %1565 = vmatmul.mubr.msk.bf16.vlgmr.msra.gmra.mrb[8].mxu0 %vm366_vm0, %v930_v5  ;;  %1555 = vmatpush3.bf16.msra.mxu1 %v1915_v38 }
 0x28a   : > { %1569 = vmatpush3.bf16.msra.mxu0 %v1856_v24  ;;  %1556 = vmatprep.subr.bf16.mxu1 %v1706_v0 }
 0x28b   : > { %1570 = vmatprep.subr.bf16.mxu0 %v1706_v0  ;;  %1584 = vmatprep.mubr.msk.bf16.mxu0 %vm1707_vm1, %v1706_v0 }
 0x28d   : > { %1557 = vmatpush3.bf16.msra.mxu1 %v1922_v39 }
 0x28e   : > { %1571 = vmatpush3.bf16.msra.mxu0 %v1863_v25 }
 0x28f   : > { %1572 = vmatprep.subr.bf16.mxu0 %v1706_v0 }
 0x292   : > { %1573 = vmatpush3.bf16.msra.mxu0 %v1869_v27  ;;  %v1436_v27 = vunpack.c.h.bf16 %v1439_v20 }
 0x293   : > { %1574 = vmatprep.subr.bf16.mxu0 %v1706_v0 }
 0x296   : > { %1575 = vmatpush3.bf16.msra.mxu0 %v1891_v34 }
 0x297   : > { %1576 = vmatprep.subr.bf16.mxu0 %v1706_v0 }
 0x29a   : > { %1577 = vmatpush3.bf16.msra.mxu0 %v1903_v36  ;;  %v2039_v36 = vld [vmem:[#allocation2 + $0x20] sm:$0xff] }
 0x29b   : > { %1578 = vmatprep.subr.bf16.mxu0 %v1706_v0 }
 0x29e   : > { %1579 = vmatpush3.bf16.msra.mxu0 %v1910_v37 }
 0x29f   : > { %1580 = vmatprep.subr.bf16.mxu0 %v1706_v0 }
 0x2a2   : > { %1581 = vmatpush3.bf16.msra.mxu0 %v1915_v38  ;;  %v819_v38 = vld [vmem:[#allocation2 + $0x28] sm:$0xff] }
 0x2a3   : > { %1582 = vmatprep.subr.bf16.mxu0 %v1706_v0 }
 0x2a6   : > { %1583 = vmatpush3.bf16.msra.mxu0 %v1922_v39 }
 0x2e3   : > { %v2013_v1 = vpop.f32.mrb[4].mxu1 }
 0x2e4   : > { %v1508_v6 = vpop.f32.mrb[5].mxu1 }
 0x2e5   : > { %v2015_v7 = vpop.f32.mrb[6].mxu1 }
 0x2e6   : > { %v1509_v8 = vpop.f32.mrb[7].mxu1 }
 0x343   : > { %v810_v12 = vpop.f32.mrb[8].mxu1 }
 0x344   : > { %v2020_v13 = vadd.f32 %v1431_v10, %v810_v12  ;;  %v1540_v14 = vpop.f32.mrb[9].mxu1 }
 0x345   : > { %v813_v15 = vpop.f32.mrb[10].mxu1 }
 0x346   : > { %820 = vmax.xlane.f32.xlu1 %v2020_v13  ;;  %v2023_v0 = vadd.f32 %v1432_v11, %v813_v15  ;;  %v1541_v16 = vpop.f32.mrb[11].mxu1 }
 0x347   : > { %v465_v16 = vmul.f32 1.442695, %v463_v32  ;;  %v488_v32 = vmul.f32 %v1643_v63, %v486_v26 }
 0x348   : > { %822 = vmax.xlane.f32.xlu0 %v2023_v0 }
 0x354   : > { %v2026_v17 = vpop.f32.mrb[4].mxu0 }
 0x355   : > { %v1534_v18 = vpop.f32.mrb[5].mxu0 }
 0x356   : > { %v2028_v19 = vpop.f32.mrb[6].mxu0  ;;  %v672_v18 = vmul.f32 1.442695, %v669_v47 }
 0x357   : > { %v1535_v21 = vpop.f32.mrb[7].mxu0 }
 0x35c   : > { %v968_v23 = vpop.f32.mrb[8].mxu0 }
 0x35d   : > { %v2033_v24 = vadd.f32 %v1435_v22, %v968_v23  ;;  %v1566_v25 = vpop.f32.mrb[9].mxu0 }
 0x35e   : > { %v971_v28 = vpop.f32.mrb[10].mxu0  ;;  %v692_v25 = vld [vmem:[#allocation3 + $0x18] sm:$0xff] }
 0x35f   : > { %v1567_v31 = vpop.f32.mrb[11].mxu0  ;;  %978 = vmax.xlane.f32.xlu1 %v2033_v24  ;;  %v2036_v34 = vadd.f32 %v1436_v27, %v971_v28 }
 0x360   : > { %v485_v31 = vld [vmem:[#allocation3] sm:$0xff] }
 0x363   : > { %980 = vmax.xlane.f32.xlu1 %v2036_v34 }
 0x3d3   : > { %v821_v37 = vpop.xlane.xlu1 %820 }
 0x3d4   : > { %v2042_v39 = vmax.f32 %v2039_v36, %v821_v37  ;;  %v691_v37 = vld [vmem:[#allocation3 + $0x10] sm:$0xff] }
 0x3d5   : > { %v823_v41 = vpop.xlane.xlu0 %822 }
 0x3d6   : > { %v826_v45 = vsub.f32 %v2039_v36, %v2042_v39  ;;  %922 = vst.msk [vmem:[#allocation2 + $0x20] sm:$0xff] %vm349_vm2, %v2042_v39  ;;  %834 = vperm.xlu1 %1622, %v2042_v39   ;;  %v825_v48 = vmax.f32 %v819_v38, %v823_v41  ;;  %v499_v39 = vld [vmem:[#allocation4 + $0x8] sm:$0xff] }
 0x3d8   : > { %v827_v49 = vsub.f32 %v819_v38, %v825_v48  ;;  %923 = vst.msk [vmem:[#allocation2 + $0x28] sm:$0xff] %vm349_vm2, %v825_v48  ;;  %v828_v20 = vmul.f32 1.442695, %v826_v45 }
 0x3da   : > { %839 = vperm.xlu1 %1622, %v825_v48   ;;  %v830_v61 = vmul.f32 1.442695, %v827_v49 }
 0x3dc   : > { %1646 = vpow2.f32 %v830_v61 }
 0x3ec   : > { %v979_v51 = vpop.xlane.xlu1 %978 }
 0x3ed   : > { %v2053_v52 = vmax.f32 %v2050_v50, %v979_v51 }
 0x3ef   : > { %v984_v56 = vsub.f32 %v2050_v50, %v2053_v52  ;;  %1080 = vst.msk [vmem:[#allocation2 + $0x30] sm:$0xff] %vm349_vm2, %v2053_v52  ;;  %992 = vperm.xlu0 %1623, %v2053_v52  }
 0x3f0   : > { %v981_v57 = vpop.xlane.xlu1 %980 }
 0x3f1   : > { %v983_v58 = vmax.f32 %v977_v53, %v981_v57  ;;  %v986_v21 = vmul.f32 1.442695, %v984_v56 }
 0x3f3   : > { %1081 = vst.msk [vmem:[#allocation2 + $0x38] sm:$0xff] %vm349_vm2, %v983_v58  ;;  %997 = vperm.xlu1 %1622, %v983_v58   ;;  %v985_v62 = vsub.f32 %v977_v53, %v983_v58  ;;  %v704_v53 = vld [vmem:[#allocation4 + $0x10] sm:$0xff] }
 0x40e   : > { %491 = vadd.xlane.f32.xlu0 %v1957_v55  ;;  %v988_v55 = vmul.f32 1.442695, %v985_v62 }
 0x410   : > { %1648 = vpow2.f32 %v988_v55 }
 0x412   : > { %697 = vadd.xlane.f32.xlu0 %v1979_v3 }
 0x417   : > { %489 = vadd.xlane.f32.xlu1 %v1955_v54  ;;  %v2071_v54 = vpop.eup %1644 }
 0x418   : > { %v2074_v29 = vpop.eup %1646  ;;  %v693_v49 = vmul.f32 %v2071_v54, %v691_v37 }
 0x41a   : > { %v2077_v33 = vpop.eup %1648 }
 0x41b   : > { %695 = vadd.xlane.f32.xlu1 %v1976_v2 }
 0x428   : > { %507 = vperm.xlu0 %1623, %v1643_v63  }
 0x42c   : > { %708 = vperm.xlu0 %1623, %v2071_v54  }
 0x430   : > { %871 = vperm.xlu0 %1623, %v2074_v29  }
 0x434   : > { %1029 = vperm.xlu0 %1623, %v2077_v33  }
 0x455   : > { %v835_v35 = vpop.permute.xlu1 %834 }
 0x456   : > { %v842_v40 = vsub.f32 %v2020_v13, %v835_v35 }
 0x458   : > { %v844_v42 = vmul.f32 1.442695, %v842_v40 }
 0x459   : > { %v840_v44 = vpop.permute.xlu1 %839 }
 0x45a   : > { %1650 = vpow2.f32 %v844_v42  ;;  %v843_v2 = vsub.f32 %v2023_v0, %v840_v44  ;;  %v849_v44 = vld [vmem:[#allocation3 + $0x20] sm:$0xff] }
 0x45c   : > { %v846_v3 = vmul.f32 1.442695, %v843_v2 }
 0x45e   : > { %1652 = vpow2.f32 %v846_v3 }
 0x464   : > { %v1651_v4 = vpop.eup %1650 }
 0x465   : > { %853 = vadd.xlane.f32.xlu1 %v1651_v4 }
 0x468   : > { %v1653_v5 = vpop.eup %1652 }
 0x469   : > { %855 = vadd.xlane.f32.xlu1 %v1653_v5  ;;  %v876_v6 = vpack.c.bf16 %v1653_v5, %v1651_v4 }
 0x46b   : > { %1559 = vmatmul.mubr.bf16.vlgmr.msra.gmra.mrb[12].mxu1 %v876_v6 }
 0x46e   : > { %v993_v8 = vpop.permute.xlu0 %992 }
 0x46f   : > { %v1000_v9 = vsub.f32 %v2033_v24, %v993_v8 }
 0x471   : > { %v1002_v10 = vmul.f32 1.442695, %v1000_v9  ;;  %v1007_v9 = vld [vmem:[#allocation3 + $0x30] sm:$0xff] }
 0x472   : > { %v998_v11 = vpop.permute.xlu1 %997 }
 0x473   : > { %1654 = vpow2.f32 %v1002_v10  ;;  %v1001_v12 = vsub.f32 %v2036_v34, %v998_v11 }
 0x475   : > { %v1004_v13 = vmul.f32 1.442695, %v1001_v12  ;;  %v1008_v12 = vld [vmem:[#allocation3 + $0x38] sm:$0xff] }
 0x477   : > { %1656 = vpow2.f32 %v1004_v13 }
 0x478   : > { %1658 = vpow2.f32 %v465_v16  ;;  %v498_v16 = vld [vmem:[#allocation4] sm:$0xff] }
 0x479   : > { %1660 = vpow2.f32 %v672_v18 }
 0x47a   : > { %1662 = vpow2.f32 %v828_v20  ;;  %v705_v20 = vld [vmem:[#allocation4 + $0x18] sm:$0xff] }
 0x47b   : > { %1664 = vpow2.f32 %v986_v21 }
 0x47d   : > { %v1655_v14 = vpop.eup %1654 }
 0x47e   : > { %1011 = vadd.xlane.f32.xlu1 %v1655_v14 }
 0x481   : > { %v1657_v15 = vpop.eup %1656 }
 0x482   : > { %1013 = vadd.xlane.f32.xlu1 %v1657_v15  ;;  %v1034_v0 = vpack.c.bf16 %v1657_v15, %v1655_v14  ;;  %v1659_v22 = vpop.eup %1658  ;;  %v1010_v14 = vmul.f32 %v2077_v33, %v1008_v12 }
 0x483   : > { %v1661_v23 = vpop.eup %1660  ;;  %v487_v34 = vmul.f32 %v1659_v22, %v485_v31 }
 0x484   : > { %1585 = vmatmul.mubr.bf16.vlgmr.msra.gmra.mrb[12].mxu0 %v1034_v0  ;;  %v1663_v30 = vpop.eup %1662  ;;  %v694_v47 = vmul.f32 %v1661_v23, %v692_v25 }
 0x485   : > { %v1665_v46 = vpop.eup %1664  ;;  %v851_v2 = vmul.f32 %v1663_v30, %v849_v44 }
 0x486   : > { %v1009_v10 = vmul.f32 %v1665_v46, %v1007_v9 }
 0x493   : > { %502 = vperm.xlu1 %1622, %v1659_v22  }
 0x497   : > { %713 = vperm.xlu1 %1622, %v1661_v23  }
 0x49b   : > { %866 = vperm.xlu1 %1622, %v1663_v30   ;;  %v492_v24 = vpop.xlane.xlu0 %491 }
 0x49c   : > { %v494_v43 = vadd.f32 %v492_v24, %v488_v32 }
 0x49e   : > { %497 = vst.msk [vmem:[#allocation3 + $0x8] sm:$0xff] %vm349_vm2, %v494_v43 }
 0x49f   : > { %1024 = vperm.xlu1 %1622, %v1665_v46   ;;  %v698_v27 = vpop.xlane.xlu0 %697 }
 0x4a0   : > { %v700_v28 = vadd.f32 %v698_v27, %v694_v47 }
 0x4a2   : > { %702 = vst.msk [vmem:[#allocation3 + $0x18] sm:$0xff] %vm349_vm2, %v700_v28 }
 0x4a4   : > { %v490_v36 = vpop.xlane.xlu1 %489 }
 0x4a5   : > { %v493_v38 = vadd.f32 %v490_v36, %v487_v34  ;;  %v1086_v41 = vld [vmem:[#allocation3 + $0x8] sm:$0xff] }
 0x4a6   : > { %v1088_v45 = vmax.f32 %v1086_v41, 1e-30  ;;  %v862_v41 = vld [vmem:[#allocation4 + $0x20] sm:$0xff] }
 0x4a7   : > { %496 = vst.msk [vmem:[#allocation3] sm:$0xff] %vm349_vm2, %v493_v38  ;;  %v508_v48 = vpop.permute.xlu0 %507 }
 0x4a8   : > { %v511_v50 = vmul.f32 %v508_v48, %v499_v39  ;;  %v696_v51 = vpop.xlane.xlu1 %695  ;;  %1666 = vrcp.f32 %v1088_v45 }
 0x4a9   : > { %v699_v52 = vadd.f32 %v696_v51, %v693_v49  ;;  %v1117_v56 = vld [vmem:[#allocation3 + $0x18] sm:$0xff] }
 0x4aa   : > { %v603_v57 = vadd.f32 %v2015_v7, %v511_v50  ;;  %v1119_v58 = vmax.f32 %v1117_v56, 1e-30  ;;  %v863_v50 = vld [vmem:[#allocation4 + $0x28] sm:$0xff] }
 0x4ab   : > { %701 = vst.msk [vmem:[#allocation3 + $0x10] sm:$0xff] %vm349_vm2, %v699_v52  ;;  %v709_v59 = vpop.permute.xlu0 %708 }
 0x4ac   : > { %605 = vst.msk [vmem:[#allocation4 + $0x8] sm:$0xff] %vm366_vm0, %v603_v57  ;;  %v716_v60 = vmul.f32 %v709_v59, %v704_v53  ;;  %1668 = vrcp.f32 %v1119_v58 }
 0x4ae   : > { %v760_v61 = vadd.f32 %v2026_v17, %v716_v60  ;;  %v1085_v62 = vld [vmem:[#allocation3] sm:$0xff]  ;;  %v850_v17 = vld [vmem:[#allocation3 + $0x28] sm:$0xff] }
 0x4af   : > { %v1087_v55 = vmax.f32 %v1085_v62, 1e-30  ;;  %v852_v5 = vmul.f32 %v2074_v29, %v850_v17  ;;  %v872_v33 = vpop.permute.xlu0 %871  ;;  %v1021_v17 = vld [vmem:[#allocation4 + $0x38] sm:$0xff] }
 0x4b0   : > { %762 = vst.msk [vmem:[#allocation4 + $0x10] sm:$0xff] %vm366_vm0, %v760_v61  ;;  %v875_v59 = vmul.f32 %v872_v33, %v863_v50 }
 0x4b1   : > { %1670 = vrcp.f32 %v1087_v55 }
 0x4b2   : > { %v1667_v63 = vpop.eup %1666  ;;  %v1116_v54 = vld [vmem:[#allocation3 + $0x10] sm:$0xff] }
 0x4b3   : > { %1100 = vperm.xlu0 %1623, %v1667_v63   ;;  %v1118_v35 = vmax.f32 %v1116_v54, 1e-30  ;;  %v1030_v32 = vpop.permute.xlu0 %1029  ;;  %v1092_v46 = vld [vmem:[#allocation4 + $0x8] sm:$0xff] }
 0x4b5   : > { %1672 = vrcp.f32 %v1118_v35 }
 0x4b6   : > { %v1669_v7 = vpop.eup %1668 }
 0x4b7   : > { %1131 = vperm.xlu0 %1623, %v1669_v7   ;;  %v1122_v62 = vld [vmem:[#allocation4 + $0x10] sm:$0xff] }
 0x4bb   : > { %v1671_v40 = vpop.eup %1670 }
 0x4bc   : > { %1095 = vperm.xlu1 %1622, %v1671_v40  }
 0x4bf   : > { %v1673_v42 = vpop.eup %1672 }
 0x4c0   : > { %1126 = vperm.xlu1 %1622, %v1673_v42  }
 0x4f2   : > { %v854_v3 = vpop.xlane.xlu1 %853 }
 0x4f3   : > { %v857_v4 = vadd.f32 %v854_v3, %v851_v2  ;;  %v1020_v3 = vld [vmem:[#allocation4 + $0x30] sm:$0xff] }
 0x4f5   : > { %859 = vst.msk [vmem:[#allocation3 + $0x20] sm:$0xff] %vm349_vm2, %v857_v4 }
 0x4f6   : > { %v856_v6 = vpop.xlane.xlu1 %855 }
 0x4f7   : > { %v858_v8 = vadd.f32 %v856_v6, %v852_v5  ;;  %v1033_v6 = vmul.f32 %v1030_v32, %v1021_v17 }
 0x4f9   : > { %860 = vst.msk [vmem:[#allocation3 + $0x28] sm:$0xff] %vm349_vm2, %v858_v8 }
 0x4fc   : > { %v1151_v34 = vld [vmem:[#allocation3 + $0x20] sm:$0xff] }
 0x4fd   : > { %v1153_v39 = vmax.f32 %v1151_v34, 1e-30 }
 0x500   : > { %v1152_v30 = vld [vmem:[#allocation3 + $0x28] sm:$0xff] }
 0x501   : > { %v1154_v24 = vmax.f32 %v1152_v30, 1e-30 }
 0x503   : > { %1674 = vrcp.f32 %v1154_v24 }
 0x50b   : > { %v1012_v11 = vpop.xlane.xlu1 %1011 }
 0x50c   : > { %v1015_v13 = vadd.f32 %v1012_v11, %v1009_v10 }
 0x50d   : > { %v1675_v56 = vpop.eup %1674 }
 0x50e   : > { %1017 = vst.msk [vmem:[#allocation3 + $0x30] sm:$0xff] %vm349_vm2, %v1015_v13 }
 0x50f   : > { %v1014_v15 = vpop.xlane.xlu1 %1013 }
 0x510   : > { %v1016_v0 = vadd.f32 %v1014_v15, %v1010_v14 }
 0x512   : > { %1018 = vst.msk [vmem:[#allocation3 + $0x38] sm:$0xff] %vm349_vm2, %v1016_v0 }
 0x513   : > { %v503_v18 = vpop.permute.xlu1 %502 }
 0x514   : > { %v510_v29 = vmul.f32 %v503_v18, %v498_v16 }
 0x515   : > { %v1186_v45 = vld [vmem:[#allocation3 + $0x30] sm:$0xff] }
 0x516   : > { %v602_v21 = vadd.f32 %v2013_v1, %v510_v29  ;;  %v1188_v53 = vmax.f32 %v1186_v45, 1e-30 }
 0x517   : > { %v714_v22 = vpop.permute.xlu1 %713 }
 0x518   : > { %604 = vst.msk [vmem:[#allocation4] sm:$0xff] %vm366_vm0, %v602_v21  ;;  %v717_v23 = vmul.f32 %v714_v22, %v705_v20 }
 0x519   : > { %v1187_v43 = vld [vmem:[#allocation3 + $0x38] sm:$0xff] }
 0x51a   : > { %v761_v26 = vadd.f32 %v2028_v19, %v717_v23  ;;  %v1189_v1 = vmax.f32 %v1187_v43, 1e-30 }
 0x51b   : > { %v867_v25 = vpop.permute.xlu1 %866 }
 0x51c   : > { %763 = vst.msk [vmem:[#allocation4 + $0x18] sm:$0xff] %vm366_vm0, %v761_v26  ;;  %1676 = vrcp.f32 %v1189_v1  ;;  %v874_v52 = vmul.f32 %v867_v25, %v862_v41 }
 0x51d   : > { %1678 = vrcp.f32 %v1153_v39 }
 0x51e   : > { %1680 = vrcp.f32 %v1188_v53 }
 0x51f   : > { %v1025_v36 = vpop.permute.xlu1 %1024  ;;  %v1091_v48 = vld [vmem:[#allocation4] sm:$0xff] }
 0x520   : > { %v1032_v4 = vmul.f32 %v1025_v36, %v1020_v3 }
 0x523   : > { %v1123_v28 = vld [vmem:[#allocation4 + $0x18] sm:$0xff] }
 0x526   : > { %v1677_v40 = vpop.eup %1676 }
 0x527   : > { %v1679_v44 = vpop.eup %1678 }
 0x528   : > { %v1681_v2 = vpop.eup %1680 }
 0x532   : > { %v1101_v47 = vpop.permute.xlu0 %1100 }
 0x533   : > { %v1104_v27 = vmul.f32 %v1101_v47, %v1092_v46 }
 0x535   : > { %v1414_v19 = vpack.c.bf16 %v1104_v27, %v1104_v27 }
 0x536   : > { %v1132_v31 = vpop.permute.xlu0 %1131 }
 0x537   : > { %1115 = vst.msk [vmem:[%s2116_s21 + $0x4] sm:$0xf] %vm1113_vm3, %v1414_v19  ;;  %v1135_v37 = vmul.f32 %v1132_v31, %v1123_v28 }
 0x539   : > { %v1416_v38 = vpack.c.bf16 %v1135_v37, %v1135_v37 }
 0x53b   : > { %v1096_v49 = vpop.permute.xlu1 %1095  ;;  %1144 = vrot.lane.b32.xlu0 %v1416_v38, %s1713_s19 }
 0x53c   : > { %v1103_v51 = vmul.f32 %v1096_v49, %v1091_v48 }
 0x53e   : > { %v1413_v57 = vpack.c.bf16 %v1103_v51, %v1103_v51  ;;  %v911_v58 = vpop.f32.mrb[12].mxu1 }
 0x53f   : > { %v918_v60 = vadd.f32 %v911_v58, %v874_v52  ;;  %v1127_v61 = vpop.permute.xlu1 %1126  ;;  %1166 = vperm.xlu0 %1623, %v1675_v56   ;;  %v1560_v55 = vpop.f32.mrb[13].mxu1 }
 0x540   : > { %1114 = vst.msk [vmem:[%s2116_s21] sm:$0xf] %vm1113_vm3, %v1413_v57  ;;  %v1134_v63 = vmul.f32 %v1127_v61, %v1122_v62  ;;  %v914_v54 = vpop.f32.mrb[14].mxu1 }
 0x541   : > { %920 = vst.msk [vmem:[#allocation4 + $0x20] sm:$0xff] %vm366_vm0, %v918_v60  ;;  %v919_v35 = vadd.f32 %v914_v54, %v875_v59  ;;  %v1561_v7 = vpop.f32.mrb[15].mxu1 }
 0x542   : > { %v1415_v42 = vpack.c.bf16 %v1134_v63, %v1134_v63 }
 0x543   : > { %921 = vst.msk [vmem:[#allocation4 + $0x28] sm:$0xff] %vm366_vm0, %v919_v35  ;;  %1201 = vperm.xlu0 %1623, %v1677_v40  }
 0x544   : > { %1142 = vrot.lane.b32.xlu1 %v1415_v42, %s1713_s19 }
 0x548   : > { %1161 = vperm.xlu1 %1622, %v1679_v44   ;;  %v1157_v26 = vld [vmem:[#allocation4 + $0x20] sm:$0xff] }
 0x54a   : > { %v1158_v0 = vld [vmem:[#allocation4 + $0x28] sm:$0xff] }
 0x54c   : > { %1196 = vperm.xlu1 %1622, %v1681_v2  }
 0x557   : > { %v1069_v5 = vpop.f32.mrb[12].mxu0 }
 0x558   : > { %v1076_v8 = vadd.f32 %v1069_v5, %v1032_v4  ;;  %v1586_v9 = vpop.f32.mrb[13].mxu0 }
 0x559   : > { %v1072_v10 = vpop.f32.mrb[14].mxu0 }
 0x55a   : > { %1078 = vst.msk [vmem:[#allocation4 + $0x30] sm:$0xff] %vm366_vm0, %v1076_v8  ;;  %v1077_v11 = vadd.f32 %v1072_v10, %v1033_v6  ;;  %v1587_v12 = vpop.f32.mrb[15].mxu0 }
 0x55c   : > { %1079 = vst.msk [vmem:[#allocation4 + $0x38] sm:$0xff] %vm366_vm0, %v1077_v11 }
 0x561   : > { %v1192_v32 = vld [vmem:[#allocation4 + $0x30] sm:$0xff] }
 0x563   : > { %v1193_v29 = vld [vmem:[#allocation4 + $0x38] sm:$0xff] }
 0x5ad   : > { %v1145_v13 = vpop.permute.xlu0 %1144 }
 0x5ae   : > { %1150 = vst.msk [vmem:[%s2116_s21 + $0x4] sm:$0xf] %vm1148_vm4, %v1145_v13 }
 0x5b6   : > { %v1143_v14 = vpop.permute.xlu1 %1142 }
 0x5b7   : > { %1149 = vst.msk [vmem:[%s2116_s21] sm:$0xf] %vm1148_vm4, %v1143_v14 }
 0x5be   : > { %v1167_v15 = vpop.permute.xlu0 %1166 }
 0x5bf   : > { %v1170_v16 = vmul.f32 %v1167_v15, %v1158_v0 }
 0x5c1   : > { %v1418_v18 = vpack.c.bf16 %v1170_v16, %v1170_v16 }
 0x5c2   : > { %v1202_v20 = vpop.permute.xlu0 %1201 }
 0x5c3   : > { %v1205_v21 = vmul.f32 %v1202_v20, %v1193_v29  ;;  %1179 = vrot.lane.b32.xlu0 %v1418_v18, %s1714_s22 }
 0x5c5   : > { %v1420_v22 = vpack.c.bf16 %v1205_v21, %v1205_v21 }
 0x5c7   : > { %v1162_v23 = vpop.permute.xlu1 %1161  ;;  %1214 = vrot.lane.b32.xlu0 %v1420_v22, %s1715_s23 }
 0x5c8   : > { %v1169_v33 = vmul.f32 %v1162_v23, %v1157_v26 }
 0x5ca   : > { %v1417_v30 = vpack.c.bf16 %v1169_v33, %v1169_v33 }
 0x5cb   : > { %v1197_v24 = vpop.permute.xlu1 %1196 }
 0x5cc   : > { %v1204_v25 = vmul.f32 %v1197_v24, %v1192_v32  ;;  %1177 = vrot.lane.b32.xlu1 %v1417_v30, %s1714_s22 }
 0x5ce   : > { %v1419_v43 = vpack.c.bf16 %v1204_v25, %v1204_v25 }
 0x5d0   : > { %1212 = vrot.lane.b32.xlu1 %v1419_v43, %s1715_s23 }
 0x635   : > { %v1180_v46 = vpop.permute.xlu0 %1179 }
 0x636   : > { %1185 = vst.msk [vmem:[%s2116_s21 + $0x4] sm:$0xf] %vm1183_vm5, %v1180_v46 }
 0x639   : > { %v1215_v47 = vpop.permute.xlu0 %1214 }
 0x63a   : > { %1220 = vst.msk [vmem:[%s2116_s21 + $0x4] sm:$0xf] %vm1218_vm6, %v1215_v47 }
 0x63e   : > { %v1178_v27 = vpop.permute.xlu1 %1177 }
 0x63f   : > { %1184 = vst.msk [vmem:[%s2116_s21] sm:$0xf] %vm1183_vm5, %v1178_v27 }
 0x642   : > { %v1213_v1 = vpop.permute.xlu1 %1212 }
 0x643   : > { %1219 = vst.msk [vmem:[%s2116_s21] sm:$0xf] %vm1218_vm6, %v1213_v1 }
 0x644 PF: > { %s14_s17 = sadd.s32 1, %s1704_s17   ;;  %s2146_s15 = smov %s1700_s16 }
 0x645   : > { %p11_p5 = scmp.ge.s32.totalorder %s14_s17, 4   ;;  %s2147_s16 = smov %s2149_s18 }
 0x647   :  { %13 = sbr.rel (!%p11_p5) target bundleno = 2 (0x2), region = 95 }

// kernel: _lambda_.22
= control target key start
LH: loop header
LB: loop body
LE: loop exit
PB: predicated region body
PF: predicated region fallthrough
CT: control target
= control target key end

     0   :  { %s189_s0 = inlined_call_operand.vmem [shape: bf16[32,128], index: 0, kind: input, shape index: {}]   ;;  %s190_s1 = inlined_call_operand.vmem [shape: f32[1,128], index: 1, kind: input, shape index: {}]   ;;  %s191_s2 = inlined_call_operand.vmem [shape: f32[1,128], index: 2, kind: input, shape index: {}]   ;;  %s192_s3 = inlined_call_operand.vmem [shape: bf16[32,128], index: 3, kind: output, shape index: {}]  }
   0x1   :  { %v124_v0 = vld [vmem:[%s189_s0] sm:$0xff]   ;;  %v141_v1 = vld [vmem:[%s189_s0 + $0x8] sm:$0xff]  }
   0x2   :  { %v125_v2 = vunpack.c.l.bf16 %v124_v0  ;;  %v129_v3 = vunpack.c.l.bf16 %v141_v1  ;;  %v126_v4 = vunpack.c.h.bf16 %v124_v0  ;;  %v130_v5 = vunpack.c.h.bf16 %v141_v1  ;;  %v113_v36 = vld [vmem:[%s190_s1] ss:$0 sm:$0xff] }
   0x3   :  { %v114_v41 = vld [vmem:[%s191_s2] ss:$0 sm:$0xff] }
   0x4   :  { %24 = vadd.xlane.f32.xlu0 %v125_v2  ;;  %28 = vadd.xlane.f32.xlu1 %v129_v3 }
   0x8   :  { %26 = vadd.xlane.f32.xlu0 %v126_v4  ;;  %30 = vadd.xlane.f32.xlu1 %v130_v5 }
  0x91   :  { %v25_v6 = vpop.xlane.xlu0 %24  ;;  %v29_v7 = vpop.xlane.xlu1 %28 }
  0x92   :  { %v33_v8 = vmul.f32 0.0078125, %v25_v6  ;;  %v35_v9 = vmul.f32 0.0078125, %v29_v7 }
  0x94   :  { %v37_v10 = vsub.f32 %v125_v2, %v33_v8  ;;  %v39_v11 = vsub.f32 %v129_v3, %v35_v9 }
  0x95   :  { %v27_v12 = vpop.xlane.xlu0 %26  ;;  %v31_v13 = vpop.xlane.xlu1 %30 }
  0x96   :  { %v34_v14 = vmul.f32 0.0078125, %v27_v12  ;;  %v41_v15 = vmul.f32 %v37_v10, %v37_v10  ;;  %v36_v16 = vmul.f32 0.0078125, %v31_v13  ;;  %v43_v19 = vmul.f32 %v39_v11, %v39_v11 }
  0x98   :  { %v38_v17 = vsub.f32 %v126_v4, %v34_v14  ;;  %45 = vadd.xlane.f32.xlu0 %v41_v15  ;;  %v40_v18 = vsub.f32 %v130_v5, %v36_v16 }
  0x9a   :  { %v42_v20 = vmul.f32 %v38_v17, %v38_v17  ;;  %v44_v21 = vmul.f32 %v40_v18, %v40_v18 }
  0x9c   :  { %49 = vadd.xlane.f32.xlu0 %v43_v19  ;;  %47 = vadd.xlane.f32.xlu1 %v42_v20 }
  0xa0   :  { %51 = vadd.xlane.f32.xlu1 %v44_v21 }
 0x125   :  { %v46_v22 = vpop.xlane.xlu0 %45 }
 0x126   :  { %v53_v23 = vmul.f32 0.0078125, %v46_v22 }
 0x128   :  { %v57_v24 = vadd.f32 1e-05, %v53_v23 }
 0x129   :  { %v48_v25 = vpop.xlane.xlu1 %47  ;;  %v50_v26 = vpop.xlane.xlu0 %49 }
 0x12a   :  { %143 = vrsqrt.f32 %v57_v24  ;;  %v54_v27 = vmul.f32 0.0078125, %v48_v25  ;;  %v55_v28 = vmul.f32 0.0078125, %v50_v26 }
 0x12c   :  { %v58_v29 = vadd.f32 1e-05, %v54_v27  ;;  %v59_v30 = vadd.f32 1e-05, %v55_v28 }
 0x12d   :  { %v52_v31 = vpop.xlane.xlu1 %51 }
 0x12e   :  { %145 = vrsqrt.f32 %v58_v29  ;;  %v56_v32 = vmul.f32 0.0078125, %v52_v31 }
 0x12f   :  { %147 = vrsqrt.f32 %v59_v30 }
 0x130   :  { %v60_v33 = vadd.f32 1e-05, %v56_v32 }
 0x132   :  { %149 = vrsqrt.f32 %v60_v33 }
 0x134   :  { %v144_v34 = vpop.eup %143 }
 0x135   :  { %v65_v35 = vmul.f32 %v144_v34, %v37_v10 }
 0x137   :  { %v75_v39 = vmul.f32 %v113_v36, %v65_v35 }
 0x138   :  { %v146_v37 = vpop.eup %145 }
 0x139   :  { %v148_v38 = vpop.eup %147  ;;  %v66_v40 = vmul.f32 %v146_v37, %v38_v17  ;;  %v85_v45 = vadd.f32 %v114_v41, %v75_v39 }
 0x13a   :  { %v67_v42 = vmul.f32 %v148_v38, %v39_v11 }
 0x13b   :  { %v76_v43 = vmul.f32 %v113_v36, %v66_v40 }
 0x13c   :  { %v150_v44 = vpop.eup %149  ;;  %v77_v47 = vmul.f32 %v113_v36, %v67_v42 }
 0x13d   :  { %v86_v46 = vadd.f32 %v114_v41, %v76_v43  ;;  %v68_v48 = vmul.f32 %v150_v44, %v40_v18 }
 0x13e   :  { %v87_v51 = vadd.f32 %v114_v41, %v77_v47 }
 0x13f   :  { %v134_v49 = vpack.c.bf16 %v86_v46, %v85_v45  ;;  %v78_v50 = vmul.f32 %v113_v36, %v68_v48 }
 0x141   :  { %135 = vst [vmem:[%s192_s3] sm:$0xff] %v134_v49   ;;  %v88_v52 = vadd.f32 %v114_v41, %v78_v50 }
 0x143   :  { %v139_v53 = vpack.c.bf16 %v88_v52, %v87_v51 }
 0x145   :  { %142 = vst [vmem:[%s192_s3 + $0x8] sm:$0xff] %v139_v53  }

// kernel: _lambda_.32
= control target key start
LH: loop header
LB: loop body
LE: loop exit
PB: predicated region body
PF: predicated region fallthrough
CT: control target
= control target key end

     0   :  { %v210_v0 = vmov 0.0   ;;  %vm211_vm0 = vmmov 0   ;;  %s268_s1 = inlined_call_operand.vmem [shape: bf16[128,128], index: 1, kind: input, shape index: {}]   ;;  %s269_s0 = inlined_call_operand.vmem [shape: bf16[16,128], index: 0, kind: input, shape index: {}]   ;;  %s270_s2 = inlined_call_operand.vmem [shape: f32[1,128], index: 2, kind: input, shape index: {}]   ;;  %s271_s3 = inlined_call_operand.vmem [shape: f32[16,128], index: 3, kind: output, shape index: {}]  }
   0x1   :  { %179 = vmatprep.subr.bf16.mxu0 %v210_v0  ;;  %v201_v1 = vld [vmem:[%s268_s1] sm:$0xff]   ;;  %195 = vmatprep.mubr.msk.bf16.mxu0 %vm211_vm0, %v210_v0  ;;  %v202_v2 = vld [vmem:[%s268_s1 + $0x8] sm:$0xff]   ;;  %v203_v3 = vld [vmem:[%s268_s1 + $0x10] sm:$0xff]  }
   0x2   :  { %180 = vmatpush3.bf16.msra.mxu0 %v201_v1  ;;  %v204_v4 = vld [vmem:[%s268_s1 + $0x18] sm:$0xff]   ;;  %v205_v5 = vld [vmem:[%s268_s1 + $0x20] sm:$0xff]   ;;  %v206_v6 = vld [vmem:[%s268_s1 + $0x28] sm:$0xff]  }
   0x3   :  { %181 = vmatprep.subr.bf16.mxu0 %v210_v0  ;;  %v207_v7 = vld [vmem:[%s268_s1 + $0x30] sm:$0xff]   ;;  %v208_v8 = vld [vmem:[%s268_s1 + $0x38] sm:$0xff]   ;;  %v209_v9 = vld [vmem:[%s269_s0] sm:$0xff]  }
   0x4   :  { %v169_v10 = vld [vmem:[%s270_s2] ss:$0 sm:$0xff] }
   0x6   :  { %182 = vmatpush3.bf16.msra.mxu0 %v202_v2 }
   0x7   :  { %183 = vmatprep.subr.bf16.mxu0 %v210_v0 }
   0xa   :  { %184 = vmatpush3.bf16.msra.mxu0 %v203_v3 }
   0xb   :  { %185 = vmatprep.subr.bf16.mxu0 %v210_v0 }
   0xe   :  { %186 = vmatpush3.bf16.msra.mxu0 %v204_v4 }
   0xf   :  { %187 = vmatprep.subr.bf16.mxu0 %v210_v0 }
  0x12   :  { %188 = vmatpush3.bf16.msra.mxu0 %v205_v5 }
  0x13   :  { %189 = vmatprep.subr.bf16.mxu0 %v210_v0 }
  0x16   :  { %190 = vmatpush3.bf16.msra.mxu0 %v206_v6 }
  0x17   :  { %191 = vmatprep.subr.bf16.mxu0 %v210_v0 }
  0x1a   :  { %192 = vmatpush3.bf16.msra.mxu0 %v207_v7 }
  0x1b   :  { %193 = vmatprep.subr.bf16.mxu0 %v210_v0 }
  0x1e   :  { %194 = vmatpush3.bf16.msra.mxu0 %v208_v8 }
  0x21   :  { %196 = vmatmul.mubr.bf16.vlgmr.msra.gmra.mrb[0].mxu0 %v209_v9 }
  0xf4   :  { %v129_v11 = vpop.f32.mrb[0].mxu0 }
  0xf5   :  { %v152_v12 = vadd.f32 %v169_v10, %v129_v11  ;;  %v197_v13 = vpop.f32.mrb[1].mxu0 }
  0xf6   :  { %v132_v14 = vpop.f32.mrb[2].mxu0 }
  0xf7   :  { %154 = vst [vmem:[%s271_s3] sm:$0xff] %v152_v12  ;;  %v153_v15 = vadd.f32 %v169_v10, %v132_v14  ;;  %v198_v16 = vpop.f32.mrb[3].mxu0 }
  0xf9   :  { %155 = vst [vmem:[%s271_s3 + $0x8] sm:$0xff] %v153_v15 }

// kernel: _lambda_.33
= control target key start
LH: loop header
LB: loop body
LE: loop exit
PB: predicated region body
PF: predicated region fallthrough
CT: control target
= control target key end

     0   :  { %s446_s9 = smov 0   ;;  %s448_s10 = smov 0   ;;  %s482_s0 = inlined_call_operand.vmem [shape: bf16[3,8,48], index: 0, kind: input, shape index: {}]   ;;  %s483_s1 = inlined_call_operand.vmem [shape: bf16[3,48,128], index: 1, kind: input, shape index: {}]   ;;  %s484_s2 = inlined_call_operand.vmem [shape: f32[3,8,128], index: 2, kind: output, shape index: {}]  }
   0x1   :  { %s450_s11 = smov 0  }
   0x2 LB: > { %s24_s12 = sadd.s32 1, %s423_s10  ;;  %p351_p0 = scmp.ge.s32.totalorder %s427_s11, 1  ;;  %s427_s11 = sphi %s450_s11, %s12_s11   ;;  %s423_s10 = sphi %s448_s10, %s486_s10   ;;  %s419_s9 = sphi %s446_s9, %s485_s9  }
   0x3   : > { %p26_p1 = scmp.ge.s32.totalorder %s24_s12, 3  ;;  %p140_p2 = scmp.lt.s32.totalorder %s427_s11, 4 }
   0x5   : > { %s488_s12 = smov (%p26_p1, %s24_s12), 0  ;;  %p141_p3 = pnand %p351_p0, %p140_p2 }
   0x6   : > { %p171_p4 = scmp.lt.s32.totalorder (!%p141_p3), %s419_s9, 2  ;;  %v429_v0 = vmov (!%p141_p3), 0.0   ;;  %vm430_vm0 = vmmov (!%p141_p3), 0   ;;  %vm216_vm1 = vcmask (!%p141_p3), 392192  }
   0x7   : > { %144 = sbr.rel (%p141_p3) target bundleno = 245 (0xf5), region = 28  ;;  %365 = vmatprep.subr.bf16.mxu0 (!%p141_p3), %v429_v0  ;;  %371 = vmatprep.mubr.msk.bf16.mxu0 (!%p141_p3), %vm430_vm0, %v429_v0 }
   0xe   : > { %s490_s9 = smov (!%p171_p4, %s419_s9), 2 }
   0xf   : > { %s375_s13 = smul.u32 24, %s490_s9  ;;  %s352_s17 = sshll.u32 %s490_s9, 2 }
  0x10   : > { %s177_s20 = scalar_lea.vmem %s482_s0, %s352_s17  ;;  %s354_s21 = sshll.u32 %s490_s9, 3 }
  0x11   : > { %s182_s16 = scalar_lea.vmem %s483_s1, %s375_s13  ;;  %v191_v4 = vld [vmem:[%s177_s20] sm:$0xf]  ;;  %s189_s24 = scalar_lea.vmem %s484_s2, %s354_s21 }
  0x12   : > { %v402_v1 = vld [vmem:[%s182_s16] sm:$0xff]   ;;  %v403_v2 = vld [vmem:[%s182_s16 + $0x8] sm:$0xff]   ;;  %v404_v3 = vld [vmem:[%s182_s16 + $0x10] sm:$0xff]  }
  0x13   : > { %366 = vmatpush3.bf16.msra.mxu0 %v402_v1 }
  0x14   : > { %367 = vmatprep.subr.bf16.mxu0 %v429_v0 }
  0x17   : > { %368 = vmatpush3.bf16.msra.mxu0 %v403_v2 }
  0x18   : > { %369 = vmatprep.subr.bf16.mxu0 %v429_v0 }
  0x1b   : > { %370 = vmatpush3.bf16.msra.mxu0 %v404_v3 }
  0x1e   : > { %372 = vmatmul.mubr.msk.bf16.vlgmr.msra.gmra.mrb[0].mxu0 %vm216_vm1, %v191_v4 }
  0xf1   : > { %v254_v5 = vpop.f32.mrb[0].mxu0 }
  0xf2   : > { %260 = vst [vmem:[%s189_s24] sm:$0xff] %v254_v5  ;;  %v373_v6 = vpop.f32.mrb[1].mxu0 }
  0xf3   : > { %v257_v7 = vpop.f32.mrb[2].mxu0 }
  0xf4   : > { %v374_v8 = vpop.f32.mrb[3].mxu0 }
  0xf5 PF: > { %s12_s11 = sadd.s32 1, %s427_s11   ;;  %s485_s9 = smov %s423_s10 }
  0xf6   : > { %p9_p5 = scmp.ge.s32.totalorder %s12_s11, 5   ;;  %s486_s10 = smov %s488_s12 }
  0xf8   :  { %11 = sbr.rel (!%p9_p5) target bundleno = 2 (0x2), region = 61 }

</bundles_post_ra>
